<compile_context>
chip_gen: v7x
topology: tpu7x:2x2x1
jax: 0.10.0
libtpu: 0.0.40
codegen_flags: <defaults>
</compile_context>

<pallas_src>
import functools

import jax
import jax.numpy as jnp
from jax.experimental import pallas as pl
from jax.experimental.pallas import tpu as pltpu

channel_scale = [0.25, 0.5, 0.75, 1.0]   # synthetic global list, as in the PyTorch file
BN_EPS = 1e-5


def _round_up(x, m):
    return ((x + m - 1) // m) * m


# ----------------------------- Pallas kernels -----------------------------

def _weight_gen_kernel(s_ref, w11t_ref, b11_ref, w12t_ref, b12_ref, o_ref):
    # fc11: (1,1) -> (1,32) + ReLU   (input dim == 1, so the matmul is a broadcast-mul)
    h = jnp.maximum(s_ref[...] * w11t_ref[...] + b11_ref[...], 0.0)
    # fc12 (tiled over the 128-aligned flattened-weight lane axis): (1,32) @ (32,tk) + b
    o_ref[...] = (jnp.dot(h, w12t_ref[...], preferred_element_type=jnp.float32)
                  + b12_ref[...])


def _conv3x3_bn_relu_kernel(x_ref, w_ref, scale_ref, bias_ref, o_ref, *,
                            ho, wo, stride):
    # x_ref:      (Hp, Wp, Cin)       bf16  (spatially zero-padded NHWC image)
    # w_ref:      (9, Cin, Cout_pad)  bf16  (tap-major weights, lane-padded)
    # scale/bias: (1, Cout_pad)       f32   (folded BatchNorm, zero in padded lanes)
    # o_ref:      (ho, wo, Cout_pad)  f32
    cin = x_ref.shape[-1]
    coutp = w_ref.shape[-1]
    acc = jnp.zeros((ho * wo, coutp), jnp.float32)
    for kh in range(3):
        for kw in range(3):
            if stride == 1:
                tap = x_ref[kh:kh + ho, kw:kw + wo, :]
            else:
                tap = x_ref[pl.ds(kh, ho, stride), pl.ds(kw, wo, stride), :]
            acc += jnp.dot(tap.reshape(ho * wo, cin), w_ref[kh * 3 + kw],
                           preferred_element_type=jnp.float32)
    out = jnp.maximum(acc * scale_ref[...] + bias_ref[...], 0.0)
    o_ref[...] = out.reshape(ho, wo, coutp)


# --------------------------- pallas_call wrappers ---------------------------

def _weight_gen(s, w11t, b11, w12t, b12, kmax):
    kp = _round_up(kmax, 128)              # lane-dense output for the hyper-net
    w12t_p = jnp.pad(w12t, ((0, 0), (0, kp - kmax)))
    b12_p = jnp.pad(b12, ((0, 0), (0, kp - kmax)))
    tk = min(kp, 4096)                     # tile Kmax so huge layers never OOM VMEM
    out = pl.pallas_call(
        _weight_gen_kernel,
        out_shape=jax.ShapeDtypeStruct((1, kp), jnp.float32),
        grid=(pl.cdiv(kp, tk),),
        in_specs=[
            pl.BlockSpec((1, 1), lambda k: (0, 0)),
            pl.BlockSpec((1, 32), lambda k: (0, 0)),
            pl.BlockSpec((1, 32), lambda k: (0, 0)),
            pl.BlockSpec((32, tk), lambda k: (0, k)),
            pl.BlockSpec((1, tk), lambda k: (0, k)),
        ],
        out_specs=pl.BlockSpec((1, tk), lambda k: (0, k)),
        compiler_params=pltpu.CompilerParams(dimension_semantics=("parallel",)),
    )(s, w11t, b11, w12t_p, b12_p)
    return out[:, :kmax]


def _conv3x3_bn_relu(x_pad, w, bn_scale, bn_bias, ho, wo, stride):
    n, hp, wp, cin = x_pad.shape
    coutp = w.shape[-1]
    kernel = functools.partial(_conv3x3_bn_relu_kernel, ho=ho, wo=wo, stride=stride)

    flops = 2 * n * ho * wo * 9 * cin * coutp
    bytes_accessed = (x_pad.size * x_pad.dtype.itemsize + w.size * w.dtype.itemsize
                      + (bn_scale.size + bn_bias.size) * 4 + n * ho * wo * coutp * 4)
    # per-step VMEM: double-buffered input & output blocks + resident weight/BN.
    vmem_need = (2 * (hp * wp * cin * 2 + ho * wo * coutp * 4)
                 + w.size * 2 + 2 * coutp * 4 + (2 << 20))
    # Clamp to a value valid on every generation (v7x physical VMEM is only 64 MiB).
    vmem_limit = int(min(max(vmem_need, 32 << 20), 48 << 20))
    # TODO(synk): for large spatial sizes add an H-tile grid axis with a halo'd manual
    # DMA instead of one whole image per grid step.

    return pl.pallas_call(
        kernel,
        out_shape=jax.ShapeDtypeStruct((n, ho, wo, coutp), jnp.float32),
        grid=(n,),
        in_specs=[
            pl.BlockSpec((None, hp, wp, cin), lambda i: (i, 0, 0, 0)),
            pl.BlockSpec((9, cin, coutp), lambda i: (0, 0, 0)),
            pl.BlockSpec((1, coutp), lambda i: (0, 0)),
            pl.BlockSpec((1, coutp), lambda i: (0, 0)),
        ],
        out_specs=pl.BlockSpec((None, ho, wo, coutp), lambda i: (i, 0, 0, 0)),
        compiler_params=pltpu.CompilerParams(
            dimension_semantics=("parallel",),
            vmem_limit_bytes=vmem_limit),
        cost_estimate=pl.CostEstimate(flops=flops, transcendentals=0,
                                      bytes_accessed=bytes_accessed),
    )(x_pad, w, bn_scale, bn_bias)


# ----------------------------- module params ------------------------------

def init_params(key, base_inp, base_oup):
    max_scale = channel_scale[-1]
    max_oup = int(max_scale * base_oup)
    kmax = max_oup * base_inp * 3 * 3
    keys = jax.random.split(key, 4 + 4 * len(channel_scale))
    params = {
        "fc11_w": jax.random.normal(keys[0], (32, 1), jnp.float32) * 0.5,
        "fc11_b": jax.random.normal(keys[1], (32,), jnp.float32) * 0.1,
        "fc12_w": jax.random.normal(keys[2], (kmax, 32), jnp.float32) * 0.05,
        "fc12_b": jax.random.normal(keys[3], (kmax,), jnp.float32) * 0.01,
        "bn": [],
    }
    for i, sc in enumerate(channel_scale):
        oup = int(base_oup * sc)
        kk = keys[4 + 4 * i: 8 + 4 * i]
        params["bn"].append({
            "gamma": 1.0 + 0.1 * jax.random.normal(kk[0], (oup,), jnp.float32),
            "beta": 0.1 * jax.random.normal(kk[1], (oup,), jnp.float32),
            "mean": 0.1 * jax.random.normal(kk[2], (oup,), jnp.float32),
            "var": 1.0 + 0.1 * jnp.abs(jax.random.normal(kk[3], (oup,), jnp.float32)),
        })
    return params


# ------------------------------- forward ----------------------------------

def conv_3x3_forward(params, x, oup_scale_id, base_inp, base_oup, stride):
    assert stride in (1, 2)
    max_scale = channel_scale[-1]
    max_oup = int(max_scale * base_oup)
    oup_scale = channel_scale[oup_scale_id]
    oup = int(base_oup * oup_scale)
    kmax = max_oup * base_inp * 9

    # --- generate the conv weight from the scale via the fc11/fc12 hyper-net (Pallas) ---
    s = jnp.full((1, 1), oup_scale / max_scale, dtype=jnp.float32)
    flat_w = _weight_gen(
        s,
        params["fc11_w"].T,                       # (1, 32)
        params["fc11_b"].reshape(1, 32),
        params["fc12_w"].T,                       # (32, Kmax)
        params["fc12_b"].reshape(1, -1),
        kmax,
    )
    conv_w = flat_w.reshape(max_oup, base_inp, 3, 3)[:oup]        # (oup, Cin, 3, 3) OIHW

    # tap-major (9, Cin, Cout_pad) weight layout, out channels zero-padded to 128 lanes
    coutp = _round_up(oup, 128)
    w_taps = conv_w.transpose(2, 3, 1, 0).reshape(9, base_inp, oup)
    w_taps = jnp.pad(w_taps, ((0, 0), (0, 0), (0, coutp - oup))).astype(jnp.bfloat16)

    # --- fold inference-mode BatchNorm into per-channel scale/bias (zero in pad lanes) ---
    # TODO(synk): PyTorch default train() mode would use batch statistics; here BN is
    # applied in inference mode using the (deterministically initialized) running stats.
    bn = params["bn"][oup_scale_id]
    bn_scale = bn["gamma"] / jnp.sqrt(bn["var"] + BN_EPS)
    bn_bias = bn["beta"] - bn["mean"] * bn_scale
    bn_scale = jnp.pad(bn_scale, (0, coutp - oup)).reshape(1, coutp).astype(jnp.float32)
    bn_bias = jnp.pad(bn_bias, (0, coutp - oup)).reshape(1, coutp).astype(jnp.float32)

    # --- single NCHW->NHWC transpose + spatial zero-pad + bf16 cast (one input pass) ---
    n, cin, h, w = x.shape
    ho = (h + 2 - 3) // stride + 1
    wo = (w + 2 - 3) // stride + 1
    x_pad = jnp.pad(jnp.transpose(x, (0, 2, 3, 1)),
                    ((0, 0), (1, 1), (1, 1), (0, 0))).astype(jnp.bfloat16)

    out_nhwc = _conv3x3_bn_relu(x_pad, w_taps, bn_scale, bn_bias, ho, wo, stride)
    return jnp.transpose(out_nhwc[..., :oup], (0, 3, 1, 2))       # back to NCHW


# --------------------------------- main ------------------------------------

if __name__ == "__main__":
    base_inp, base_oup, stride = 4, 8, 1
    oup_scale_id = 2                      # scale 0.75 -> oup = 6
    key = jax.random.PRNGKey(0)
    pkey, xkey = jax.random.split(key)
    params = init_params(pkey, base_inp, base_oup)
    x = jax.random.normal(xkey, (2, base_inp, 16, 16), jnp.float32)

    fwd = jax.jit(functools.partial(conv_3x3_forward, oup_scale_id=oup_scale_id,
                                    base_inp=base_inp, base_oup=base_oup, stride=stride))
    out = jax.block_until_ready(fwd(params, x))

    # ---- pure-JAX reference for sanity ----
    max_scale = channel_scale[-1]
    oup_scale = channel_scale[oup_scale_id]
    oup = int(base_oup * oup_scale)
    max_oup = int(max_scale * base_oup)
    s = jnp.full((1, 1), oup_scale / max_scale, jnp.float32)
    h = jnp.maximum(s @ params["fc11_w"].T + params["fc11_b"][None], 0.0)
    flat = h @ params["fc12_w"].T + params["fc12_b"][None]
    conv_w_ref = flat.reshape(max_oup, base_inp, 3, 3)[:oup]
    ref = jax.lax.conv_general_dilated(
        x, conv_w_ref, window_strides=(stride, stride), padding=((1, 1), (1, 1)),
        dimension_numbers=("NCHW", "OIHW", "NCHW"))
    bn = params["bn"][oup_scale_id]
    sc = (bn["gamma"] / jnp.sqrt(bn["var"] + BN_EPS)).reshape(1, oup, 1, 1)
    bs = bn["beta"].reshape(1, oup, 1, 1) - bn["mean"].reshape(1, oup, 1, 1) * sc
    ref = jnp.maximum(ref * sc + bs, 0.0)

    assert out.shape == (2, oup, 16, 16), out.shape
    assert jnp.allclose(out, ref, atol=2e-2, rtol=2e-2), float(jnp.max(jnp.abs(out - ref)))
    print("KERNEL_OK")
</pallas_src>

<mosaic_0001>
module attributes {stable_mosaic.version = 11 : i64} {
  func.func @_weight_gen_kernel(%arg0: i32, %arg1: memref<1x1xf32, #tpu.memory_space<vmem>>, %arg2: memref<1x32xf32, #tpu.memory_space<vmem>>, %arg3: memref<1x32xf32, #tpu.memory_space<vmem>>, %arg4: memref<32x384xf32, #tpu.memory_space<vmem>>, %arg5: memref<1x384xf32, #tpu.memory_space<vmem>>, %arg6: memref<1x384xf32, #tpu.memory_space<vmem>>) attributes {dimension_semantics = [#tpu.dimension_semantics<parallel>], iteration_bounds = array<i64: 1>, scalar_prefetch = 0 : i64, scratch_operands = 0 : i64, tpu.core_type = #tpu.core_type<tc>, window_params = [{pipeline_mode = #tpu.pipeline_mode<synchronous>, transform_indices = @transform_0, window_bounds = array<i64: 1, 1>}, {pipeline_mode = #tpu.pipeline_mode<synchronous>, transform_indices = @transform_1, window_bounds = array<i64: 1, 32>}, {pipeline_mode = #tpu.pipeline_mode<synchronous>, transform_indices = @transform_2, window_bounds = array<i64: 1, 32>}, {transform_indices = @transform_3, window_bounds = array<i64: 32, 384>}, {transform_indices = @transform_4, window_bounds = array<i64: 1, 384>}, {transform_indices = @transform_5, window_bounds = array<i64: 1, 384>}]} {
    %c0 = arith.constant 0 : index
    %c0_0 = arith.constant 0 : index
    %0 = vector.load %arg1[%c0, %c0_0] : memref<1x1xf32, #tpu.memory_space<vmem>>, vector<1x1xf32>
    %c0_1 = arith.constant 0 : index
    %c0_2 = arith.constant 0 : index
    %1 = vector.load %arg2[%c0_1, %c0_2] : memref<1x32xf32, #tpu.memory_space<vmem>>, vector<1x32xf32>
    %2 = vector.broadcast %0 : vector<1x1xf32> to vector<1x32xf32>
    %3 = arith.mulf %2, %1 : vector<1x32xf32>
    %c0_3 = arith.constant 0 : index
    %c0_4 = arith.constant 0 : index
    %4 = vector.load %arg3[%c0_3, %c0_4] : memref<1x32xf32, #tpu.memory_space<vmem>>, vector<1x32xf32>
    %5 = arith.addf %3, %4 : vector<1x32xf32>
    %cst = arith.constant 0.000000e+00 : f32
    %6 = vector.broadcast %cst : f32 to vector<1x32xf32>
    %7 = arith.maximumf %5, %6 : vector<1x32xf32>
    %c0_5 = arith.constant 0 : index
    %c0_6 = arith.constant 0 : index
    %8 = vector.load %arg4[%c0_5, %c0_6] : memref<32x384xf32, #tpu.memory_space<vmem>>, vector<32x384xf32>
    %cst_7 = arith.constant dense<0.000000e+00> : vector<1x384xf32>
    %9 = tpu.matmul %7, %8, %cst_7 {dimension_numbers = #tpu.dot_dimension_numbers<[1], [0], [0], [1], [0, 0, 1, 1], [], []>} : vector<1x32xf32>, vector<32x384xf32>, vector<1x384xf32> -> vector<1x384xf32>
    %c0_8 = arith.constant 0 : index
    %c0_9 = arith.constant 0 : index
    %10 = vector.load %arg5[%c0_8, %c0_9] : memref<1x384xf32, #tpu.memory_space<vmem>>, vector<1x384xf32>
    %11 = arith.addf %9, %10 : vector<1x384xf32>
    %c0_10 = arith.constant 0 : index
    %c0_11 = arith.constant 0 : index
    %12 = vector.load %arg6[%c0_10, %c0_11] : memref<1x384xf32, #tpu.memory_space<vmem>>, vector<1x384xf32>
    tpu.vector_store %arg6[%c0_10, %c0_11], %11 {strides = array<i32>} : memref<1x384xf32, #tpu.memory_space<vmem>>, vector<1x384xf32>,
    return
  }
  func.func @transform_0(%arg0: i32) -> (i32, i32) {
    %c0_i32 = arith.constant 0 : i32
    %c0_i32_0 = arith.constant 0 : i32
    %c0_i32_1 = arith.constant 0 : i32
    return %c0_i32, %c0_i32_0 : i32, i32
  }
  func.func @transform_1(%arg0: i32) -> (i32, i32) {
    %c0_i32 = arith.constant 0 : i32
    %c0_i32_0 = arith.constant 0 : i32
    %c0_i32_1 = arith.constant 0 : i32
    return %c0_i32, %c0_i32_0 : i32, i32
  }
  func.func @transform_2(%arg0: i32) -> (i32, i32) {
    %c0_i32 = arith.constant 0 : i32
    %c0_i32_0 = arith.constant 0 : i32
    %c0_i32_1 = arith.constant 0 : i32
    return %c0_i32, %c0_i32_0 : i32, i32
  }
  func.func @transform_3(%arg0: i32) -> (i32, i32) {
    %c0_i32 = arith.constant 0 : i32
    %c0_i32_0 = arith.constant 0 : i32
    return %c0_i32, %arg0 : i32, i32
  }
  func.func @transform_4(%arg0: i32) -> (i32, i32) {
    %c0_i32 = arith.constant 0 : i32
    %c0_i32_0 = arith.constant 0 : i32
    return %c0_i32, %arg0 : i32, i32
  }
  func.func @transform_5(%arg0: i32) -> (i32, i32) {
    %c0_i32 = arith.constant 0 : i32
    %c0_i32_0 = arith.constant 0 : i32
    return %c0_i32, %arg0 : i32, i32
  }
}

module attributes {stable_mosaic.version = 11 : i64} {
  func.func @_conv3x3_bn_relu_kernel(%arg0: i32, %arg1: memref<1x18x18x4xbf16, #tpu.memory_space<vmem>>, %arg2: memref<9x4x128xbf16, #tpu.memory_space<vmem>>, %arg3: memref<1x128xf32, #tpu.memory_space<vmem>>, %arg4: memref<1x128xf32, #tpu.memory_space<vmem>>, %arg5: memref<1x16x16x128xf32, #tpu.memory_space<vmem>>) attributes {dimension_semantics = [#tpu.dimension_semantics<parallel>], iteration_bounds = array<i64: 2>, scalar_prefetch = 0 : i64, scratch_operands = 0 : i64, tpu.core_type = #tpu.core_type<tc>, window_params = [{transform_indices = @transform_0, window_bounds = array<i64: 1, 18, 18, 4>}, {pipeline_mode = #tpu.pipeline_mode<synchronous>, transform_indices = @transform_1, window_bounds = array<i64: 9, 4, 128>}, {pipeline_mode = #tpu.pipeline_mode<synchronous>, transform_indices = @transform_2, window_bounds = array<i64: 1, 128>}, {pipeline_mode = #tpu.pipeline_mode<synchronous>, transform_indices = @transform_3, window_bounds = array<i64: 1, 128>}, {transform_indices = @transform_4, window_bounds = array<i64: 1, 16, 16, 128>}]} {
    %cst = arith.constant 0.000000e+00 : f32
    %0 = vector.broadcast %cst : f32 to vector<256x128xf32>
    %c0 = arith.constant 0 : index
    %c0_0 = arith.constant 0 : index
    %c0_1 = arith.constant 0 : index
    %c0_2 = arith.constant 0 : index
    %1 = vector.load %arg1[%c0, %c0_0, %c0_1, %c0_2] : memref<1x18x18x4xbf16, #tpu.memory_space<vmem>>, vector<1x16x16x4xbf16>
    %2 = vector.shape_cast %1 : vector<1x16x16x4xbf16> to vector<16x16x4xbf16>
    %3 = vector.shape_cast %2 : vector<16x16x4xbf16> to vector<256x4xbf16>
    %c0_3 = arith.constant 0 : index
    %c0_4 = arith.constant 0 : index
    %c0_5 = arith.constant 0 : index
    %4 = vector.load %arg2[%c0_3, %c0_4, %c0_5] : memref<9x4x128xbf16, #tpu.memory_space<vmem>>, vector<1x4x128xbf16>
    %5 = vector.shape_cast %4 : vector<1x4x128xbf16> to vector<4x128xbf16>
    %cst_6 = arith.constant dense<0.000000e+00> : vector<256x128xf32>
    %6 = tpu.matmul %3, %5, %cst_6 {dimension_numbers = #tpu.dot_dimension_numbers<[1], [0], [0], [1], [0, 0, 1, 1], [], []>} : vector<256x4xbf16>, vector<4x128xbf16>, vector<256x128xf32> -> vector<256x128xf32>
    %7 = arith.addf %0, %6 : vector<256x128xf32>
    %c0_7 = arith.constant 0 : index
    %c0_8 = arith.constant 0 : index
    %c1 = arith.constant 1 : index
    %c0_9 = arith.constant 0 : index
    %8 = vector.load %arg1[%c0_7, %c0_8, %c1, %c0_9] : memref<1x18x18x4xbf16, #tpu.memory_space<vmem>>, vector<1x16x16x4xbf16>
    %9 = vector.shape_cast %8 : vector<1x16x16x4xbf16> to vector<16x16x4xbf16>
    %10 = vector.shape_cast %9 : vector<16x16x4xbf16> to vector<256x4xbf16>
    %c1_10 = arith.constant 1 : index
    %c0_11 = arith.constant 0 : index
    %c0_12 = arith.constant 0 : index
    %11 = vector.load %arg2[%c1_10, %c0_11, %c0_12] : memref<9x4x128xbf16, #tpu.memory_space<vmem>>, vector<1x4x128xbf16>
    %12 = vector.shape_cast %11 : vector<1x4x128xbf16> to vector<4x128xbf16>
    %cst_13 = arith.constant dense<0.000000e+00> : vector<256x128xf32>
    %13 = tpu.matmul %10, %12, %cst_13 {dimension_numbers = #tpu.dot_dimension_numbers<[1], [0], [0], [1], [0, 0, 1, 1], [], []>} : vector<256x4xbf16>, vector<4x128xbf16>, vector<256x128xf32> -> vector<256x128xf32>
    %14 = arith.addf %7, %13 : vector<256x128xf32>
    %c0_14 = arith.constant 0 : index
    %c0_15 = arith.constant 0 : index
    %c2 = arith.constant 2 : index
    %c0_16 = arith.constant 0 : index
    %15 = vector.load %arg1[%c0_14, %c0_15, %c2, %c0_16] : memref<1x18x18x4xbf16, #tpu.memory_space<vmem>>, vector<1x16x16x4xbf16>
    %16 = vector.shape_cast %15 : vector<1x16x16x4xbf16> to vector<16x16x4xbf16>
    %17 = vector.shape_cast %16 : vector<16x16x4xbf16> to vector<256x4xbf16>
    %c2_17 = arith.constant 2 : index
    %c0_18 = arith.constant 0 : index
    %c0_19 = arith.constant 0 : index
    %18 = vector.load %arg2[%c2_17, %c0_18, %c0_19] : memref<9x4x128xbf16, #tpu.memory_space<vmem>>, vector<1x4x128xbf16>
    %19 = vector.shape_cast %18 : vector<1x4x128xbf16> to vector<4x128xbf16>
    %cst_20 = arith.constant dense<0.000000e+00> : vector<256x128xf32>
    %20 = tpu.matmul %17, %19, %cst_20 {dimension_numbers = #tpu.dot_dimension_numbers<[1], [0], [0], [1], [0, 0, 1, 1], [], []>} : vector<256x4xbf16>, vector<4x128xbf16>, vector<256x128xf32> -> vector<256x128xf32>
    %21 = arith.addf %14, %20 : vector<256x128xf32>
    %c0_21 = arith.constant 0 : index
    %c1_22 = arith.constant 1 : index
    %c0_23 = arith.constant 0 : index
    %c0_24 = arith.constant 0 : index
    %22 = vector.load %arg1[%c0_21, %c1_22, %c0_23, %c0_24] : memref<1x18x18x4xbf16, #tpu.memory_space<vmem>>, vector<1x16x16x4xbf16>
    %23 = vector.shape_cast %22 : vector<1x16x16x4xbf16> to vector<16x16x4xbf16>
    %24 = vector.shape_cast %23 : vector<16x16x4xbf16> to vector<256x4xbf16>
    %c3 = arith.constant 3 : index
    %c0_25 = arith.constant 0 : index
    %c0_26 = arith.constant 0 : index
    %25 = vector.load %arg2[%c3, %c0_25, %c0_26] : memref<9x4x128xbf16, #tpu.memory_space<vmem>>, vector<1x4x128xbf16>
    %26 = vector.shape_cast %25 : vector<1x4x128xbf16> to vector<4x128xbf16>
    %cst_27 = arith.constant dense<0.000000e+00> : vector<256x128xf32>
    %27 = tpu.matmul %24, %26, %cst_27 {dimension_numbers = #tpu.dot_dimension_numbers<[1], [0], [0], [1], [0, 0, 1, 1], [], []>} : vector<256x4xbf16>, vector<4x128xbf16>, vector<256x128xf32> -> vector<256x128xf32>
    %28 = arith.addf %21, %27 : vector<256x128xf32>
    %c0_28 = arith.constant 0 : index
    %c1_29 = arith.constant 1 : index
    %c1_30 = arith.constant 1 : index
    %c0_31 = arith.constant 0 : index
    %29 = vector.load %arg1[%c0_28, %c1_29, %c1_30, %c0_31] : memref<1x18x18x4xbf16, #tpu.memory_space<vmem>>, vector<1x16x16x4xbf16>
    %30 = vector.shape_cast %29 : vector<1x16x16x4xbf16> to vector<16x16x4xbf16>
    %31 = vector.shape_cast %30 : vector<16x16x4xbf16> to vector<256x4xbf16>
    %c4 = arith.constant 4 : index
    %c0_32 = arith.constant 0 : index
    %c0_33 = arith.constant 0 : index
    %32 = vector.load %arg2[%c4, %c0_32, %c0_33] : memref<9x4x128xbf16, #tpu.memory_space<vmem>>, vector<1x4x128xbf16>
    %33 = vector.shape_cast %32 : vector<1x4x128xbf16> to vector<4x128xbf16>
    %cst_34 = arith.constant dense<0.000000e+00> : vector<256x128xf32>
    %34 = tpu.matmul %31, %33, %cst_34 {dimension_numbers = #tpu.dot_dimension_numbers<[1], [0], [0], [1], [0, 0, 1, 1], [], []>} : vector<256x4xbf16>, vector<4x128xbf16>, vector<256x128xf32> -> vector<256x128xf32>
    %35 = arith.addf %28, %34 : vector<256x128xf32>
    %c0_35 = arith.constant 0 : index
    %c1_36 = arith.constant 1 : index
    %c2_37 = arith.constant 2 : index
    %c0_38 = arith.constant 0 : index
    %36 = vector.load %arg1[%c0_35, %c1_36, %c2_37, %c0_38] : memref<1x18x18x4xbf16, #tpu.memory_space<vmem>>, vector<1x16x16x4xbf16>
    %37 = vector.shape_cast %36 : vector<1x16x16x4xbf16> to vector<16x16x4xbf16>
    %38 = vector.shape_cast %37 : vector<16x16x4xbf16> to vector<256x4xbf16>
    %c5 = arith.constant 5 : index
    %c0_39 = arith.constant 0 : index
    %c0_40 = arith.constant 0 : index
    %39 = vector.load %arg2[%c5, %c0_39, %c0_40] : memref<9x4x128xbf16, #tpu.memory_space<vmem>>, vector<1x4x128xbf16>
    %40 = vector.shape_cast %39 : vector<1x4x128xbf16> to vector<4x128xbf16>
    %cst_41 = arith.constant dense<0.000000e+00> : vector<256x128xf32>
    %41 = tpu.matmul %38, %40, %cst_41 {dimension_numbers = #tpu.dot_dimension_numbers<[1], [0], [0], [1], [0, 0, 1, 1], [], []>} : vector<256x4xbf16>, vector<4x128xbf16>, vector<256x128xf32> -> vector<256x128xf32>
    %42 = arith.addf %35, %41 : vector<256x128xf32>
    %c0_42 = arith.constant 0 : index
    %c2_43 = arith.constant 2 : index
    %c0_44 = arith.constant 0 : index
    %c0_45 = arith.constant 0 : index
    %43 = vector.load %arg1[%c0_42, %c2_43, %c0_44, %c0_45] : memref<1x18x18x4xbf16, #tpu.memory_space<vmem>>, vector<1x16x16x4xbf16>
    %44 = vector.shape_cast %43 : vector<1x16x16x4xbf16> to vector<16x16x4xbf16>
    %45 = vector.shape_cast %44 : vector<16x16x4xbf16> to vector<256x4xbf16>
    %c6 = arith.constant 6 : index
    %c0_46 = arith.constant 0 : index
    %c0_47 = arith.constant 0 : index
    %46 = vector.load %arg2[%c6, %c0_46, %c0_47] : memref<9x4x128xbf16, #tpu.memory_space<vmem>>, vector<1x4x128xbf16>
    %47 = vector.shape_cast %46 : vector<1x4x128xbf16> to vector<4x128xbf16>
    %cst_48 = arith.constant dense<0.000000e+00> : vector<256x128xf32>
    %48 = tpu.matmul %45, %47, %cst_48 {dimension_numbers = #tpu.dot_dimension_numbers<[1], [0], [0], [1], [0, 0, 1, 1], [], []>} : vector<256x4xbf16>, vector<4x128xbf16>, vector<256x128xf32> -> vector<256x128xf32>
    %49 = arith.addf %42, %48 : vector<256x128xf32>
    %c0_49 = arith.constant 0 : index
    %c2_50 = arith.constant 2 : index
    %c1_51 = arith.constant 1 : index
    %c0_52 = arith.constant 0 : index
    %50 = vector.load %arg1[%c0_49, %c2_50, %c1_51, %c0_52] : memref<1x18x18x4xbf16, #tpu.memory_space<vmem>>, vector<1x16x16x4xbf16>
    %51 = vector.shape_cast %50 : vector<1x16x16x4xbf16> to vector<16x16x4xbf16>
    %52 = vector.shape_cast %51 : vector<16x16x4xbf16> to vector<256x4xbf16>
    %c7 = arith.constant 7 : index
    %c0_53 = arith.constant 0 : index
    %c0_54 = arith.constant 0 : index
    %53 = vector.load %arg2[%c7, %c0_53, %c0_54] : memref<9x4x128xbf16, #tpu.memory_space<vmem>>, vector<1x4x128xbf16>
    %54 = vector.shape_cast %53 : vector<1x4x128xbf16> to vector<4x128xbf16>
    %cst_55 = arith.constant dense<0.000000e+00> : vector<256x128xf32>
    %55 = tpu.matmul %52, %54, %cst_55 {dimension_numbers = #tpu.dot_dimension_numbers<[1], [0], [0], [1], [0, 0, 1, 1], [], []>} : vector<256x4xbf16>, vector<4x128xbf16>, vector<256x128xf32> -> vector<256x128xf32>
    %56 = arith.addf %49, %55 : vector<256x128xf32>
    %c0_56 = arith.constant 0 : index
    %c2_57 = arith.constant 2 : index
    %c2_58 = arith.constant 2 : index
    %c0_59 = arith.constant 0 : index
    %57 = vector.load %arg1[%c0_56, %c2_57, %c2_58, %c0_59] : memref<1x18x18x4xbf16, #tpu.memory_space<vmem>>, vector<1x16x16x4xbf16>
    %58 = vector.shape_cast %57 : vector<1x16x16x4xbf16> to vector<16x16x4xbf16>
    %59 = vector.shape_cast %58 : vector<16x16x4xbf16> to vector<256x4xbf16>
    %c8 = arith.constant 8 : index
    %c0_60 = arith.constant 0 : index
    %c0_61 = arith.constant 0 : index
    %60 = vector.load %arg2[%c8, %c0_60, %c0_61] : memref<9x4x128xbf16, #tpu.memory_space<vmem>>, vector<1x4x128xbf16>
    %61 = vector.shape_cast %60 : vector<1x4x128xbf16> to vector<4x128xbf16>
    %cst_62 = arith.constant dense<0.000000e+00> : vector<256x128xf32>
    %62 = tpu.matmul %59, %61, %cst_62 {dimension_numbers = #tpu.dot_dimension_numbers<[1], [0], [0], [1], [0, 0, 1, 1], [], []>} : vector<256x4xbf16>, vector<4x128xbf16>, vector<256x128xf32> -> vector<256x128xf32>
    %63 = arith.addf %56, %62 : vector<256x128xf32>
    %c0_63 = arith.constant 0 : index
    %c0_64 = arith.constant 0 : index
    %64 = vector.load %arg3[%c0_63, %c0_64] : memref<1x128xf32, #tpu.memory_space<vmem>>, vector<1x128xf32>
    %65 = vector.broadcast %64 : vector<1x128xf32> to vector<256x128xf32>
    %66 = arith.mulf %63, %65 : vector<256x128xf32>
    %c0_65 = arith.constant 0 : index
    %c0_66 = arith.constant 0 : index
    %67 = vector.load %arg4[%c0_65, %c0_66] : memref<1x128xf32, #tpu.memory_space<vmem>>, vector<1x128xf32>
    %68 = vector.broadcast %67 : vector<1x128xf32> to vector<256x128xf32>
    %69 = arith.addf %66, %68 : vector<256x128xf32>
    %cst_67 = arith.constant 0.000000e+00 : f32
    %70 = vector.broadcast %cst_67 : f32 to vector<256x128xf32>
    %71 = arith.maximumf %69, %70 : vector<256x128xf32>
    %72 = vector.shape_cast %71 : vector<256x128xf32> to vector<16x16x128xf32>
    %c0_68 = arith.constant 0 : index
    %c0_69 = arith.constant 0 : index
    %c0_70 = arith.constant 0 : index
    %c0_71 = arith.constant 0 : index
    %73 = vector.load %arg5[%c0_68, %c0_69, %c0_70, %c0_71] : memref<1x16x16x128xf32, #tpu.memory_space<vmem>>, vector<1x16x16x128xf32>
    %74 = vector.shape_cast %73 : vector<1x16x16x128xf32> to vector<16x16x128xf32>
    %75 = vector.shape_cast %72 : vector<16x16x128xf32> to vector<1x16x16x128xf32>
    tpu.vector_store %arg5[%c0_68, %c0_69, %c0_70, %c0_71], %75 {strides = array<i32>} : memref<1x16x16x128xf32, #tpu.memory_space<vmem>>, vector<1x16x16x128xf32>,
    return
  }
  func.func @transform_0(%arg0: i32) -> (i32, i32, i32, i32) {
    %c0_i32 = arith.constant 0 : i32
    %c0_i32_0 = arith.constant 0 : i32
    %c0_i32_1 = arith.constant 0 : i32
    %c0_i32_2 = arith.constant 0 : i32
    return %arg0, %c0_i32, %c0_i32_0, %c0_i32_1 : i32, i32, i32, i32
  }
  func.func @transform_1(%arg0: i32) -> (i32, i32, i32) {
    %c0_i32 = arith.constant 0 : i32
    %c0_i32_0 = arith.constant 0 : i32
    %c0_i32_1 = arith.constant 0 : i32
    %c0_i32_2 = arith.constant 0 : i32
    return %c0_i32, %c0_i32_0, %c0_i32_1 : i32, i32, i32
  }
  func.func @transform_2(%arg0: i32) -> (i32, i32) {
    %c0_i32 = arith.constant 0 : i32
    %c0_i32_0 = arith.constant 0 : i32
    %c0_i32_1 = arith.constant 0 : i32
    return %c0_i32, %c0_i32_0 : i32, i32
  }
  func.func @transform_3(%arg0: i32) -> (i32, i32) {
    %c0_i32 = arith.constant 0 : i32
    %c0_i32_0 = arith.constant 0 : i32
    %c0_i32_1 = arith.constant 0 : i32
    return %c0_i32, %c0_i32_0 : i32, i32
  }
  func.func @transform_4(%arg0: i32) -> (i32, i32, i32, i32) {
    %c0_i32 = arith.constant 0 : i32
    %c0_i32_0 = arith.constant 0 : i32
    %c0_i32_1 = arith.constant 0 : i32
    %c0_i32_2 = arith.constant 0 : i32
    return %arg0, %c0_i32, %c0_i32_0, %c0_i32_1 : i32, i32, i32, i32
  }
}

</mosaic_0001>

<bundles_post_ra>
// kernel: conv_3x3_forward.2
= control target key start
LH: loop header
LB: loop body
LE: loop exit
PB: predicated region body
PF: predicated region fallthrough
CT: control target
= control target key end

     0   :  { %v285_v0 = vmov 0   ;;  %v286_v12 = vmov 0.0|0.0   ;;  %v287_v22 = vmov 0.0   ;;  %vm288_vm0 = vmmov 0   ;;  %s371_s0 = inlined_call_operand.<no memory space> [shape: f32[1,1], index: 0, kind: input, shape index: {}]   ;;  %s372_s3 = inlined_call_operand.vmem [shape: f32[32,384], index: 3, kind: input, shape index: {}]   ;;  %s373_s1 = inlined_call_operand.vmem [shape: f32[1,32], index: 1, kind: input, shape index: {}]   ;;  %s374_s2 = inlined_call_operand.vmem [shape: f32[1,32], index: 2, kind: input, shape index: {}]   ;;  %s375_s4 = inlined_call_operand.vmem [shape: f32[1,384], index: 4, kind: input, shape index: {}]   ;;  %s376_s5 = inlined_call_operand.vmem [shape: f32[1,384], index: 5, kind: output, shape index: {}]  }
   0x1   :  { %284 = vset.pattern.permute.xlu0 %v285_v0  ;;  %v10_v1 = vstv %s371_s0  ;;  %v38_v2 = vld [vmem:[%s372_s3 + $0x8] sm:$0xff]  ;;  %v41_v3 = vld [vmem:[%s372_s3 + $0x20] sm:$0xff]  ;;  %v40_v6 = vld [vmem:[%s372_s3 + $0x18] sm:$0xff]  ;;  %273 = vmatprep.subr.bf16.mxu1 %v286_v12  ;;  %v29_v23 = vlaneseq  ;;  %vm66_vm1 = vcmask 261120   ;;  %v289_v35 = vmov 1966171168  }
   0x2   :  { %11 = vst [vmem:[#allocation2] sm:$0x1] %v10_v1  ;;  %v265_v4 = vpack.c.bf16 %v41_v3, %v38_v2  ;;  %v37_v5 = vld [vmem:[%s372_s3] sm:$0xff]  ;;  %v39_v7 = vld [vmem:[%s372_s3 + $0x10] sm:$0xff]  ;;  %v42_v10 = vld [vmem:[%s372_s3 + $0x28] sm:$0xff]  ;;  %134 = vmatprep.mubr.f32.mxu0 %v287_v22  ;;  %262 = vmatprep.mubr.msk.f32.mxu1 %vm288_vm0, %v287_v22  ;;  %v216_v36 = vunpack.c.l.s4 %v289_v35 }
   0x3   :  { %v267_v9 = vpack.c.bf16 %v40_v6, %v37_v5  ;;  %v274_v11 = vpack.c.bf16 %v42_v10, %v39_v7  ;;  %v44_v13 = vld [vmem:[%s372_s3 + $0x38] sm:$0xff]  ;;  %v47_v14 = vld [vmem:[%s372_s3 + $0x50] sm:$0xff]  ;;  %v46_v17 = vld [vmem:[%s372_s3 + $0x48] sm:$0xff]  ;;  %v30_v24 = vshrl.u32 %v29_v23, 7  ;;  %vm240_vm2 = vcmp.lt.s32.totalorder %v29_v23, 384 }
   0x4   :  { %266 = vmatprep.subr.bf16.mxu0 %v265_v4  ;;  %v269_v15 = vpack.c.bf16 %v47_v14, %v44_v13  ;;  %v43_v16 = vld [vmem:[%s372_s3 + $0x30] sm:$0xff]  ;;  %v45_v18 = vld [vmem:[%s372_s3 + $0x40] sm:$0xff]  ;;  %v48_v20 = vld [vmem:[%s372_s3 + $0x58] sm:$0xff]  ;;  %v217_v40 = vunpack.c.0.s8 %v216_v36 }
   0x5   :  { %268 = vmatpush1.bf16.msra.mxu0 %v267_v9  ;;  %275 = vmatpush3.bf16.msra.mxu1 %v274_v11  ;;  %v271_v19 = vpack.c.bf16 %v46_v17, %v43_v16  ;;  %v277_v21 = vpack.c.bf16 %v48_v20, %v45_v18  ;;  %v31_v25 = vsub.s32 0, %v30_v24  ;;  %v23_v26 = vld [vmem:[%s373_s1] sm:$0x1]  ;;  %v61_v34 = vsub.s32 2, %v30_v24 }
   0x6   :  { %276 = vmatprep.subr.bf16.mxu1 %v286_v12  ;;  %270 = vmatprep.subr.bf16.mxu0 %v269_v15  ;;  %v34_v29 = vld [vmem:[%s374_s2] sm:$0x1]  ;;  %v57_v37 = vsub.s32 1, %v30_v24  ;;  %v220_v48 = vsub.s32 %v217_v40, %v30_v24 }
   0x7   :  { %v49_v33 = vld [vmem:[%s375_s4] sm:$0x7] }
   0x8   :  { %v54_v38 = vrot.slane %v49_v33, %v31_v25  ;;  %v62_v39 = vrot.slane %v49_v33, %v61_v34  ;;  %v58_v41 = vrot.slane %v49_v33, %v57_v37 }
   0x9   :  { %v22_v8 = vld [vmem:[#allocation2] sm:$0x1]  ;;  %272 = vmatpush1.bf16.msra.mxu0 %v271_v19  ;;  %278 = vmatpush3.bf16.msra.mxu1 %v277_v21 }
   0xa   :  { %26 = vperm.xlu0 %284, %v22_v8  }
  0x89   :  { %v27_v27 = vpop.permute.xlu0 %26 }
  0x8a   :  { %v32_v28 = vrot.slane %v27_v27, %v31_v25 }
  0x8c   :  { %v33_v30 = vmul.f32 %v32_v28, %v23_v26 }
  0x8e   :  { %v35_v31 = vadd.f32 %v34_v29, %v33_v30 }
  0x90   :  { %v36_v32 = vmax.f32 %v35_v31, 0.0 }
  0x92   :  { %247 = vmatmul.mubr.msk.f32.vlgmr.msra.gmra.mrb[0].mxu0 %vm66_vm1, %v36_v32  ;;  %263 = vmatmul.mubr.msk.f32.vlgmr.msra.gmra.mrb[0].mxu1 %vm66_vm1, %v36_v32 }
 0x165   :  { %v136_v42 = vpop.f32.mrb[0].mxu0  ;;  %v207_v43 = vpop.f32.mrb[0].mxu1 }
 0x166   :  { %v137_v44 = vadd.f32 %v136_v42, %v54_v38  ;;  %v138_v45 = vpop.f32.mrb[1].mxu0  ;;  %v264_v46 = vpop.f32.mrb[1].mxu1  ;;  %v208_v47 = vadd.f32 %v207_v43, %v62_v39 }
 0x167   :  { %v139_v49 = vadd.f32 %v138_v45, %v58_v41 }
 0x168   :  { %v228_v51 = vrot.slane %v208_v47, %v220_v48 }
 0x169   :  { %v214_v50 = vcombine.low %v137_v44, %v139_v49 }
 0x16b   :  { %v221_v52 = vrot.slane %v214_v50, %v220_v48 }
 0x16d   :  { %v229_v53 = vcombine.low %v221_v52, %v228_v51 }
 0x16f   :  { %v236_v54 = vrot.slane %v229_v53, %v220_v48 }
 0x171   :  { %242 = vst.msk [vmem:[%s376_s5] sm:$0x7] %vm240_vm2, %v236_v54 }

// kernel: conv_3x3_forward.3
= control target key start
LH: loop header
LB: loop body
LE: loop exit
PB: predicated region body
PF: predicated region fallthrough
CT: control target
= control target key end

     0   :  { %s6378_s15 = smov 0   ;;  %s8222_s0 = inlined_call_operand.vmem [shape: bf16[2,18,18,4], index: 0, kind: input, shape index: {}]   ;;  %s8223_s1 = inlined_call_operand.vmem [shape: bf16[9,4,128], index: 1, kind: input, shape index: {}]   ;;  %s8224_s2 = inlined_call_operand.vmem [shape: f32[1,128], index: 2, kind: input, shape index: {}]   ;;  %s8225_s3 = inlined_call_operand.vmem [shape: f32[1,128], index: 3, kind: input, shape index: {}]   ;;  %s8226_s4 = inlined_call_operand.vmem [shape: f32[2,16,16,128], index: 4, kind: output, shape index: {}]  }
   0x1 LB: > { %s4955_s16 = sadd.s32 4294967295, %s6351_s15   ;;  %p4959_p0 = scmp.ge.s32.totalorder %s6351_s15, 1  ;;  %s6351_s15 = sphi %s6378_s15, %s14_s15  }
   0x2   : > { %p162_p1 = scmp.lt.s32.totalorder %s6351_s15, 3 }
   0x4   : > { %p163_p2 = pnand %p4959_p0, %p162_p1 }
   0x6   : > { %166 = sbr.rel (%p163_p2) target bundleno = 589 (0x24d), region = 36 }
   0xd   : > { %v4963_v0 = vld [vmem:[%s8223_s1 + $0x2] sm:$0x3]  ;;  %vm734_vm0 = vcmask 1041408   ;;  %v5190_v1 = vld [vmem:[%s8223_s1 + $0x8] sm:$0x3]  ;;  %p188_p3 = scmp.lt.s32.totalorder %s4955_s16, 1 }
   0xe   : > { %6221 = vmatprep.subr.msk.bf16.mxu1 %vm734_vm0, %v4963_v0  ;;  %6225 = vmatprep.subr.msk.bf16.mxu0 %vm734_vm0, %v5190_v1  ;;  %v736_v2 = vsel %vm734_vm0, %v4963_v0, 0  ;;  %v6396_v3 = vsel %vm734_vm0, %v5190_v1, 0  ;;  %v231_v4 = vld [vmem:[%s8223_s1] sm:$0x3]  ;;  %v5255_v5 = vld [vmem:[%s8223_s1 + $0xa] sm:$0x3] }
   0xf   : > { %8240 = vst [vmem:[#allocation2_spill] sm:$0xff] %v6396_v3  ;;  %5658 = vmatpush3.bf16.msra.mxu1 %v736_v2  ;;  %5794 = vmatpush3.bf16.msra.mxu0 %v6396_v3  ;;  %s8295_s16 = smov (!%p188_p3, %s4955_s16), 1  ;;  %vm248_vm1 = vsmask.f32 3328  ;;  %vm249_vm2 = vsmask.f32 7440 }
  0x10   : > { %6222 = vmatprep.subr.msk.bf16.mxu1 %vm734_vm0, %v231_v4  ;;  %6227 = vmatprep.subr.msk.bf16.mxu0 %vm734_vm0, %v5255_v5  ;;  %s6231_s25 = smul.u32 216, %s8295_s16  ;;  %vm685_vm3 = vcmask 31744   ;;  %v6426_v17 = vsel %vm734_vm0, %v231_v4, 0  ;;  %v6432_v26 = vld [vmem:[%s8223_s1 + $0xc] sm:$0x3]  ;;  %vm6439_vm4 = vmor %vm248_vm1, %vm249_vm2  ;;  %v6445_v37 = vsel %vm734_vm0, %v5255_v5, 0 }
  0x11   : > { %v6449_v41 = vsel %vm734_vm0, %v6432_v26, 0  ;;  %vm1239_vm5 = vcmask 1042432   ;;  %vm1240_vm6 = vcmask 1046532   ;;  %s5503_s23 = sshll.u32 %s8295_s16, 8 }
  0x12   : > { %s6413_s28 = scalar_lea.vmem %s8222_s0, %s6231_s25  ;;  %vm6665_vm7 = vmor %vm1239_vm5, %vm1240_vm6  ;;  %s8119_s26 = scalar_lea.vmem %s8226_s4, %s5503_s23 }
  0x13   : > { %v199_v6 = vld [vmem:[%s6413_s28] sm:$0xf]  ;;  %v200_v7 = vld [vmem:[%s6413_s28 + $0x4] sm:$0xf]  ;;  %v232_v8 = vld [vmem:[%s6413_s28 + $0x8] sm:$0x1] }
  0x14   : > { %v252_v9 = vshrl.u32 %v199_v6, 16  ;;  %v255_v10 = vshll.u32 %v199_v6, 16  ;;  %v261_v11 = vshll.u32 %v200_v7, 16  ;;  %v265_v12 = vshrl.u32 %v200_v7, 16  ;;  %v5142_v13 = vld [vmem:[%s6413_s28 + $0xc] sm:$0xf] }
  0x15   : > { %v271_v14 = vshll.u32 %v232_v8, 16  ;;  %v6420_v15 = vld [vmem:[%s6413_s28 + $0x10] sm:$0xf]  ;;  %v6423_v16 = vld [vmem:[%s6413_s28 + $0x14] sm:$0x1]  ;;  %v2056_v23 = vshrl.u32 %v5142_v13, 16 }
  0x16   : > { %v254_v18 = vrot.slane %v252_v9, 4  ;;  %v257_v19 = vrot.slane %v255_v10, 5  ;;  %v263_v20 = vrot.slane %v261_v11, 5  ;;  %v267_v21 = vrot.slane %v265_v12, 4  ;;  %v201_v31 = vld [vmem:[%s6413_s28 + $0xc] sm:$0xf] }
  0x17   : > { %v273_v22 = vrot.slane %v271_v14, 5  ;;  %v2059_v24 = vshll.u32 %v5142_v13, 16  ;;  %v2065_v25 = vshll.u32 %v6420_v15, 16  ;;  %v2069_v29 = vshrl.u32 %v6420_v15, 16  ;;  %v202_v36 = vld [vmem:[%s6413_s28 + $0x10] sm:$0xf] }
  0x18   : > { %v258_v27 = vor.u32 %v257_v19, %v254_v18  ;;  %v268_v28 = vor.u32 %v267_v21, %v263_v20  ;;  %v2075_v30 = vshll.u32 %v6423_v16, 16  ;;  %v2058_v33 = vrot.slane %v2056_v23, 4  ;;  %v233_v44 = vld [vmem:[%s6413_s28 + $0x14] sm:$0x1]  ;;  %v5145_v55 = vld [vmem:[%s6413_s28 + $0x18] sm:$0xf] }
  0x19   : > { %v2061_v34 = vrot.slane %v2059_v24, 5  ;;  %v2067_v35 = vrot.slane %v2065_v25, 5  ;;  %v2071_v40 = vrot.slane %v2069_v29, 4  ;;  %v276_v45 = vshrl.u32 %v201_v31, 16  ;;  %v6458_v60 = vld [vmem:[%s6413_s28 + $0x1c] sm:$0xf] }
  0x1a   : > { %v259_v38 = vrot.slane %v258_v27, 4  ;;  %v269_v39 = vrot.slane %v268_v28, 4  ;;  %v2077_v43 = vrot.slane %v2075_v30, 5  ;;  %v279_v46 = vshll.u32 %v201_v31, 16  ;;  %v6466_v1 = vld [vmem:[%s6413_s28 + $0x20] sm:$0x1] }
  0x1b   : > { %v2062_v42 = vor.u32 %v2061_v34, %v2058_v33  ;;  %v2072_v49 = vor.u32 %v2071_v40, %v2067_v35  ;;  %v285_v50 = vshll.u32 %v202_v36, 16  ;;  %v278_v53 = vrot.slane %v276_v45, 4  ;;  %v203_v18 = vld [vmem:[%s6413_s28 + $0x18] sm:$0xf]  ;;  %v204_v23 = vld [vmem:[%s6413_s28 + $0x1c] sm:$0xf] }
  0x1c   : > { %v264_v47 = vsel %vm6439_vm4, %v259_v38, %v263_v20  ;;  %v274_v48 = vsel %vm6439_vm4, %v269_v39, %v273_v22  ;;  %v281_v54 = vrot.slane %v279_v46, 5  ;;  %v289_v58 = vshrl.u32 %v202_v36, 16  ;;  %v234_v31 = vld [vmem:[%s6413_s28 + $0x20] sm:$0x1]  ;;  %v5148_v40 = vld [vmem:[%s6413_s28 + $0x24] sm:$0xf] }
  0x1d   : > { %v4964_v51 = vcombine.low %v264_v47, %v274_v48  ;;  %v2063_v52 = vrot.slane %v2062_v42, 4  ;;  %v2073_v56 = vrot.slane %v2072_v49, 4  ;;  %v287_v57 = vrot.slane %v285_v50, 5  ;;  %v6489_v46 = vld [vmem:[%s6413_s28 + $0x28] sm:$0xf] }
  0x1e   : > { %v295_v59 = vshll.u32 %v233_v44, 16  ;;  %v2799_v62 = vrot.slane %v6420_v15, 5  ;;  %v2802_v63 = vrot.slane %v6423_v16, 5  ;;  %v282_v0 = vor.u32 %v281_v54, %v278_v53  ;;  %v6498_v54 = vld [vmem:[%s6413_s28 + $0x2c] sm:$0x1] }
  0x1f   : > { %5659 = vmatprep.mubr.msk.bf16.mxu1 %vm685_vm3, %v4964_v51  ;;  %v2068_v61 = vsel %vm6439_vm4, %v2063_v52, %v2067_v35  ;;  %v2078_v2 = vsel %vm6439_vm4, %v2073_v56, %v2077_v43  ;;  %v291_v4 = vrot.slane %v289_v58, 4  ;;  %v2080_v6 = vshrl.u32 %v5145_v55, 16  ;;  %v5044_v51 = vld [vmem:[%s8223_s1 + $0x4] sm:$0x3]  ;;  %v6698_v16 = vld [vmem:[%s6413_s28 + $0x7c] sm:$0xf] }
  0x20   : > { %v297_v5 = vrot.slane %v295_v59, 5  ;;  %v5191_v7 = vcombine.low %v2068_v61, %v2078_v2  ;;  %v283_v8 = vrot.slane %v282_v0, 4  ;;  %v2083_v9 = vshll.u32 %v5145_v55, 16  ;;  %v205_v0 = vld [vmem:[%s6413_s28 + $0x24] sm:$0xf] }
  0x21   : > { %v2089_v10 = vshll.u32 %v6458_v60, 16  ;;  %v292_v11 = vor.u32 %v291_v4, %v287_v57  ;;  %v2082_v12 = vrot.slane %v2080_v6, 4  ;;  %v2093_v13 = vshrl.u32 %v6458_v60, 16 }
  0x22   : > { %v2099_v14 = vshll.u32 %v6466_v1, 16  ;;  %5795 = vmatprep.mubr.msk.bf16.mxu0 %vm685_vm3, %v5191_v7  ;;  %v288_v19 = vsel %vm6439_vm4, %v283_v8, %v287_v57  ;;  %v2085_v20 = vrot.slane %v2083_v9, 5  ;;  %v2806_v22 = vrot.slane %v6458_v60, 5  ;;  %v206_v7 = vld [vmem:[%s6413_s28 + $0x28] sm:$0xf] }
  0x23   : > { %v2091_v21 = vrot.slane %v2089_v10, 5  ;;  %v293_v24 = vrot.slane %v292_v11, 4  ;;  %v2095_v25 = vrot.slane %v2093_v13, 4  ;;  %v2809_v28 = vrot.slane %v6466_v1, 5  ;;  %v235_v13 = vld [vmem:[%s6413_s28 + $0x2c] sm:$0x1] }
  0x24   : > { %v2101_v27 = vrot.slane %v2099_v14, 5  ;;  %v2086_v29 = vor.u32 %v2085_v20, %v2082_v12  ;;  %v6482_v30 = vrot.slane %v2806_v22, 4  ;;  %v300_v33 = vshrl.u32 %v203_v18, 16 }
  0x25   : > { %v303_v34 = vshll.u32 %v203_v18, 16  ;;  %v298_v35 = vsel %vm6439_vm4, %v293_v24, %v297_v5  ;;  %v2096_v36 = vor.u32 %v2095_v25, %v2091_v21  ;;  %v309_v38 = vshll.u32 %v204_v23, 16  ;;  %v5151_v24 = vld [vmem:[%s6413_s28 + $0x30] sm:$0xf] }
  0x26   : > { %v313_v39 = vshrl.u32 %v204_v23, 16  ;;  %v4965_v42 = vcombine.low %v288_v19, %v298_v35  ;;  %v2087_v43 = vrot.slane %v2086_v29, 4  ;;  %v302_v44 = vrot.slane %v300_v33, 4  ;;  %v6518_v33 = vld [vmem:[%s6413_s28 + $0x34] sm:$0xf] }
  0x27   : > { %v305_v45 = vrot.slane %v303_v34, 5  ;;  %v2097_v47 = vrot.slane %v2096_v36, 4  ;;  %v311_v48 = vrot.slane %v309_v38, 5  ;;  %v319_v50 = vshll.u32 %v234_v31, 16 }
  0x28   : > { %v315_v49 = vrot.slane %v313_v39, 4  ;;  %5660 = vmatmul.mubr.msk.bf16.vlgmr.msra.gmra.mrb[0].mxu1 %vm685_vm3, %v4965_v42  ;;  %v2092_v52 = vsel %vm6439_vm4, %v2087_v43, %v2091_v21  ;;  %v2104_v55 = vshrl.u32 %v5148_v40, 16  ;;  %v2107_v56 = vshll.u32 %v5148_v40, 16  ;;  %v6526_v40 = vld [vmem:[%s6413_s28 + $0x38] sm:$0x1] }
  0x29   : > { %v306_v53 = vor.u32 %v305_v45, %v302_v44  ;;  %5692 = vmatpush3.bf16.msra.mxu1 %v6426_v17  ;;  %v2102_v57 = vsel %vm6439_vm4, %v2097_v47, %v2101_v27  ;;  %v321_v59 = vrot.slane %v319_v50, 5  ;;  %v2113_v61 = vshll.u32 %v6489_v46, 16 }
  0x2a   : > { %v316_v58 = vor.u32 %v315_v49, %v311_v48  ;;  %v5192_v2 = vcombine.low %v2092_v52, %v2102_v57  ;;  %v2106_v5 = vrot.slane %v2104_v55, 4  ;;  %v2109_v6 = vrot.slane %v2107_v56, 5  ;;  %6223 = vmatprep.subr.msk.bf16.mxu1 %vm734_vm0, %v5044_v51  ;;  %v207_v52 = vld [vmem:[%s6413_s28 + $0x30] sm:$0xf] }
  0x2b   : > { %v307_v4 = vrot.slane %v306_v53, 4  ;;  %v2115_v9 = vrot.slane %v2113_v61, 5  ;;  %v2117_v17 = vshrl.u32 %v6489_v46, 16  ;;  %v2123_v10 = vshll.u32 %v6498_v54, 16 }
  0x2c   : > { %v317_v8 = vrot.slane %v316_v58, 4  ;;  %5796 = vmatmul.mubr.msk.bf16.vlgmr.msra.gmra.mrb[0].mxu0 %vm685_vm3, %v5192_v2  ;;  %v2110_v12 = vor.u32 %v2109_v6, %v2106_v5  ;;  %v324_v14 = vshrl.u32 %v205_v0, 16  ;;  %v327_v18 = vshll.u32 %v205_v0, 16  ;;  %v208_v58 = vld [vmem:[%s6413_s28 + $0x34] sm:$0xf] }
  0x2d   : > { %v312_v11 = vsel %vm6439_vm4, %v307_v4, %v311_v48  ;;  %5828 = vmatpush3.bf16.msra.mxu0 %v6445_v37  ;;  %v2119_v20 = vrot.slane %v2117_v17, 4  ;;  %v2125_v21 = vrot.slane %v2123_v10, 5  ;;  %v333_v23 = vshll.u32 %v206_v7, 16  ;;  %v236_v4 = vld [vmem:[%s6413_s28 + $0x38] sm:$0x1] }
  0x2e   : > { %v322_v19 = vsel %vm6439_vm4, %v317_v8, %v321_v59  ;;  %v2111_v27 = vrot.slane %v2110_v12, 4  ;;  %v326_v29 = vrot.slane %v324_v14, 4  ;;  %v329_v31 = vrot.slane %v327_v18, 5  ;;  %6228 = vmatprep.subr.msk.bf16.mxu0 %vm734_vm0, %v6432_v26  ;;  %v5154_v12 = vld [vmem:[%s6413_s28 + $0x3c] sm:$0xf] }
  0x2f   : > { %v4966_v25 = vcombine.low %v312_v11, %v322_v19  ;;  %v2120_v34 = vor.u32 %v2119_v20, %v2115_v9  ;;  %v335_v35 = vrot.slane %v333_v23, 5  ;;  %v337_v37 = vshrl.u32 %v206_v7, 16  ;;  %v6543_v20 = vld [vmem:[%s6413_s28 + $0x40] sm:$0xf] }
  0x30   : > { %v343_v36 = vshll.u32 %v235_v13, 16  ;;  %v2116_v38 = vsel %vm6439_vm4, %v2111_v27, %v2115_v9  ;;  %v330_v39 = vor.u32 %v329_v31, %v326_v29  ;;  %v2128_v42 = vshrl.u32 %v5151_v24, 16 }
  0x31   : > { %5663 = vmatprep.mubr.msk.bf16.mxu1 %vm685_vm3, %v4966_v25  ;;  %v2131_v43 = vshll.u32 %v5151_v24, 16  ;;  %v2121_v44 = vrot.slane %v2120_v34, 4  ;;  %v339_v45 = vrot.slane %v337_v37, 4  ;;  %v2137_v26 = vshll.u32 %v6518_v33, 16  ;;  %v6548_v34 = vld [vmem:[%s6413_s28 + $0x44] sm:$0x1] }
  0x32   : > { %v345_v47 = vrot.slane %v343_v36, 5  ;;  %v331_v48 = vrot.slane %v330_v39, 4  ;;  %v2130_v49 = vrot.slane %v2128_v42, 4  ;;  %v2141_v51 = vshrl.u32 %v6518_v33, 16  ;;  %v209_v42 = vld [vmem:[%s6413_s28 + $0x3c] sm:$0xf] }
  0x33   : > { %v2133_v50 = vrot.slane %v2131_v43, 5  ;;  %v2126_v53 = vsel %vm6439_vm4, %v2121_v44, %v2125_v21  ;;  %v340_v55 = vor.u32 %v339_v45, %v335_v35  ;;  %v2139_v56 = vrot.slane %v2137_v26, 5  ;;  %v210_v26 = vld [vmem:[%s6413_s28 + $0x40] sm:$0xf] }
  0x34   : > { %v2147_v57 = vshll.u32 %v6526_v40, 16  ;;  %v5193_v59 = vcombine.low %v2116_v38, %v2126_v53  ;;  %v336_v61 = vsel %vm6439_vm4, %v331_v48, %v335_v35  ;;  %v2143_v2 = vrot.slane %v2141_v51, 4 }
  0x35   : > { %v2134_v0 = vor.u32 %v2133_v50, %v2130_v49  ;;  %v341_v5 = vrot.slane %v340_v55, 4  ;;  %v348_v7 = vshrl.u32 %v207_v52, 16  ;;  %v351_v8 = vshll.u32 %v207_v52, 16 }
  0x36   : > { %v2149_v6 = vrot.slane %v2147_v57, 5  ;;  %5799 = vmatprep.mubr.msk.bf16.mxu0 %vm685_vm3, %v5193_v59  ;;  %v2144_v17 = vor.u32 %v2143_v2, %v2139_v56  ;;  %v357_v10 = vshll.u32 %v208_v58, 16  ;;  %v361_v11 = vshrl.u32 %v208_v58, 16  ;;  %v5157_v2 = vld [vmem:[%s6413_s28 + $0x48] sm:$0xf] }
  0x37   : > { %v2135_v9 = vrot.slane %v2134_v0, 4  ;;  %v346_v13 = vsel %vm6439_vm4, %v341_v5, %v345_v47  ;;  %v350_v14 = vrot.slane %v348_v7, 4  ;;  %v353_v18 = vrot.slane %v351_v8, 5  ;;  %v6566_v8 = vld [vmem:[%s6413_s28 + $0x4c] sm:$0xf] }
  0x38   : > { %v367_v19 = vshll.u32 %v236_v4, 16  ;;  %v4967_v21 = vcombine.low %v336_v61, %v346_v13  ;;  %v2145_v24 = vrot.slane %v2144_v17, 4  ;;  %v359_v25 = vrot.slane %v357_v10, 5  ;;  %v237_v61 = vld [vmem:[%s6413_s28 + $0x44] sm:$0x1] }
  0x39   : > { %v2140_v23 = vsel %vm6439_vm4, %v2135_v9, %v2139_v56  ;;  %v354_v27 = vor.u32 %v353_v18, %v350_v14  ;;  %v363_v29 = vrot.slane %v361_v11, 4  ;;  %v2152_v35 = vshrl.u32 %v5154_v12, 16 }
  0x3a   : > { %v369_v31 = vrot.slane %v367_v19, 5  ;;  %5664 = vmatmul.mubr.msk.bf16.gmra.mrb[4].mxu1 %vm685_vm3, %v4967_v21  ;;  %v2150_v37 = vsel %vm6439_vm4, %v2145_v24, %v2149_v6  ;;  %v2155_v36 = vshll.u32 %v5154_v12, 16  ;;  %v2161_v38 = vshll.u32 %v6543_v20, 16 }
  0x3b   : > { %v2165_v39 = vshrl.u32 %v6543_v20, 16  ;;  %v5194_v43 = vcombine.low %v2140_v23, %v2150_v37  ;;  %v355_v44 = vrot.slane %v354_v27, 4  ;;  %v364_v45 = vor.u32 %v363_v29, %v359_v25  ;;  %v6574_v23 = vld [vmem:[%s6413_s28 + $0x50] sm:$0x1]  ;;  %v6578_v27 = vld [vmem:[%s6413_s28 + $0x48] sm:$0xf] }
  0x3c   : > { %v2154_v47 = vrot.slane %v2152_v35, 4  ;;  %v2157_v48 = vrot.slane %v2155_v36, 5  ;;  %v2163_v49 = vrot.slane %v2161_v38, 5  ;;  %v2171_v51 = vshll.u32 %v6548_v34, 16  ;;  %v6581_v36 = vld [vmem:[%s6413_s28 + $0x4c] sm:$0xf] }
  0x3d   : > { %v2167_v50 = vrot.slane %v2165_v39, 4  ;;  %5800 = vmatmul.mubr.msk.bf16.gmra.mrb[4].mxu0 %vm685_vm3, %v5194_v43  ;;  %v360_v52 = vsel %vm6439_vm4, %v355_v44, %v359_v25  ;;  %v365_v53 = vrot.slane %v364_v45, 4  ;;  %v372_v55 = vshrl.u32 %v209_v42, 16 }
  0x3e   : > { %v375_v56 = vshll.u32 %v209_v42, 16  ;;  %v2158_v57 = vor.u32 %v2157_v48, %v2154_v47  ;;  %v2173_v59 = vrot.slane %v2171_v51, 5  ;;  %v381_v0 = vshll.u32 %v210_v26, 16 }
  0x3f   : > { %v2168_v58 = vor.u32 %v2167_v50, %v2163_v49  ;;  %v370_v4 = vsel %vm6439_vm4, %v365_v53, %v369_v31  ;;  %v374_v5 = vrot.slane %v372_v55, 4  ;;  %v385_v7 = vshrl.u32 %v210_v26, 16  ;;  %v238_v26 = vld [vmem:[%s6413_s28 + $0x50] sm:$0x1]  ;;  %v5160_v53 = vld [vmem:[%s6413_s28 + $0x54] sm:$0xf] }
  0x40   : > { %v377_v6 = vrot.slane %v375_v56, 5  ;;  %v4968_v9 = vcombine.low %v360_v52, %v370_v4  ;;  %v2159_v17 = vrot.slane %v2158_v57, 4  ;;  %v383_v11 = vrot.slane %v381_v0, 5  ;;  %v6597_v4 = vld [vmem:[%s6413_s28 + $0x58] sm:$0xf] }
  0x41   : > { %v2169_v10 = vrot.slane %v2168_v58, 4  ;;  %v387_v13 = vrot.slane %v385_v7, 4  ;;  %v391_v14 = vshll.u32 %v237_v61, 16  ;;  %v2176_v18 = vshrl.u32 %v5157_v2, 16 }
  0x42   : > { %v378_v12 = vor.u32 %v377_v6, %v374_v5  ;;  %5667 = vmatprep.mubr.msk.bf16.mxu1 %vm685_vm3, %v4968_v9  ;;  %v2164_v19 = vsel %vm6439_vm4, %v2159_v17, %v2163_v49  ;;  %v2179_v24 = vshll.u32 %v5157_v2, 16  ;;  %v2185_v25 = vshll.u32 %v6566_v8, 16 }
  0x43   : > { %v2174_v21 = vsel %vm6439_vm4, %v2169_v10, %v2173_v59  ;;  %v388_v35 = vor.u32 %v387_v13, %v383_v11  ;;  %v393_v37 = vrot.slane %v391_v14, 5  ;;  %v2178_v38 = vrot.slane %v2176_v18, 4 }
  0x44   : > { %v5195_v29 = vcombine.low %v2164_v19, %v2174_v21  ;;  %v379_v31 = vrot.slane %v378_v12, 4  ;;  %v2181_v39 = vrot.slane %v2179_v24, 5  ;;  %v2187_v42 = vrot.slane %v2185_v25, 5  ;;  %v6603_v12 = vld [vmem:[%s6413_s28 + $0x5c] sm:$0x1] }
  0x45   : > { %v2189_v43 = vshrl.u32 %v6566_v8, 16  ;;  %v389_v45 = vrot.slane %v388_v35, 4  ;;  %v2195_v47 = vshll.u32 %v6574_v23, 16  ;;  %v396_v48 = vshrl.u32 %v6578_v27, 16  ;;  %v6607_v24 = vld [vmem:[%s6413_s28 + $0x54] sm:$0xf] }
  0x46   : > { %5803 = vmatprep.mubr.msk.bf16.mxu0 %vm685_vm3, %v5195_v29  ;;  %v384_v44 = vsel %vm6439_vm4, %v379_v31, %v383_v11  ;;  %v2182_v49 = vor.u32 %v2181_v39, %v2178_v38  ;;  %v399_v51 = vshll.u32 %v6578_v27, 16  ;;  %v405_v52 = vshll.u32 %v6581_v36, 16 }
  0x47   : > { %v2191_v50 = vrot.slane %v2189_v43, 4  ;;  %v394_v55 = vsel %vm6439_vm4, %v389_v45, %v393_v37  ;;  %v2197_v56 = vrot.slane %v2195_v47, 5  ;;  %v398_v57 = vrot.slane %v396_v48, 4  ;;  %v6613_v37 = vld [vmem:[%s6413_s28 + $0x58] sm:$0xf] }
  0x48   : > { %v409_v58 = vshrl.u32 %v6581_v36, 16  ;;  %v4969_v59 = vcombine.low %v384_v44, %v394_v55  ;;  %v2183_v61 = vrot.slane %v2182_v49, 4  ;;  %v401_v2 = vrot.slane %v399_v51, 5 }
  0x49   : > { %v2192_v0 = vor.u32 %v2191_v50, %v2187_v42  ;;  %v407_v5 = vrot.slane %v405_v52, 5  ;;  %v415_v7 = vshll.u32 %v238_v26, 16  ;;  %v2200_v9 = vshrl.u32 %v5160_v53, 16  ;;  %v239_v26 = vld [vmem:[%s6413_s28 + $0x5c] sm:$0x1] }
  0x4a   : > { %v411_v6 = vrot.slane %v409_v58, 4  ;;  %5668 = vmatmul.mubr.msk.bf16.gmra.mrb[8].mxu1 %vm685_vm3, %v4969_v59  ;;  %v2188_v17 = vsel %vm6439_vm4, %v2183_v61, %v2187_v42  ;;  %v402_v11 = vor.u32 %v401_v2, %v398_v57  ;;  %v2203_v13 = vshll.u32 %v5160_v53, 16  ;;  %v5163_v53 = vld [vmem:[%s6413_s28 + $0x60] sm:$0xf]  ;;  %v6627_v59 = vld [vmem:[%s6413_s28 + $0x64] sm:$0xf] }
  0x4b   : > { %v2193_v10 = vrot.slane %v2192_v0, 4  ;;  %v417_v18 = vrot.slane %v415_v7, 5  ;;  %v2202_v19 = vrot.slane %v2200_v9, 4  ;;  %v2209_v21 = vshll.u32 %v6597_v4, 16  ;;  %v6634_v9 = vld [vmem:[%s6413_s28 + $0x68] sm:$0x1] }
  0x4c   : > { %v412_v14 = vor.u32 %v411_v6, %v407_v5  ;;  %v403_v29 = vrot.slane %v402_v11, 4  ;;  %v2205_v31 = vrot.slane %v2203_v13, 5  ;;  %v2213_v35 = vshrl.u32 %v6597_v4, 16 }
  0x4d   : > { %v2198_v25 = vsel %vm6439_vm4, %v2193_v10, %v2197_v56  ;;  %v2211_v42 = vrot.slane %v2209_v21, 5  ;;  %v2219_v43 = vshll.u32 %v6603_v12, 16  ;;  %v420_v48 = vshrl.u32 %v6607_v24, 16 }
  0x4e   : > { %v5196_v38 = vcombine.low %v2188_v17, %v2198_v25  ;;  %v413_v39 = vrot.slane %v412_v14, 4  ;;  %v408_v44 = vsel %vm6439_vm4, %v403_v29, %v407_v5  ;;  %v2206_v45 = vor.u32 %v2205_v31, %v2202_v19  ;;  %v6638_v19 = vld [vmem:[%s6413_s28 + $0x60] sm:$0xf] }
  0x4f   : > { %v2215_v47 = vrot.slane %v2213_v35, 4  ;;  %v2221_v50 = vrot.slane %v2219_v43, 5  ;;  %v423_v51 = vshll.u32 %v6607_v24, 16  ;;  %v429_v52 = vshll.u32 %v6613_v37, 16  ;;  %v6644_v35 = vld [vmem:[%s6413_s28 + $0x64] sm:$0xf] }
  0x50   : > { %5804 = vmatmul.mubr.msk.bf16.gmra.mrb[8].mxu0 %vm685_vm3, %v5196_v38  ;;  %v418_v49 = vsel %vm6439_vm4, %v413_v39, %v417_v18  ;;  %v2207_v56 = vrot.slane %v2206_v45, 4  ;;  %v422_v58 = vrot.slane %v420_v48, 4  ;;  %v433_v2 = vshrl.u32 %v6613_v37, 16 }
  0x51   : > { %v4970_v55 = vcombine.low %v408_v44, %v418_v49  ;;  %v2216_v57 = vor.u32 %v2215_v47, %v2211_v42  ;;  %v425_v61 = vrot.slane %v423_v51, 5  ;;  %v431_v0 = vrot.slane %v429_v52, 5 }
  0x52   : > { %v439_v5 = vshll.u32 %v239_v26, 16  ;;  %v2212_v6 = vsel %vm6439_vm4, %v2207_v56, %v2211_v42  ;;  %v2224_v17 = vshrl.u32 %v5163_v53, 16  ;;  %v2227_v10 = vshll.u32 %v5163_v53, 16 }
  0x53   : > { %5671 = vmatprep.mubr.msk.bf16.mxu1 %vm685_vm3, %v4970_v55  ;;  %v2217_v7 = vrot.slane %v2216_v57, 4  ;;  %v426_v11 = vor.u32 %v425_v61, %v422_v58  ;;  %v435_v13 = vrot.slane %v433_v2, 4  ;;  %v2233_v18 = vshll.u32 %v6627_v59, 16  ;;  %v5223_v58 = vld [vmem:[%s6413_s28 + $0xc] sm:$0xe] }
  0x54   : > { %v441_v14 = vrot.slane %v439_v5, 5  ;;  %v2226_v25 = vrot.slane %v2224_v17, 4  ;;  %v2229_v29 = vrot.slane %v2227_v10, 5  ;;  %v2237_v31 = vshrl.u32 %v6627_v59, 16 }
  0x55   : > { %v2222_v21 = vsel %vm6439_vm4, %v2217_v7, %v2221_v50  ;;  %v427_v39 = vrot.slane %v426_v11, 4  ;;  %v436_v42 = vor.u32 %v435_v13, %v431_v0  ;;  %v2235_v43 = vrot.slane %v2233_v18, 5  ;;  %v240_v50 = vld [vmem:[%s6413_s28 + $0x68] sm:$0x1] }
  0x56   : > { %v5197_v38 = vcombine.low %v2212_v6, %v2222_v21  ;;  %v2230_v44 = vor.u32 %v2229_v29, %v2226_v25  ;;  %v2239_v45 = vrot.slane %v2237_v31, 4  ;;  %v2243_v47 = vshll.u32 %v6634_v9, 16  ;;  %v6672_v29 = vld [vmem:[%s6413_s28 + $0x70] sm:$0xf] }
  0x57   : > { %v444_v26 = vshrl.u32 %v6638_v19, 16  ;;  %v432_v48 = vsel %vm6439_vm4, %v427_v39, %v431_v0  ;;  %v437_v49 = vrot.slane %v436_v42, 4  ;;  %v447_v51 = vshll.u32 %v6638_v19, 16  ;;  %v6659_v0 = vld [vmem:[%s6413_s28 + $0x6c] sm:$0xf] }
  0x58   : > { %5807 = vmatprep.mubr.msk.bf16.mxu0 %vm685_vm3, %v5197_v38  ;;  %v453_v52 = vshll.u32 %v6644_v35, 16  ;;  %v2231_v53 = vrot.slane %v2230_v44, 4  ;;  %v2240_v55 = vor.u32 %v2239_v45, %v2235_v43  ;;  %v2245_v56 = vrot.slane %v2243_v47, 5 }
  0x59   : > { %v446_v57 = vrot.slane %v444_v26, 4  ;;  %v442_v61 = vsel %vm6439_vm4, %v437_v49, %v441_v14  ;;  %v449_v2 = vrot.slane %v447_v51, 5  ;;  %v457_v6 = vshrl.u32 %v6644_v35, 16  ;;  %v241_v26 = vld [vmem:[%s6413_s28 + $0x74] sm:$0x1] }
  0x5a   : > { %v455_v5 = vrot.slane %v453_v52, 5  ;;  %v4971_v7 = vcombine.low %v432_v48, %v442_v61  ;;  %v2236_v17 = vsel %vm6439_vm4, %v2231_v53, %v2235_v43  ;;  %v2241_v10 = vrot.slane %v2240_v55, 4  ;;  %v5224_v48 = vld [vmem:[%s6413_s28 + $0x18] sm:$0xe] }
  0x5b   : > { %v463_v11 = vshll.u32 %v240_v50, 16  ;;  %v450_v14 = vor.u32 %v449_v2, %v446_v57  ;;  %v459_v18 = vrot.slane %v457_v6, 4  ;;  %v5239_v21 = vrot.slane %v5223_v58, 9  ;;  %v6691_v53 = vld [vmem:[%s6413_s28 + $0x78] sm:$0xf] }
  0x5c   : > { %v2801_v25 = vrot.slane %v2799_v62, 4  ;;  %5672 = vmatmul.mubr.msk.bf16.gmra.mrb[12].mxu1 %vm685_vm3, %v4971_v7  ;;  %v2246_v31 = vsel %vm6439_vm4, %v2241_v10, %v2245_v56  ;;  %v468_v39 = vshrl.u32 %v6659_v0, 16  ;;  %v471_v42 = vshll.u32 %v6659_v0, 16  ;;  %v242_v57 = vld [vmem:[%s6413_s28 + $0x80] sm:$0x1] }
  0x5d   : > { %v465_v38 = vrot.slane %v463_v11, 5  ;;  %v5198_v43 = vcombine.low %v2236_v17, %v2246_v31  ;;  %v451_v44 = vrot.slane %v450_v14, 4  ;;  %v460_v45 = vor.u32 %v459_v18, %v455_v5  ;;  %v5225_v10 = vld [vmem:[%s6413_s28 + $0x24] sm:$0xe] }
  0x5e   : > { %v2800_v47 = vsel %vm6665_vm7, %v5239_v21, %v2799_v62  ;;  %v2803_v49 = vsel %vm6665_vm7, %v2801_v25, %v2802_v63  ;;  %v470_v50 = vrot.slane %v468_v39, 4  ;;  %v473_v51 = vrot.slane %v471_v42, 5  ;;  %v6717_v39 = vld [vmem:[%s6413_s28 + $0x84] sm:$0xf] }
  0x5f   : > { %v477_v52 = vshll.u32 %v6672_v29, 16  ;;  %5808 = vmatmul.mubr.msk.bf16.gmra.mrb[12].mxu0 %vm685_vm3, %v5198_v43  ;;  %v456_v15 = vsel %vm6439_vm4, %v451_v44, %v455_v5  ;;  %v461_v62 = vrot.slane %v460_v45, 4  ;;  %v5256_v55 = vcombine.low %v2800_v47, %v2803_v49  ;;  %v6725_v43 = vld [vmem:[%s6413_s28 + $0x88] sm:$0xf] }
  0x60   : > { %v481_v56 = vshrl.u32 %v6672_v29, 16  ;;  %v474_v63 = vor.u32 %v473_v51, %v470_v50  ;;  %v487_v61 = vshll.u32 %v241_v26, 16  ;;  %v5240_v2 = vrot.slane %v5224_v48, 9 }
  0x61   : > { %v479_v58 = vrot.slane %v477_v52, 5  ;;  %v466_v6 = vsel %vm6439_vm4, %v461_v62, %v465_v38  ;;  %5829 = vmatprep.mubr.msk.bf16.mxu0 %vm685_vm3, %v5256_v55  ;;  %v2810_v5 = vsel %vm6665_vm7, %v6482_v30, %v2809_v28  ;;  %v492_v17 = vshrl.u32 %v6691_v53, 16  ;;  %v243_v52 = vld [vmem:[%s6413_s28 + $0x8c] sm:$0x1] }
  0x62   : > { %v483_v7 = vrot.slane %v481_v56, 4  ;;  %v4972_v11 = vcombine.low %v456_v15, %v466_v6  ;;  %v475_v14 = vrot.slane %v474_v63, 4  ;;  %v489_v18 = vrot.slane %v487_v61, 5 }
  0x63   : > { %v2807_v21 = vsel %vm6665_vm7, %v5240_v2, %v2806_v22  ;;  %v494_v38 = vrot.slane %v492_v17, 4  ;;  %v495_v1 = vshll.u32 %v6691_v53, 16  ;;  %v501_v30 = vshll.u32 %v6698_v16, 16  ;;  %v6730_v22 = vld [vmem:[%s8223_s1 + $0xe] sm:$0x3] }
  0x64   : > { %v484_v25 = vor.u32 %v483_v7, %v479_v58  ;;  %v5257_v31 = vcombine.low %v2807_v21, %v2810_v5  ;;  %5675 = vmatprep.mubr.msk.bf16.mxu1 %vm685_vm3, %v4972_v11  ;;  %v480_v28 = vsel %vm6439_vm4, %v475_v14, %v479_v58  ;;  %v505_v60 = vshrl.u32 %v6698_v16, 16  ;;  %v6749_v5 = vld [vmem:[%s6413_s28 + $0x90] sm:$0xf] }
  0x65   : > { %v511_v42 = vshll.u32 %v242_v57, 16  ;;  %v497_v45 = vrot.slane %v495_v1, 5  ;;  %v5241_v47 = vrot.slane %v5225_v10, 9  ;;  %v2813_v26 = vrot.slane %v6489_v46, 5  ;;  %v5226_v57 = vld [vmem:[%s6413_s28 + $0x30] sm:$0xe] }
  0x66   : > { %v485_v44 = vrot.slane %v484_v25, 4  ;;  %v503_v48 = vrot.slane %v501_v30, 5  ;;  %v507_v49 = vrot.slane %v505_v60, 4  ;;  %v2816_v51 = vrot.slane %v6498_v54, 5  ;;  %v6761_v30 = vld [vmem:[%s6413_s28 + $0x94] sm:$0xf] }
  0x67   : > { %v513_v50 = vrot.slane %v511_v42, 5  ;;  %5830 = vmatmul.mubr.msk.bf16.vlgmr.msra.gmra.mrb[0].mxu0 %vm685_vm3, %v5257_v31  ;;  %v498_v62 = vor.u32 %v497_v45, %v494_v38  ;;  %v2814_v55 = vsel %vm6665_vm7, %v5241_v47, %v2813_v26  ;;  %v2815_v56 = vrot.slane %v2813_v26, 4  ;;  %v244_v60 = vld [vmem:[%s6413_s28 + $0x98] sm:$0x1]  ;;  %v5227_v26 = vld [vmem:[%s6413_s28 + $0x3c] sm:$0xe] }
  0x68   : > { %v490_v15 = vsel %vm6439_vm4, %v485_v44, %v489_v18  ;;  %5862 = vmatpush3.bf16.msra.mxu0 %v6449_v41  ;;  %v508_v46 = vor.u32 %v507_v49, %v503_v48  ;;  %v516_v58 = vshrl.u32 %v6717_v39, 16  ;;  %v519_v54 = vshll.u32 %v6717_v39, 16 }
  0x69   : > { %v4973_v63 = vcombine.low %v480_v28, %v490_v15  ;;  %v499_v61 = vrot.slane %v498_v62, 4  ;;  %v2817_v2 = vsel %vm6665_vm7, %v2815_v56, %v2816_v51  ;;  %v525_v6 = vshll.u32 %v6725_v43, 16  ;;  %6229 = vmatprep.subr.msk.bf16.mxu0 %vm734_vm0, %v6730_v22 }
  0x6a   : > { %v529_v7 = vshrl.u32 %v6725_v43, 16  ;;  %v509_v41 = vrot.slane %v508_v46, 4  ;;  %v5258_v17 = vcombine.low %v2814_v55, %v2817_v2  ;;  %v518_v10 = vrot.slane %v516_v58, 4  ;;  %v6781_v46 = vld [vmem:[%s6413_s28 + $0xa0] sm:$0xf] }
  0x6b   : > { %5676 = vmatmul.mubr.msk.bf16.gmra.mrb[16].mxu1 %vm685_vm3, %v4973_v63  ;;  %v521_v11 = vrot.slane %v519_v54, 5  ;;  %v504_v14 = vsel %vm6439_vm4, %v499_v61, %v503_v48  ;;  %v527_v18 = vrot.slane %v525_v6, 5  ;;  %v535_v25 = vshll.u32 %v243_v52, 16  ;;  %v6770_v52 = vld [vmem:[%s6413_s28 + $0x9c] sm:$0xf] }
  0x6c   : > { %v531_v21 = vrot.slane %v529_v7, 4  ;;  %v514_v31 = vsel %vm6439_vm4, %v509_v41, %v513_v50  ;;  %5833 = vmatprep.mubr.msk.bf16.mxu0 %vm685_vm3, %v5258_v17  ;;  %v5242_v1 = vrot.slane %v5226_v57, 9  ;;  %v2820_v28 = vrot.slane %v6518_v33, 5 }
  0x6d   : > { %v522_v38 = vor.u32 %v521_v11, %v518_v10  ;;  %v4974_v42 = vcombine.low %v504_v14, %v514_v31  ;;  %v537_v45 = vrot.slane %v535_v25, 5  ;;  %v2823_v47 = vrot.slane %v6526_v40, 5  ;;  %v245_v10 = vld [vmem:[%s6413_s28 + $0xa4] sm:$0x1]  ;;  %v5228_v11 = vld [vmem:[%s6413_s28 + $0x48] sm:$0xe] }
  0x6e   : > { %v532_v44 = vor.u32 %v531_v21, %v527_v18  ;;  %v2821_v49 = vsel %vm6665_vm7, %v5242_v1, %v2820_v28  ;;  %v2822_v50 = vrot.slane %v2820_v28, 4  ;;  %v540_v51 = vshrl.u32 %v6749_v5, 16 }
  0x6f   : > { %v523_v48 = vrot.slane %v522_v38, 4  ;;  %5679 = vmatprep.mubr.msk.bf16.mxu1 %vm685_vm3, %v4974_v42  ;;  %v543_v15 = vshll.u32 %v6749_v5, 16  ;;  %v549_v62 = vshll.u32 %v6761_v30, 16  ;;  %v553_v40 = vshrl.u32 %v6761_v30, 16 }
  0x70   : > { %v533_v33 = vrot.slane %v532_v44, 4  ;;  %v2824_v56 = vsel %vm6665_vm7, %v2822_v50, %v2823_v47  ;;  %v542_v57 = vrot.slane %v540_v51, 4  ;;  %v559_v63 = vshll.u32 %v244_v60, 16 }
  0x71   : > { %v528_v55 = vsel %vm6439_vm4, %v523_v48, %v527_v18  ;;  %v5259_v54 = vcombine.low %v2821_v49, %v2824_v56  ;;  %v545_v61 = vrot.slane %v543_v15, 5  ;;  %v551_v2 = vrot.slane %v549_v62, 5  ;;  %v6807_v56 = vld [vmem:[%s6413_s28 + $0xac] sm:$0xf] }
  0x72   : > { %v538_v58 = vsel %vm6439_vm4, %v533_v33, %v537_v45  ;;  %v555_v7 = vrot.slane %v553_v40, 4  ;;  %v561_v41 = vrot.slane %v559_v63, 5  ;;  %v5243_v17 = vrot.slane %v5227_v26, 9  ;;  %v6802_v33 = vld [vmem:[%s6413_s28 + $0xa8] sm:$0xf] }
  0x73   : > { %v4975_v6 = vcombine.low %v528_v55, %v538_v58  ;;  %5834 = vmatmul.mubr.msk.bf16.gmra.mrb[4].mxu0 %vm685_vm3, %v5259_v54  ;;  %v546_v14 = vor.u32 %v545_v61, %v542_v57  ;;  %v2827_v18 = vrot.slane %v6543_v20, 5  ;;  %v2830_v21 = vrot.slane %v6548_v34, 5  ;;  %v246_v61 = vld [vmem:[%s6413_s28 + $0xb0] sm:$0x1] }
  0x74   : > { %v564_v25 = vshrl.u32 %v6770_v52, 16  ;;  %v556_v31 = vor.u32 %v555_v7, %v551_v2  ;;  %v567_v38 = vshll.u32 %v6770_v52, 16  ;;  %v573_v1 = vshll.u32 %v6781_v46, 16 }
  0x75   : > { %5680 = vmatmul.mubr.msk.bf16.gmra.mrb[20].mxu1 %vm685_vm3, %v4975_v6  ;;  %v577_v28 = vshrl.u32 %v6781_v46, 16  ;;  %v547_v60 = vrot.slane %v546_v14, 4  ;;  %v2828_v42 = vsel %vm6665_vm7, %v5243_v17, %v2827_v18  ;;  %v2829_v20 = vrot.slane %v2827_v18, 4  ;;  %v6822_v14 = vld [vmem:[%s6413_s28 + $0xb4] sm:$0xf] }
  0x76   : > { %v566_v44 = vrot.slane %v564_v25, 4  ;;  %v557_v34 = vrot.slane %v556_v31, 4  ;;  %v569_v45 = vrot.slane %v567_v38, 5  ;;  %v575_v47 = vrot.slane %v573_v1, 5 }
  0x77   : > { %v579_v26 = vrot.slane %v577_v28, 4  ;;  %v552_v48 = vsel %vm6439_vm4, %v547_v60, %v551_v2  ;;  %v2831_v49 = vsel %vm6665_vm7, %v2829_v20, %v2830_v21  ;;  %v583_v50 = vshll.u32 %v245_v10, 16  ;;  %v5229_v2 = vld [vmem:[%s6413_s28 + $0x54] sm:$0xe] }
  0x78   : > { %v5244_v51 = vrot.slane %v5228_v11, 9  ;;  %v562_v15 = vsel %vm6439_vm4, %v557_v34, %v561_v41  ;;  %v5260_v62 = vcombine.low %v2828_v42, %v2831_v49  ;;  %v570_v40 = vor.u32 %v569_v45, %v566_v44  ;;  %v6831_v42 = vld [vmem:[%s6413_s28 + $0xb8] sm:$0xf]  ;;  %v247_v49 = vld [vmem:[%s6413_s28 + $0xbc] sm:$0x1] }
  0x79   : > { %v580_v55 = vor.u32 %v579_v26, %v575_v47  ;;  %v4976_v57 = vcombine.low %v552_v48, %v562_v15  ;;  %v585_v63 = vrot.slane %v583_v50, 5  ;;  %v2834_v58 = vrot.slane %v6566_v8, 5 }
  0x7a   : > { %v2837_v54 = vrot.slane %v6574_v23, 5  ;;  %5837 = vmatprep.mubr.msk.bf16.mxu0 %vm685_vm3, %v5260_v62  ;;  %v571_v6 = vrot.slane %v570_v40, 4  ;;  %v588_v41 = vshrl.u32 %v6802_v33, 16  ;;  %v591_v17 = vshll.u32 %v6802_v33, 16 }
  0x7b   : > { %v581_v7 = vrot.slane %v580_v55, 4  ;;  %5683 = vmatprep.mubr.msk.bf16.mxu1 %vm685_vm3, %v4976_v57  ;;  %v2835_v10 = vsel %vm6665_vm7, %v5244_v51, %v2834_v58  ;;  %v2836_v11 = vrot.slane %v2834_v58, 4  ;;  %v597_v8 = vshll.u32 %v6807_v56, 16  ;;  %v5230_v55 = vld [vmem:[%s6413_s28 + $0x60] sm:$0xe] }
  0x7c   : > { %v601_v23 = vshrl.u32 %v6807_v56, 16  ;;  %v576_v18 = vsel %vm6439_vm4, %v571_v6, %v575_v47  ;;  %v590_v25 = vrot.slane %v588_v41, 4  ;;  %v593_v31 = vrot.slane %v591_v17, 5  ;;  %v5231_v6 = vld [vmem:[%s6413_s28 + $0x6c] sm:$0xe] }
  0x7d   : > { %v586_v21 = vsel %vm6439_vm4, %v581_v7, %v585_v63  ;;  %v2838_v1 = vsel %vm6665_vm7, %v2836_v11, %v2837_v54  ;;  %v599_v28 = vrot.slane %v597_v8, 5  ;;  %v607_v34 = vshll.u32 %v246_v61, 16  ;;  %v5167_v11 = vld [vmem:[%s6413_s28 + $0x70] sm:$0xf]  ;;  %v5168_v8 = vld [vmem:[%s6413_s28 + $0x74] sm:$0x1] }
  0x7e   : > { %v4977_v38 = vcombine.low %v576_v18, %v586_v21  ;;  %v603_v60 = vrot.slane %v601_v23, 4  ;;  %v5261_v20 = vcombine.low %v2835_v10, %v2838_v1  ;;  %v594_v44 = vor.u32 %v593_v31, %v590_v25 }
  0x7f   : > { %v5245_v45 = vrot.slane %v5229_v2, 9  ;;  %v2841_v26 = vrot.slane %v6597_v4, 5  ;;  %v2844_v48 = vrot.slane %v6603_v12, 5  ;;  %v612_v50 = vshrl.u32 %v6822_v14, 16 }
  0x80   : > { %5684 = vmatmul.mubr.msk.bf16.gmra.mrb[24].mxu1 %vm685_vm3, %v4977_v38  ;;  %v604_v47 = vor.u32 %v603_v60, %v599_v28  ;;  %5838 = vmatmul.mubr.msk.bf16.gmra.mrb[8].mxu0 %vm685_vm3, %v5261_v20  ;;  %v595_v51 = vrot.slane %v594_v44, 4  ;;  %v609_v15 = vrot.slane %v607_v34, 5  ;;  %v615_v62 = vshll.u32 %v6822_v14, 16 }
  0x81   : > { %v621_v40 = vshll.u32 %v6831_v42, 16  ;;  %v2842_v4 = vsel %vm6665_vm7, %v5245_v45, %v2841_v26  ;;  %v2843_v12 = vrot.slane %v2841_v26, 4  ;;  %v614_v63 = vrot.slane %v612_v50, 4 }
  0x82   : > { %v605_v57 = vrot.slane %v604_v47, 4  ;;  %v600_v58 = vsel %vm6439_vm4, %v595_v51, %v599_v28  ;;  %v617_v54 = vrot.slane %v615_v62, 5  ;;  %v625_v2 = vshrl.u32 %v6831_v42, 16  ;;  %v5232_v47 = vld [vmem:[%s6413_s28 + $0x78] sm:$0xe] }
  0x83   : > { %v623_v61 = vrot.slane %v621_v40, 5  ;;  %v2845_v41 = vsel %vm6665_vm7, %v2843_v12, %v2844_v48  ;;  %v631_v17 = vshll.u32 %v247_v49, 16  ;;  %v5246_v10 = vrot.slane %v5230_v55, 9  ;;  %v6288_v51 = vld [vmem:[%s6413_s28] sm:$0xf] }
  0x84   : > { %v610_v7 = vsel %vm6439_vm4, %v605_v57, %v609_v15  ;;  %v5262_v18 = vcombine.low %v2842_v4, %v2845_v41  ;;  %v618_v21 = vor.u32 %v617_v54, %v614_v63  ;;  %v627_v25 = vrot.slane %v625_v2, 4  ;;  %v6869_v15 = vld [vmem:[%s6413_s28 + $0x4] sm:$0xf]  ;;  %v6873_v40 = vld [vmem:[%s6413_s28 + $0x7c] sm:$0xf] }
  0x85   : > { %v4978_v23 = vcombine.low %v600_v58, %v610_v7  ;;  %v633_v31 = vrot.slane %v631_v17, 5  ;;  %v2848_v38 = vrot.slane %v6627_v59, 5  ;;  %v2851_v1 = vrot.slane %v6634_v9, 5  ;;  %v6876_v55 = vld [vmem:[%s6413_s28 + $0x80] sm:$0x1] }
  0x86   : > { %v5247_v28 = vrot.slane %v5231_v6, 9  ;;  %5841 = vmatprep.mubr.msk.bf16.mxu0 %vm685_vm3, %v5262_v18  ;;  %v619_v60 = vrot.slane %v618_v21, 4  ;;  %v628_v20 = vor.u32 %v627_v25, %v623_v61  ;;  %v2855_v44 = vrot.slane %v5167_v11, 5  ;;  %v5173_v57 = vld [vmem:[%s6413_s28 + $0x88] sm:$0xf] }
  0x87   : > { %5687 = vmatprep.mubr.msk.bf16.mxu1 %vm685_vm3, %v4978_v23  ;;  %v2858_v34 = vrot.slane %v5168_v8, 5  ;;  %v2849_v45 = vsel %vm6665_vm7, %v5246_v10, %v2848_v38  ;;  %v2850_v59 = vrot.slane %v2848_v38, 4  ;;  %v4996_v62 = vcombine.low %v6288_v51, %v6869_v15  ;;  %v5174_v54 = vld [vmem:[%s6413_s28 + $0x8c] sm:$0x1]  ;;  %v5176_v17 = vld [vmem:[%s6413_s28 + $0x94] sm:$0xf] }
  0x88   : > { %v624_v9 = vsel %vm6439_vm4, %v619_v60, %v623_v61  ;;  %v629_v26 = vrot.slane %v628_v20, 4  ;;  %v2856_v48 = vsel %vm6665_vm7, %v5247_v28, %v2855_v44  ;;  %v2857_v49 = vrot.slane %v2855_v44, 4  ;;  %v5233_v61 = vld [vmem:[%s6413_s28 + $0x84] sm:$0xe]  ;;  %v5234_v23 = vld [vmem:[%s6413_s28 + $0x90] sm:$0xe] }
  0x89   : > { %v2852_v50 = vsel %vm6665_vm7, %v2850_v59, %v2851_v1  ;;  %v5248_v58 = vrot.slane %v5232_v47, 9  ;;  %v2862_v7 = vrot.slane %v6873_v40, 5  ;;  %v2865_v41 = vrot.slane %v6876_v55, 5  ;;  %v5177_v25 = vld [vmem:[%s6413_s28 + $0x98] sm:$0x1] }
  0x8a   : > { %v634_v4 = vsel %vm6439_vm4, %v629_v26, %v633_v31  ;;  %v5263_v12 = vcombine.low %v2849_v45, %v2852_v50  ;;  %v2859_v63 = vsel %vm6665_vm7, %v2857_v49, %v2858_v34  ;;  %v5249_v10 = vrot.slane %v5233_v61, 9  ;;  %v5179_v31 = vld [vmem:[%s6413_s28 + $0xa0] sm:$0xf]  ;;  %v5180_v60 = vld [vmem:[%s6413_s28 + $0xa4] sm:$0x1] }
  0x8b   : > { %v4979_v2 = vcombine.low %v624_v9, %v634_v4  ;;  %v5264_v6 = vcombine.low %v2856_v48, %v2859_v63  ;;  %v2869_v11 = vrot.slane %v5173_v57, 5  ;;  %v2872_v8 = vrot.slane %v5174_v54, 5  ;;  %v5235_v20 = vld [vmem:[%s6413_s28 + $0x9c] sm:$0xe]  ;;  %v6290_v44 = vld [vmem:[%s6413_s28 + $0xc] sm:$0xf] }
  0x8c   : > { %5842 = vmatmul.mubr.msk.bf16.gmra.mrb[12].mxu0 %vm685_vm3, %v5263_v12  ;;  %v2863_v18 = vsel %vm6665_vm7, %v5248_v58, %v2862_v7  ;;  %v2864_v21 = vrot.slane %v2862_v7, 4  ;;  %v2876_v28 = vrot.slane %v5176_v17, 5  ;;  %v6903_v34 = vld [vmem:[%s6413_s28 + $0x10] sm:$0xf]  ;;  %v6292_v47 = vld [vmem:[%s6413_s28 + $0x18] sm:$0xf] }
  0x8d   : > { %5688 = vmatmul.mubr.msk.bf16.gmra.mrb[28].mxu1 %vm685_vm3, %v4979_v2  ;;  %5845 = vmatprep.mubr.msk.bf16.mxu0 %vm685_vm3, %v5264_v6  ;;  %v2870_v38 = vsel %vm6665_vm7, %v5249_v10, %v2869_v11  ;;  %v2871_v1 = vrot.slane %v2869_v11, 4  ;;  %v4997_v45 = vcombine.low %v6290_v44, %v6903_v34  ;;  %v6910_v9 = vld [vmem:[%s6413_s28 + $0x1c] sm:$0xf]  ;;  %v5250_v48 = vrot.slane %v5234_v23, 9  ;;  %v5182_v57 = vld [vmem:[%s6413_s28 + $0xac] sm:$0xf] }
  0x8e   : > { %5693 = vmatprep.mubr.msk.bf16.mxu1 %vm685_vm3, %v4996_v62  ;;  %v2866_v59 = vsel %vm6665_vm7, %v2864_v21, %v2865_v41  ;;  %v4998_v26 = vcombine.low %v6292_v47, %v6910_v9  ;;  %v2878_v51 = vrot.slane %v2876_v28, 4  ;;  %v2879_v62 = vrot.slane %v5177_v25, 5  ;;  %v6294_v54 = vld [vmem:[%s8223_s1 + $0x4] sm:$0x3]  ;;  %v5185_v2 = vld [vmem:[%s6413_s28 + $0xb8] sm:$0xf] }
  0x8f   : > { %v5265_v49 = vcombine.low %v2863_v18, %v2866_v59  ;;  %v2873_v50 = vsel %vm6665_vm7, %v2871_v1, %v2872_v8  ;;  %v5251_v12 = vrot.slane %v5235_v20, 9  ;;  %v2883_v63 = vrot.slane %v5179_v31, 5  ;;  %v6925_v7 = vld [vmem:[%s8223_s1 + $0x6] sm:$0x3]  ;;  %v5183_v10 = vld [vmem:[%s6413_s28 + $0xb0] sm:$0x1] }
  0x90   : > { %v5266_v4 = vcombine.low %v2870_v38, %v2873_v50  ;;  %v2886_v58 = vrot.slane %v5180_v60, 5  ;;  %v1453_v61 = vsel %vm734_vm0, %v6294_v54, 0  ;;  %v2877_v41 = vsel %vm6665_vm7, %v5250_v48, %v2876_v28  ;;  %v5236_v11 = vld [vmem:[%s6413_s28 + $0xa8] sm:$0xe]  ;;  %v5186_v25 = vld [vmem:[%s6413_s28 + $0xbc] sm:$0x1] }
  0x91   : > { %v2885_v6 = vrot.slane %v2883_v63, 4  ;;  %v2880_v17 = vsel %vm6665_vm7, %v2878_v51, %v2879_v62  ;;  %v2890_v8 = vrot.slane %v5182_v57, 5  ;;  %v2884_v23 = vsel %vm6665_vm7, %v5251_v12, %v2883_v63  ;;  %v5237_v31 = vld [vmem:[%s6413_s28 + $0xb4] sm:$0xe]  ;;  %v6295_v38 = vld [vmem:[%s6413_s28 + $0x24] sm:$0xf] }
  0x92   : > { %v2897_v21 = vrot.slane %v5185_v2, 5  ;;  %v6946_v1 = vld [vmem:[%s6413_s28 + $0x28] sm:$0xf]  ;;  %v5267_v60 = vcombine.low %v2877_v41, %v2880_v17  ;;  %v5252_v44 = vrot.slane %v5236_v11, 9  ;;  %v2893_v59 = vrot.slane %v5183_v10, 5 }
  0x93   : > { %v2887_v18 = vsel %vm6665_vm7, %v2885_v6, %v2886_v58  ;;  %v4999_v28 = vcombine.low %v6295_v38, %v6946_v1  ;;  %v6297_v47 = vld [vmem:[%s6413_s28 + $0x30] sm:$0xf]  ;;  %v2900_v51 = vrot.slane %v5186_v25, 5  ;;  %v5188_v62 = vld [vmem:[%s6413_s28 + $0xc4] sm:$0xf]  ;;  %v2285_v25 = vshrl.u32 %v6873_v40, 16 }
  0x94   : > { %5846 = vmatmul.mubr.msk.bf16.gmra.mrb[16].mxu0 %vm685_vm3, %v5265_v49  ;;  %v5268_v20 = vcombine.low %v2884_v23, %v2887_v18  ;;  %v5253_v49 = vrot.slane %v5237_v31, 9  ;;  %v2899_v50 = vrot.slane %v2897_v21, 4  ;;  %v2891_v57 = vsel %vm6665_vm7, %v5252_v44, %v2890_v8  ;;  %v5238_v12 = vld [vmem:[%s6413_s28 + $0xc0] sm:$0xe]  ;;  %v6299_v41 = vld [vmem:[%s6413_s28 + $0x3c] sm:$0xf] }
  0x95   : > { %5694 = vmatmul.mubr.msk.bf16.vlgmr.msra.gmra.mrb[0].mxu1 %vm685_vm3, %v4997_v45  ;;  %5849 = vmatprep.mubr.msk.bf16.mxu0 %vm685_vm3, %v5266_v4  ;;  %v2892_v45 = vrot.slane %v2890_v8, 4  ;;  %v2904_v63 = vrot.slane %v5188_v62, 5  ;;  %v5254_v6 = vrot.slane %v5238_v12, 9  ;;  %v6971_v17 = vld [vmem:[%s6413_s28 + $0x40] sm:$0xf]  ;;  %v5002_v18 = vcombine.low %v6578_v27, %v6581_v36  ;;  %v6251_v62 = vld [vmem:[%s6413_s28 + $0x24] sm:$0xff]  }
  0x96   : > { %5726 = vmatpush3.bf16.msra.mxu1 %v1453_v61  ;;  %5697 = vmatprep.mubr.msk.bf16.mxu1 %vm685_vm3, %v4998_v26  ;;  %v6951_v26 = vld [vmem:[%s6413_s28 + $0x34] sm:$0xf]  ;;  %v2898_v58 = vsel %vm6665_vm7, %v5253_v49, %v2897_v21  ;;  %v2901_v54 = vsel %vm6665_vm7, %v2899_v50, %v2900_v51  ;;  %v5189_v61 = vld [vmem:[%s6413_s28 + $0xc8] sm:$0x1]  ;;  %v5001_v10 = vcombine.low %v6299_v41, %v6971_v17  ;;  %v2281_v21 = vshll.u32 %v6873_v40, 16 }
  0x97   : > { %6224 = vmatprep.subr.msk.bf16.mxu1 %vm734_vm0, %v6925_v7  ;;  %v5000_v48 = vcombine.low %v6297_v47, %v6951_v26  ;;  %v2894_v4 = vsel %vm6665_vm7, %v2892_v45, %v2893_v59  ;;  %v5270_v11 = vcombine.low %v2898_v58, %v2901_v54  ;;  %v2906_v8 = vrot.slane %v2904_v63, 4  ;;  %v1191_v45 = vld [vmem:[%s6413_s28] sm:$0xe]  ;;  %v1192_v59 = vld [vmem:[%s6413_s28 + $0xc] sm:$0xe] }
  0x98   : > { %v5269_v2 = vcombine.low %v2891_v57, %v2894_v4  ;;  %v2907_v23 = vrot.slane %v5189_v61, 5  ;;  %v2905_v31 = vsel %vm6665_vm7, %v5254_v6, %v2904_v63  ;;  %v6986_v27 = vrot.slane %v2281_v21, 5  ;;  %v1195_v41 = vld [vmem:[%s6413_s28 + $0x30] sm:$0xe] }
  0x99   : > { %v2287_v36 = vrot.slane %v2285_v25, 4  ;;  %v5004_v44 = vcombine.low %v6638_v19, %v6644_v35  ;;  %v2291_v47 = vshll.u32 %v6876_v55, 16  ;;  %v5028_v19 = vrot.slane %v1191_v45, 9 }
  0x9a   : > { %v2908_v38 = vsel %vm6665_vm7, %v2906_v8, %v2907_v23  ;;  %8245 = vst [vmem:[#allocation3_spill] sm:$0xff] %v6986_v27  ;;  %v5029_v35 = vrot.slane %v1192_v59, 9  ;;  %v1258_v4 = vrot.slane %v6910_v9, 5  ;;  %v1265_v12 = vrot.slane %v6946_v1, 5  ;;  %v1196_v8 = vld [vmem:[%s6413_s28 + $0x3c] sm:$0xe] }
  0x9b   : > { %v5271_v40 = vcombine.low %v2905_v31, %v2908_v38  ;;  %v2288_v49 = vor.u32 %v2287_v36, %v6986_v27  ;;  %v7006_v51 = vrot.slane %v2291_v47, 5  ;;  %v5005_v58 = vcombine.low %v6659_v0, %v6672_v29  ;;  %v1197_v31 = vld [vmem:[%s6413_s28 + $0x48] sm:$0xe]  ;;  %v6305_v59 = vld [vmem:[%s6413_s28 + $0x38] sm:$0x1] }
  0x9c   : > { %5850 = vmatmul.mubr.msk.bf16.gmra.mrb[20].mxu0 %vm685_vm3, %v5267_v60  ;;  %v5003_v60 = vcombine.low %v6607_v24, %v6613_v37  ;;  %v6302_v24 = vld [vmem:[%s6413_s28 + $0x14] sm:$0x1]  ;;  %v4093_v54 = vsel %vm734_vm0, %v6730_v22, 0  ;;  %v5006_v61 = vcombine.low %v6691_v53, %v6698_v16  ;;  %v5007_v6 = vcombine.low %v6717_v39, %v6725_v43  ;;  %v6303_v16 = vld [vmem:[%s6413_s28 + $0x20] sm:$0x1] }
  0x9d   : > { %5698 = vmatmul.mubr.msk.bf16.gmra.mrb[4].mxu1 %vm685_vm3, %v4999_v28  ;;  %5853 = vmatprep.mubr.msk.bf16.mxu0 %vm685_vm3, %v5268_v20  ;;  %v1251_v28 = vrot.slane %v6903_v34, 5  ;;  %v6249_v20 = vld [vmem:[%s6413_s28 + $0x18] sm:$0xff]   ;;  %v6301_v34 = vld [vmem:[%s6413_s28 + $0x8] sm:$0x1]  ;;  %v1254_v37 = vrot.slane %v6302_v24, 5  ;;  %8246 = vst [vmem:[#allocation4_spill] sm:$0xff] %v7006_v51  ;;  %v5008_v9 = vcombine.low %v6749_v5, %v6761_v30 }
  0x9e   : > { %5701 = vmatprep.mubr.msk.bf16.mxu1 %vm685_vm3, %v5000_v48  ;;  %v1244_v48 = vrot.slane %v6869_v15, 5  ;;  %v1247_v50 = vrot.slane %v6301_v34, 5  ;;  %v1193_v15 = vld [vmem:[%s6413_s28 + $0x18] sm:$0xe]  ;;  %v7011_v63 = vrot.slane %v2288_v49, 4  ;;  %v1261_v22 = vrot.slane %v6303_v16, 5 }
  0x9f   : > { %v1253_v55 = vrot.slane %v1251_v28, 4  ;;  %v5030_v1 = vrot.slane %v1193_v15, 9  ;;  %v7033_v29 = vsel %vm6665_vm7, %v5029_v35, %v1251_v28  ;;  %v1267_v25 = vrot.slane %v1265_v12, 4  ;;  %v5353_v24 = vld [vmem:[%s6413_s28 + $0x18] sm:$0xf] }
  0xa0   : > { %v1246_v57 = vrot.slane %v1244_v48, 4  ;;  %8247 = vst [vmem:[#allocation5_spill] sm:$0xff] %v7011_v63  ;;  %v7029_v0 = vsel %vm6665_vm7, %v5028_v19, %v1244_v48  ;;  %v1275_v47 = vrot.slane %v6305_v59, 5  ;;  %v7070_v49 = vsel %vm734_vm0, %v6925_v7, 0  ;;  %v5354_v7 = vld [vmem:[%s6413_s28 + $0x1c] sm:$0xf] }
  0xa1   : > { %v7037_v53 = vsel %vm6665_vm7, %v1253_v55, %v1254_v37  ;;  %v7074_v34 = vsel %vm6665_vm7, %v5030_v1, %v1258_v4  ;;  %v6255_v37 = vld [vmem:[%s6413_s28 + $0x3c] sm:$0xff]   ;;  %v5033_v35 = vrot.slane %v1196_v8, 9  ;;  %v6306_v55 = vld [vmem:[%s6413_s28 + $0x44] sm:$0x1]  ;;  %v3614_v8 = vshll.u32 %v5353_v24, 16 }
  0xa2   : > { %v7048_v23 = vsel %vm6665_vm7, %v1246_v57, %v1247_v50  ;;  %v1198_v50 = vld [vmem:[%s6413_s28 + $0x54] sm:$0xe]  ;;  %v1282_v15 = vrot.slane %v6306_v55, 5  ;;  %v5357_v39 = vld [vmem:[%s6413_s28 + $0x28] sm:$0xf] }
  0xa3   : > { %v6313_v5 = vld [vmem:[%s6413_s28 + $0x70] sm:$0xf] }
  0xa4   : > { %5854 = vmatmul.mubr.msk.bf16.gmra.mrb[24].mxu0 %vm685_vm3, %v5269_v2  ;;  %v1194_v2 = vld [vmem:[%s6413_s28 + $0x24] sm:$0xe]  ;;  %v1307_v30 = vrot.slane %v6313_v5, 5 }
  0xa5   : > { %5702 = vmatmul.mubr.msk.bf16.gmra.mrb[8].mxu1 %vm685_vm3, %v5001_v10  ;;  %5857 = vmatprep.mubr.msk.bf16.mxu0 %vm685_vm3, %v5270_v11  ;;  %v1272_v10 = vrot.slane %v6951_v26, 5  ;;  %v6253_v11 = vld [vmem:[%s6413_s28 + $0x30] sm:$0xff]   ;;  %v5031_v21 = vrot.slane %v1194_v2, 9 }
  0xa6   : > { %5705 = vmatprep.mubr.msk.bf16.mxu1 %vm685_vm3, %v5002_v18  ;;  %v7044_v26 = vld [vmem:[%s8223_s1 + $0x10] sm:$0x3]  ;;  %v1260_v18 = vrot.slane %v1258_v4, 4  ;;  %v1309_v48 = vrot.slane %v1307_v30, 4 }
  0xa7   : > { %v1274_v45 = vrot.slane %v1272_v10, 4  ;;  %v7081_v19 = vsel %vm6665_vm7, %v5031_v21, %v1265_v12  ;;  %v3624_v21 = vshrl.u32 %v5354_v7, 16 }
  0xa8   : > { %v7090_v4 = vsel %vm6665_vm7, %v1260_v18, %v1261_v22  ;;  %v3611_v22 = vshrl.u32 %v5353_v24, 16  ;;  %v3620_v18 = vshll.u32 %v5354_v7, 16  ;;  %v5356_v24 = vld [vmem:[%s6413_s28 + $0x24] sm:$0xf] }
  0xa9   : > { %v7103_v1 = vsel %vm6665_vm7, %v1274_v45, %v1275_v47 }
  0xaa   : > { %v3613_v43 = vrot.slane %v3611_v22, 4  ;;  %v7145_v7 = vrot.slane %v3620_v18, 5  ;;  %v3638_v22 = vshll.u32 %v5356_v24, 16  ;;  %v3648_v18 = vshrl.u32 %v5357_v39, 16 }
  0xac   : > { %5858 = vmatmul.mubr.msk.bf16.gmra.mrb[28].mxu0 %vm685_vm3, %v5271_v40  ;;  %v6304_v40 = vld [vmem:[%s6413_s28 + $0x2c] sm:$0x1]  ;;  %v3640_v27 = vrot.slane %v3638_v22, 5 }
  0xad   : > { %5706 = vmatmul.mubr.msk.bf16.gmra.mrb[12].mxu1 %vm685_vm3, %v5003_v60  ;;  %5863 = vmatprep.mubr.msk.bf16.mxu0 %vm685_vm3, %v6249_v20  ;;  %v1268_v28 = vrot.slane %v6304_v40, 5  ;;  %v1279_v60 = vrot.slane %v6971_v17, 5  ;;  %v6309_v40 = vld [vmem:[%s6413_s28 + $0x50] sm:$0x1]  ;;  %v6314_v17 = vld [vmem:[%s6413_s28 + $0x74] sm:$0x1] }
  0xae   : > { %5709 = vmatprep.mubr.msk.bf16.mxu1 %vm685_vm3, %v5004_v44  ;;  %v5032_v44 = vrot.slane %v1195_v41, 9  ;;  %v5035_v41 = vrot.slane %v1198_v50, 9  ;;  %v1199_v50 = vld [vmem:[%s6413_s28 + $0x60] sm:$0xe]  ;;  %v5358_v20 = vld [vmem:[%s6413_s28 + $0x2c] sm:$0x1] }
  0xaf   : > { %v1281_v12 = vrot.slane %v1279_v60, 4  ;;  %v7116_v45 = vsel %vm6665_vm7, %v5033_v35, %v1279_v60  ;;  %v6310_v35 = vld [vmem:[%s6413_s28 + $0x5c] sm:$0x1] }
  0xb0   : > { %v7099_v2 = vsel %vm6665_vm7, %v5032_v44, %v1272_v10  ;;  %v1296_v55 = vrot.slane %v6310_v35, 5  ;;  %v1200_v35 = vld [vmem:[%s6413_s28 + $0x6c] sm:$0xe] }
  0xb1   : > { %v7120_v59 = vsel %vm6665_vm7, %v1281_v12, %v1282_v15  ;;  %v6311_v15 = vld [vmem:[%s6413_s28 + $0x64] sm:$0xf]  ;;  %v3626_v12 = vrot.slane %v3624_v21, 4  ;;  %v5037_v5 = vrot.slane %v1200_v35, 9 }
  0xb2   : > { %v6261_v21 = vld [vmem:[%s6413_s28 + $0x60] sm:$0xff]  }
  0xb4   : > { %5864 = vmatmul.mubr.msk.bf16.vlgmr.msra.gmra.mrb[0].mxu0 %vm685_vm3, %v6251_v62  ;;  %v6307_v62 = vld [vmem:[%s6413_s28 + $0x4c] sm:$0xf] }
  0xb5   : > { %5710 = vmatmul.mubr.msk.bf16.gmra.mrb[16].mxu1 %vm685_vm3, %v5005_v58  ;;  %5896 = vmatpush3.bf16.msra.mxu0 %v4093_v54  ;;  %v1286_v57 = vrot.slane %v6307_v62, 5  ;;  %v7094_v58 = vsel %vm6665_vm7, %v1267_v25, %v1268_v28  ;;  %v5034_v54 = vrot.slane %v1197_v31, 9  ;;  %v1289_v28 = vrot.slane %v6309_v40, 5 }
  0xb6   : > { %5713 = vmatprep.mubr.msk.bf16.mxu1 %vm685_vm3, %v5006_v61  ;;  %5867 = vmatprep.mubr.msk.bf16.mxu0 %vm685_vm3, %v6253_v11  ;;  %v6257_v61 = vld [vmem:[%s6413_s28 + $0x48] sm:$0xff]   ;;  %v6308_v11 = vld [vmem:[%s6413_s28 + $0x58] sm:$0xf]  ;;  %v1300_v62 = vrot.slane %v6311_v15, 5  ;;  %v5360_v15 = vld [vmem:[%s6413_s28 + $0x34] sm:$0xf] }
  0xb7   : > { %6230 = vmatprep.subr.msk.bf16.mxu0 %vm734_vm0, %v7044_v26  ;;  %v1293_v16 = vrot.slane %v6308_v11, 5  ;;  %v1288_v31 = vrot.slane %v1286_v57, 4  ;;  %v7124_v47 = vsel %vm6665_vm7, %v5034_v54, %v1286_v57  ;;  %v5355_v57 = vld [vmem:[%s6413_s28 + $0x20] sm:$0x1]  ;;  %v5359_v54 = vld [vmem:[%s6413_s28 + $0x30] sm:$0xf] }
  0xb8   : > { %v5036_v11 = vrot.slane %v1199_v50, 9  ;;  %v3662_v50 = vshll.u32 %v5359_v54, 16  ;;  %v3630_v25 = vshll.u32 %v5355_v57, 16  ;;  %v3668_v36 = vshll.u32 %v5360_v15, 16 }
  0xb9   : > { %v7135_v60 = vsel %vm6665_vm7, %v5035_v41, %v1293_v16  ;;  %v7151_v41 = vsel %vm6665_vm7, %v1288_v31, %v1289_v28  ;;  %v1302_v31 = vrot.slane %v1300_v62, 4  ;;  %v3659_v28 = vshrl.u32 %v5359_v54, 16 }
  0xba   : > { %v7193_v35 = vrot.slane %v3668_v36, 5 }
  0xbc   : > { %5868 = vmatmul.mubr.msk.bf16.gmra.mrb[4].mxu0 %vm685_vm3, %v6255_v37  ;;  %v1295_v37 = vrot.slane %v1293_v16, 4  ;;  %v6312_v16 = vld [vmem:[%s6413_s28 + $0x68] sm:$0x1] }
  0xbd   : > { %5714 = vmatmul.mubr.msk.bf16.gmra.mrb[20].mxu1 %vm685_vm3, %v5007_v6  ;;  %5871 = vmatprep.mubr.msk.bf16.mxu0 %vm685_vm3, %v6257_v61  ;;  %v3616_v6 = vrot.slane %v3614_v8, 5  ;;  %v6259_v61 = vld [vmem:[%s6413_s28 + $0x54] sm:$0xff]   ;;  %v1303_v40 = vrot.slane %v6312_v16, 5  ;;  %v3644_v8 = vshll.u32 %v5357_v39, 16  ;;  %v3627_v16 = vor.u32 %v3626_v12, %v7145_v7 }
  0xbe   : > { %5717 = vmatprep.mubr.msk.bf16.mxu1 %vm685_vm3, %v5008_v9  ;;  %v3635_v9 = vshrl.u32 %v5356_v24, 16  ;;  %v7160_v44 = vsel %vm6665_vm7, %v1295_v37, %v1296_v55  ;;  %v1310_v24 = vrot.slane %v6314_v17, 5  ;;  %v3672_v39 = vshrl.u32 %v5360_v15, 16 }
  0xbf   : > { %v3617_v10 = vor.u32 %v3616_v6, %v3613_v43  ;;  %v7166_v37 = vrot.slane %v3644_v8, 5  ;;  %v3650_v55 = vrot.slane %v3648_v18, 4  ;;  %v8248_v43 = vcombine.low %v6770_v52, %v6781_v46  ;;  %v6315_v8 = vld [vmem:[%s6413_s28 + $0x7c] sm:$0xf]  ;;  %v7202_v18 = vld [vmem:[%s6413_s28 + $0x38] sm:$0x1] }
  0xc0   : > { %v3637_v38 = vrot.slane %v3635_v9, 4  ;;  %v7175_v17 = vsel %vm6665_vm7, %v5036_v11, %v1300_v62  ;;  %v7179_v57 = vsel %vm6665_vm7, %v1302_v31, %v1303_v40  ;;  %v3661_v6 = vrot.slane %v3659_v28, 4  ;;  %8250 = vst [vmem:[#allocation6_spill] sm:$0xff] %v7202_v18 }
  0xc1   : > { %v3664_v12 = vrot.slane %v3662_v50, 5  ;;  %v8249_v52 = vcombine.low %v6802_v33, %v6807_v56  ;;  %v3618_v46 = vrot.slane %v3617_v10, 4  ;;  %v3628_v54 = vrot.slane %v3627_v16, 4  ;;  %v6263_v33 = vld [vmem:[%s6413_s28 + $0x6c] sm:$0xff]   ;;  %v1202_v16 = vld [vmem:[%s6413_s28 + $0x84] sm:$0xe] }
  0xc2   : > { %v3654_v62 = vshll.u32 %v5358_v20, 16  ;;  %v7187_v11 = vsel %vm6665_vm7, %v5037_v5, %v1307_v30  ;;  %v7191_v40 = vsel %vm6665_vm7, %v1309_v48, %v1310_v24  ;;  %v3674_v9 = vrot.slane %v3672_v39, 4  ;;  %v6264_v48 = vld [vmem:[%s6413_s28 + $0x78] sm:$0xff]  }
  0xc3   : > { %v3641_v10 = vor.u32 %v3640_v27, %v3637_v38  ;;  %v3651_v20 = vor.u32 %v3650_v55, %v7166_v37  ;;  %v1314_v30 = vrot.slane %v6315_v8, 5  ;;  %v3665_v38 = vor.u32 %v3664_v12, %v3661_v6  ;;  %v5362_v5 = vld [vmem:[%s6413_s28 + $0x3c] sm:$0xf] }
  0xc4   : > { %5872 = vmatmul.mubr.msk.bf16.gmra.mrb[8].mxu0 %vm685_vm3, %v6259_v61  ;;  %v3632_v61 = vrot.slane %v3630_v25, 5  ;;  %v1201_v25 = vld [vmem:[%s6413_s28 + $0x78] sm:$0xe]  ;;  %v7218_v50 = vrot.slane %v3654_v62, 5  ;;  %v3675_v39 = vor.u32 %v3674_v9, %v7193_v35  ;;  %v3678_v55 = vshll.u32 %v7202_v18, 16 }
  0xc5   : > { %5718 = vmatmul.mubr.msk.bf16.gmra.mrb[24].mxu1 %vm685_vm3, %v8248_v43  ;;  %5875 = vmatprep.mubr.msk.bf16.mxu0 %vm685_vm3, %v6261_v21  ;;  %v3623_v21 = vsel %vm6439_vm4, %v3618_v46, %v7145_v7  ;;  %v5038_v24 = vrot.slane %v1201_v25, 9  ;;  %v6316_v43 = vld [vmem:[%s6413_s28 + $0x88] sm:$0xf]  ;;  %v7226_v7 = vld [vmem:[%s6413_s28 + $0x40] sm:$0xf]  ;;  %v3642_v12 = vrot.slane %v3641_v10, 4  ;;  %v8252_v62 = vcombine.low %v6822_v14, %v6831_v42 }
  0xc6   : > { %5721 = vmatprep.mubr.msk.bf16.mxu1 %vm685_vm3, %v8249_v52  ;;  %v3633_v31 = vsel %vm6439_vm4, %v3628_v54, %v3632_v61  ;;  %v1321_v6 = vrot.slane %v6316_v43, 5  ;;  %8251 = vst [vmem:[#allocation7_spill] sm:$0xff] %v7226_v7  ;;  %v3652_v52 = vrot.slane %v3651_v20, 4  ;;  %v1316_v46 = vrot.slane %v1314_v30, 4  ;;  %v6317_v54 = vld [vmem:[%s6413_s28 + $0x80] sm:$0x1] }
  0xc7   : > { %v1317_v61 = vrot.slane %v6317_v54, 5  ;;  %v3666_v9 = vrot.slane %v3665_v38, 4  ;;  %v5039_v25 = vrot.slane %v1202_v16, 9  ;;  %v3683_v8 = vshrl.u32 %v5362_v5, 16  ;;  %v6265_v10 = vld [vmem:[%s6413_s28 + $0x84] sm:$0xff]  }
  0xc8   : > { %v3686_v43 = vshll.u32 %v5362_v5, 16  ;;  %v7240_v20 = vcombine.low %v3623_v21, %v3633_v31  ;;  %v7244_v14 = vsel %vm734_vm0, %v7044_v26, 0  ;;  %v3696_v38 = vshrl.u32 %v7226_v7, 16  ;;  %v6266_v21 = vld [vmem:[%s6413_s28 + $0x90] sm:$0xff]   ;;  %v6322_v18 = vld [vmem:[%s6413_s28 + $0xa0] sm:$0xf] }
  0xc9   : > { %v3676_v16 = vrot.slane %v3675_v39, 4  ;;  %v3680_v5 = vrot.slane %v3678_v55, 5  ;;  %v1323_v54 = vrot.slane %v1321_v6, 4  ;;  %v3647_v31 = vsel %vm6439_vm4, %v3642_v12, %v7166_v37 }
  0xca   : > { %v3657_v26 = vsel %vm6439_vm4, %v3652_v52, %v7218_v50  ;;  %v7259_v39 = vsel %vm6665_vm7, %v5038_v24, %v1314_v30  ;;  %v7263_v55 = vsel %vm6665_vm7, %v1316_v46, %v1317_v61  ;;  %v3671_v37 = vsel %vm6439_vm4, %v3666_v9, %v7193_v35  ;;  %v5368_v30 = vld [vmem:[%s6413_s28 + $0x54] sm:$0xf]  ;;  %v7280_v24 = vld [vmem:[%s6413_s28 + $0x58] sm:$0xf]  ;;  %v7285_v61 = vld [vmem:[%s6413_s28 + $0x90] sm:$0xe] }
  0xcb   : > { %v7276_v12 = vsel %vm6665_vm7, %v5039_v25, %v1321_v6  ;;  %v3685_v50 = vrot.slane %v3683_v8, 4  ;;  %v3688_v52 = vrot.slane %v3686_v43, 5  ;;  %v3698_v46 = vrot.slane %v3696_v38, 4 }
  0xcc   : > { %5876 = vmatmul.mubr.msk.bf16.gmra.mrb[12].mxu0 %vm685_vm3, %v6263_v33  ;;  %v8253_v33 = vcombine.low %v7029_v0, %v7048_v23  ;;  %v6318_v0 = vld [vmem:[%s6413_s28 + $0x8c] sm:$0x1]  ;;  %v3681_v36 = vsel %vm6439_vm4, %v3676_v16, %v3680_v5  ;;  %v3731_v25 = vshrl.u32 %v5368_v30, 16  ;;  %v3734_v8 = vshll.u32 %v5368_v30, 16 }
  0xcd   : > { %5722 = vmatmul.mubr.msk.bf16.gmra.mrb[28].mxu1 %vm685_vm3, %v8252_v62  ;;  %5879 = vmatprep.mubr.msk.bf16.mxu0 %vm685_vm3, %v6264_v48  ;;  %v3692_v48 = vshll.u32 %v7226_v7, 16  ;;  %v1324_v23 = vrot.slane %v6318_v0, 5  ;;  %v5365_v62 = vld [vmem:[%s6413_s28 + $0x48] sm:$0xf]  ;;  %v7269_v0 = vld [vmem:[%s6413_s28 + $0x4c] sm:$0xf]  ;;  %v8255_v38 = vcombine.low %v7033_v29, %v7037_v53  ;;  %v7303_v16 = vcombine.low %v3647_v31, %v3657_v26 }
  0xce   : > { %5727 = vmatprep.mubr.msk.bf16.mxu1 %vm685_vm3, %v8253_v33  ;;  %v7266_v33 = vld [vmem:[%s6413_s28 + $0x44] sm:$0x1]  ;;  %v3707_v27 = vshrl.u32 %v5365_v62, 16  ;;  %v3710_v15 = vshll.u32 %v5365_v62, 16  ;;  %v3716_v6 = vshll.u32 %v7269_v0, 16  ;;  %v3720_v9 = vshrl.u32 %v7269_v0, 16 }
  0xcf   : > { %8254 = vst [vmem:[#allocation8_spill] sm:$0xff] %v7266_v33  ;;  %v7282_v28 = vrot.slane %v3692_v48, 5  ;;  %v7291_v35 = vsel %vm6665_vm7, %v1323_v54, %v1324_v23  ;;  %v3740_v43 = vshll.u32 %v7280_v24, 16  ;;  %v3744_v48 = vshrl.u32 %v7280_v24, 16  ;;  %v5371_v31 = vld [vmem:[%s6413_s28 + $0x60] sm:$0xf] }
  0xd0   : > { %v3702_v5 = vshll.u32 %v7266_v33, 16  ;;  %v5040_v54 = vrot.slane %v7285_v61, 9  ;;  %v8256_v23 = vcombine.low %v7074_v34, %v7090_v4  ;;  %v7314_v29 = vcombine.low %v3671_v37, %v3681_v36  ;;  %v6267_v26 = vld [vmem:[%s6413_s28 + $0x9c] sm:$0xff]   ;;  %v6268_v30 = vld [vmem:[%s6413_s28 + $0xa8] sm:$0xff]  }
  0xd1   : > { %v3689_v53 = vor.u32 %v3688_v52, %v3685_v50  ;;  %v3709_v62 = vrot.slane %v3707_v27, 4  ;;  %v7325_v34 = vrot.slane %v3716_v6, 5  ;;  %v3722_v4 = vrot.slane %v3720_v9, 4  ;;  %v6319_v36 = vld [vmem:[%s8223_s1 + $0x8] sm:$0x3] }
  0xd2   : > { %v3733_v27 = vrot.slane %v3731_v25, 4  ;;  %v3736_v37 = vrot.slane %v3734_v8, 5  ;;  %v7334_v50 = vrot.slane %v3740_v43, 5  ;;  %v3746_v52 = vrot.slane %v3744_v48, 4  ;;  %v6320_v6 = vld [vmem:[%s6413_s28 + $0x94] sm:$0xf] }
  0xd3   : > { %v7340_v9 = vld [vmem:[%s6413_s28 + $0x64] sm:$0xf]  ;;  %v3755_v61 = vshrl.u32 %v5371_v31, 16  ;;  %v7342_v22 = vrot.slane %v3689_v53, 4  ;;  %v1335_v25 = vrot.slane %v6322_v18, 5  ;;  %v3723_v43 = vor.u32 %v3722_v4, %v7325_v34 }
  0xd4   : > { %5880 = vmatmul.mubr.msk.bf16.gmra.mrb[16].mxu0 %vm685_vm3, %v6265_v10  ;;  %8257 = vst [vmem:[#allocation9_spill] sm:$0xff] %v7340_v9  ;;  %v3758_v10 = vshll.u32 %v5371_v31, 16  ;;  %v3737_v31 = vor.u32 %v3736_v37, %v3733_v27  ;;  %v3747_v53 = vor.u32 %v3746_v52, %v7334_v50  ;;  %v8258_v18 = vcombine.low %v7081_v19, %v7094_v58  ;;  %v6269_v37 = vld [vmem:[%s6413_s28 + $0xb4] sm:$0xff]  }
  0xd5   : > { %5728 = vmatmul.mubr.msk.bf16.vlgmr.msra.gmra.mrb[0].mxu1 %vm685_vm3, %v8255_v38  ;;  %5883 = vmatprep.mubr.msk.bf16.mxu0 %vm685_vm3, %v6266_v21  ;;  %v3712_v21 = vrot.slane %v3710_v15, 5  ;;  %v7323_v38 = vld [vmem:[%s6413_s28 + $0x50] sm:$0x1]  ;;  %v7332_v15 = vld [vmem:[%s6413_s28 + $0x5c] sm:$0x1]  ;;  %v8259_v27 = vcombine.low %v7099_v2, %v7103_v1  ;;  %v1337_v52 = vrot.slane %v1335_v25, 4 }
  0xd6   : > { %5760 = vmatpush3.bf16.msra.mxu1 %v7070_v49  ;;  %5731 = vmatprep.mubr.msk.bf16.mxu1 %vm685_vm3, %v8256_v23  ;;  %v3699_v49 = vor.u32 %v3698_v46, %v7282_v28  ;;  %v7336_v46 = vrot.slane %v3702_v5, 5  ;;  %v1328_v23 = vrot.slane %v6320_v6, 5  ;;  %v3726_v48 = vshll.u32 %v7323_v38, 16  ;;  %v1204_v5 = vld [vmem:[%s6413_s28 + $0x9c] sm:$0xe] }
  0xd7   : > { %6226 = vmatprep.subr.msk.bf16.mxu1 %vm734_vm0, %v6319_v36  ;;  %v6321_v36 = vld [vmem:[%s6413_s28 + $0x98] sm:$0x1]  ;;  %v3713_v7 = vor.u32 %v3712_v21, %v3709_v62  ;;  %v3750_v6 = vshll.u32 %v7332_v15, 16  ;;  %v3768_v62 = vshrl.u32 %v7340_v9, 16  ;;  %v3760_v4 = vrot.slane %v3758_v10, 5 }
  0xd8   : > { %v1331_v33 = vrot.slane %v6321_v36, 5  ;;  %v3700_v8 = vrot.slane %v3699_v49, 4  ;;  %v3764_v36 = vshll.u32 %v7340_v9, 16  ;;  %v7361_v21 = vsel %vm6665_vm7, %v5040_v54, %v1328_v23  ;;  %v7372_v2 = vld [vmem:[%s6413_s28 + $0x68] sm:$0x1] }
  0xd9   : > { %v3757_v49 = vrot.slane %v3755_v61, 4  ;;  %v3714_v19 = vrot.slane %v3713_v7, 4  ;;  %v5041_v58 = vrot.slane %v1204_v5, 9  ;;  %v3724_v3 = vrot.slane %v3723_v43, 4  ;;  %8260 = vst [vmem:[#allocation10_spill] sm:$0xff] %v7372_v2  ;;  %v6270_v5 = vld [vmem:[%s6413_s28 + $0xc0] sm:$0xff]  }
  0xda   : > { %v3728_v54 = vrot.slane %v3726_v48, 5  ;;  %v3752_v63 = vrot.slane %v3750_v6, 5  ;;  %v1342_v61 = vrot.slane %v6807_v56, 5  ;;  %v3738_v10 = vrot.slane %v3737_v31, 4  ;;  %v1206_v31 = vld [vmem:[%s6413_s28 + $0xb4] sm:$0xe] }
  0xdb   : > { %v3748_v51 = vrot.slane %v3747_v53, 4  ;;  %v7374_v1 = vrot.slane %v3764_v36, 5  ;;  %v3770_v7 = vrot.slane %v3768_v62, 4  ;;  %v3695_v43 = vsel %vm6439_vm4, %v7342_v22, %v7282_v28  ;;  %v6324_v62 = vld [vmem:[%s6413_s28 + $0xb0] sm:$0x1] }
  0xdc   : > { %5884 = vmatmul.mubr.msk.bf16.gmra.mrb[20].mxu0 %vm685_vm3, %v6267_v26  ;;  %v1330_v26 = vrot.slane %v1328_v23, 4  ;;  %v1205_v23 = vld [vmem:[%s6413_s28 + $0xa8] sm:$0xe]  ;;  %v3705_v48 = vsel %vm6439_vm4, %v3700_v8, %v7336_v46  ;;  %v3761_v6 = vor.u32 %v3760_v4, %v3757_v49  ;;  %v3719_v53 = vsel %vm6439_vm4, %v3714_v19, %v7325_v34  ;;  %v5374_v46 = vld [vmem:[%s6413_s28 + $0x6c] sm:$0xf] }
  0xdd   : > { %5732 = vmatmul.mubr.msk.bf16.gmra.mrb[4].mxu1 %vm685_vm3, %v8258_v18  ;;  %5887 = vmatprep.mubr.msk.bf16.mxu0 %vm685_vm3, %v6268_v30  ;;  %v6323_v18 = vld [vmem:[%s6413_s28 + $0xa4] sm:$0x1]  ;;  %v7394_v36 = vsel %vm6665_vm7, %v5041_v58, %v1335_v25  ;;  %v5042_v28 = vrot.slane %v1205_v23, 9  ;;  %v1344_v8 = vrot.slane %v1342_v61, 4  ;;  %v3774_v49 = vshll.u32 %v7372_v2, 16 }
  0xde   : > { %5735 = vmatprep.mubr.msk.bf16.mxu1 %vm685_vm3, %v8259_v27  ;;  %v1338_v30 = vrot.slane %v6323_v18, 5  ;;  %v7386_v56 = vsel %vm6665_vm7, %v1330_v26, %v1331_v33  ;;  %v3729_v33 = vsel %vm6439_vm4, %v3724_v3, %v3728_v54  ;;  %v1345_v26 = vrot.slane %v6324_v62, 5  ;;  %v5377_v18 = vld [vmem:[%s6413_s28 + $0x78] sm:$0xf]  ;;  %v7449_v54 = vld [vmem:[%s6413_s28 + $0xbc] sm:$0x1] }
  0xdf   : > { %v3743_v34 = vsel %vm6439_vm4, %v3738_v10, %v7334_v50  ;;  %v3753_v25 = vsel %vm6439_vm4, %v3748_v51, %v3752_v63  ;;  %v3771_v4 = vor.u32 %v3770_v7, %v7374_v1  ;;  %v5043_v27 = vrot.slane %v1206_v31, 9  ;;  %v7423_v51 = vld [vmem:[%s6413_s28 + $0x70] sm:$0xf]  ;;  %v7453_v10 = vld [vmem:[%s6413_s28 + $0x7c] sm:$0xf] }
  0xe0   : > { %v7398_v22 = vsel %vm6665_vm7, %v1337_v52, %v1338_v30  ;;  %v8262_v3 = vcombine.low %v7116_v45, %v7120_v59  ;;  %v7419_v19 = vrot.slane %v3761_v6, 4  ;;  %v1349_v50 = vrot.slane %v6831_v42, 5  ;;  %8263 = vst [vmem:[#allocation12_spill] sm:$0xff] %v7423_v51  ;;  %8265 = vst [vmem:[#allocation13_spill] sm:$0xff] %v7453_v10  ;;  %v5380_v7 = vld [vmem:[%s6413_s28 + $0x84] sm:$0xf] }
  0xe1   : > { %8261 = vst [vmem:[#allocation11_spill] sm:$0xff] %v7398_v22  ;;  %v3779_v63 = vshrl.u32 %v5374_v46, 16  ;;  %v8264_v45 = vcombine.low %v7124_v47, %v7151_v41  ;;  %v7431_v58 = vcombine.low %v3719_v53, %v3729_v33  ;;  %v7437_v42 = vsel %vm6665_vm7, %v5042_v28, %v1342_v61  ;;  %v6271_v61 = vld [vmem:[%s6413_s28 + $0xcc] sm:$0xff]   ;;  %v7465_v31 = vld [vmem:[%s6413_s28 + $0x88] sm:$0xf] }
  0xe2   : > { %v7440_v30 = vcombine.low %v3743_v34, %v3753_v25  ;;  %v7444_v47 = vsel %vm6665_vm7, %v1344_v8, %v1345_v26  ;;  %v7446_v41 = vrot.slane %v3774_v49, 5  ;;  %v3788_v6 = vshll.u32 %v7423_v51, 16  ;;  %8266 = vst [vmem:[#allocation14_spill] sm:$0xff] %v7465_v31  ;;  %v5383_v62 = vld [vmem:[%s6413_s28 + $0x90] sm:$0xf] }
  0xe3   : > { %v7471_v28 = vrot.slane %v1349_v50, 4  ;;  %v7473_v33 = vrot.slane %v3779_v63, 4  ;;  %v3792_v8 = vshrl.u32 %v7423_v51, 16  ;;  %v3803_v26 = vshrl.u32 %v5377_v18, 16  ;;  %v7480_v25 = vld [vmem:[%s6413_s28 + $0x94] sm:$0xf] }
  0xe4   : > { %5888 = vmatmul.mubr.msk.bf16.gmra.mrb[24].mxu0 %vm685_vm3, %v6269_v37  ;;  %v7417_v37 = vcombine.low %v3695_v43, %v3705_v48  ;;  %v7461_v43 = vsel %vm6665_vm7, %v5043_v27, %v1349_v50  ;;  %v3782_v48 = vshll.u32 %v5374_v46, 16  ;;  %v3806_v49 = vshll.u32 %v5377_v18, 16  ;;  %8267 = vst [vmem:[#allocation15_spill] sm:$0xff] %v7480_v25  ;;  %v7518_v2 = vld [vmem:[%s6413_s28 + $0x8c] sm:$0x1] }
  0xe5   : > { %5736 = vmatmul.mubr.msk.bf16.gmra.mrb[8].mxu1 %vm685_vm3, %v8262_v3  ;;  %5891 = vmatprep.mubr.msk.bf16.mxu0 %vm685_vm3, %v6270_v5  ;;  %v7457_v5 = vrot.slane %v3771_v4, 4  ;;  %v3812_v46 = vshll.u32 %v7453_v10, 16  ;;  %v3816_v34 = vshrl.u32 %v7453_v10, 16  ;;  %v3827_v4 = vshrl.u32 %v5380_v7, 16 }
  0xe6   : > { %5739 = vmatprep.mubr.msk.bf16.mxu1 %vm685_vm3, %v8264_v45  ;;  %v3830_v27 = vshll.u32 %v5380_v7, 16  ;;  %v3836_v3 = vshll.u32 %v7465_v31, 16  ;;  %v3840_v50 = vshrl.u32 %v7465_v31, 16  ;;  %v7490_v45 = vld [vmem:[%s6413_s28 + $0x74] sm:$0x1]  ;;  %v3784_v18 = vrot.slane %v3782_v48, 5 }
  0xe7   : > { %v3851_v52 = vshrl.u32 %v5383_v62, 16  ;;  %v3854_v53 = vshll.u32 %v5383_v62, 16  ;;  %v8268_v7 = vcombine.low %v7135_v60, %v7160_v44  ;;  %v3794_v59 = vrot.slane %v3792_v8, 4  ;;  %v5386_v48 = vld [vmem:[%s6413_s28 + $0x9c] sm:$0xf] }
  0xe8   : > { %v3860_v63 = vshll.u32 %v7480_v25, 16  ;;  %v3864_v23 = vshrl.u32 %v7480_v25, 16  ;;  %v8269_v62 = vcombine.low %v7175_v17, %v7179_v57  ;;  %v7508_v44 = vld [vmem:[%s6413_s28 + $0x80] sm:$0x1]  ;;  %v3805_v60 = vrot.slane %v3803_v26, 4 }
  0xe9   : > { %8270 = vst [vmem:[#allocation16_spill] sm:$0xff] %v7508_v44  ;;  %v3829_v31 = vrot.slane %v3827_v4, 4  ;;  %v3832_v8 = vrot.slane %v3830_v27, 5  ;;  %v7512_v10 = vrot.slane %v3836_v3, 5  ;;  %v3842_v51 = vrot.slane %v3840_v50, 4 }
  0xea   : > { %v7515_v25 = vld [vmem:[%s6413_s28 + $0xa0] sm:$0xf]  ;;  %v3853_v17 = vrot.slane %v3851_v52, 4  ;;  %v3856_v57 = vrot.slane %v3854_v53, 5  ;;  %v3878_v9 = vshll.u32 %v5386_v48, 16  ;;  %v3785_v26 = vor.u32 %v3784_v18, %v7473_v33 }
  0xeb   : > { %v3822_v27 = vshll.u32 %v7508_v44, 16  ;;  %v7527_v3 = vld [vmem:[%s6413_s28 + $0x98] sm:$0x1]  ;;  %v3884_v50 = vshll.u32 %v7515_v25, 16  ;;  %v3888_v52 = vshrl.u32 %v7515_v25, 16  ;;  %v3833_v22 = vor.u32 %v3832_v8, %v3829_v31 }
  0xec   : > { %5892 = vmatmul.mubr.msk.bf16.gmra.mrb[28].mxu0 %vm685_vm3, %v6271_v61  ;;  %v7498_v61 = vrot.slane %v3788_v6, 5  ;;  %v3818_v6 = vrot.slane %v3816_v34, 4  ;;  %v3866_v34 = vrot.slane %v3864_v23, 4  ;;  %v3846_v33 = vshll.u32 %v7518_v2, 16 }
  0xed   : > { %5740 = vmatmul.mubr.msk.bf16.gmra.mrb[12].mxu1 %vm685_vm3, %v8268_v7  ;;  %5897 = vmatprep.mubr.msk.bf16.mxu0 %vm685_vm3, %v7240_v20  ;;  %v3808_v7 = vrot.slane %v3806_v49, 5  ;;  %v7510_v20 = vrot.slane %v3812_v46, 5  ;;  %v3798_v49 = vshll.u32 %v7490_v45, 16  ;;  %v7522_v46 = vrot.slane %v3860_v63, 5 }
  0xee   : > { %5743 = vmatprep.mubr.msk.bf16.mxu1 %vm685_vm3, %v8269_v62  ;;  %v3875_v62 = vshrl.u32 %v5386_v48, 16  ;;  %v3795_v4 = vor.u32 %v3794_v59, %v7498_v61  ;;  %v3843_v23 = vor.u32 %v3842_v51, %v7512_v10  ;;  %v3857_v59 = vor.u32 %v3856_v57, %v3853_v17  ;;  %v7560_v57 = vld [vmem:[%s6413_s28 + $0xa4] sm:$0x1] }
  0xef   : > { %v3809_v53 = vor.u32 %v3808_v7, %v3805_v60  ;;  %v3819_v48 = vor.u32 %v3818_v6, %v7510_v20  ;;  %v3880_v18 = vrot.slane %v3878_v9, 5  ;;  %v8271_v44 = vcombine.low %v7187_v11, %v7191_v40 }
  0xf0   : > { %v3877_v63 = vrot.slane %v3875_v62, 4  ;;  %v8272_v31 = vrot.slane %v7449_v54, 5  ;;  %v3800_v51 = vrot.slane %v3798_v49, 5  ;;  %v3867_v60 = vor.u32 %v3866_v34, %v7522_v46  ;;  %v7563_v34 = vld [vmem:[%s6413_s28 + $0xac] sm:$0xf] }
  0xf1   : > { %v3870_v9 = vshll.u32 %v7527_v3, 16  ;;  %v8273_v11 = vcombine.low %v7259_v39, %v7263_v55  ;;  %v3786_v40 = vrot.slane %v3785_v26, 4  ;;  %v7556_v54 = vrot.slane %v3884_v50, 5 }
  0xf2   : > { %v3810_v7 = vrot.slane %v3809_v53, 4  ;;  %v3820_v6 = vrot.slane %v3819_v48, 4  ;;  %v3824_v8 = vrot.slane %v3822_v27, 5  ;;  %v3848_v17 = vrot.slane %v3846_v33, 5  ;;  %v7573_v48 = vld [vmem:[%s6413_s28 + $0xb0] sm:$0x1] }
  0xf3   : > { %v3834_v39 = vrot.slane %v3833_v22, 4  ;;  %v3844_v55 = vrot.slane %v3843_v23, 4  ;;  %v3858_v62 = vrot.slane %v3857_v59, 4  ;;  %v3881_v49 = vor.u32 %v3880_v18, %v3877_v63 }
  0xf4   : > { %5898 = vmatmul.mubr.msk.bf16.vlgmr.msra.gmra.mrb[0].mxu0 %vm685_vm3, %v7303_v16  ;;  %v7546_v16 = vsel %vm6665_vm7, %v7471_v28, %v8272_v31  ;;  %v3890_v28 = vrot.slane %v3888_v52, 4  ;;  %v3872_v26 = vrot.slane %v3870_v9, 5  ;;  %v3791_v52 = vsel %vm6439_vm4, %v3786_v40, %v7498_v61 }
  0xf5   : > { %5744 = vmatmul.mubr.msk.bf16.gmra.mrb[16].mxu1 %vm685_vm3, %v8271_v44  ;;  %5930 = vmatpush3.bf16.msra.mxu0 %v7244_v14  ;;  %v3796_v14 = vrot.slane %v3795_v4, 4  ;;  %v5389_v44 = vld [vmem:[%s6413_s28 + $0xa8] sm:$0xf]  ;;  %v3894_v22 = vshll.u32 %v7560_v57, 16  ;;  %v3815_v33 = vsel %vm6439_vm4, %v3810_v7, %v7510_v20  ;;  %v3825_v23 = vsel %vm6439_vm4, %v3820_v6, %v3824_v8 }
  0xf6   : > { %5747 = vmatprep.mubr.msk.bf16.mxu1 %vm685_vm3, %v8273_v11  ;;  %5901 = vmatprep.mubr.msk.bf16.mxu0 %vm685_vm3, %v7314_v29  ;;  %v3868_v29 = vrot.slane %v3867_v60, 4  ;;  %v3899_v4 = vshrl.u32 %v5389_v44, 16  ;;  %v3902_v50 = vshll.u32 %v5389_v44, 16  ;;  %v3891_v53 = vor.u32 %v3890_v28, %v7556_v54  ;;  %v5438_v11 = vld [vmem:[%s6413_s28 + $0x48] sm:$0xe] }
  0xf7   : > { %v3801_v27 = vsel %vm6439_vm4, %v3796_v14, %v3800_v51  ;;  %v3908_v59 = vshll.u32 %v7563_v34, 16  ;;  %v3912_v61 = vshrl.u32 %v7563_v34, 16  ;;  %v3839_v63 = vsel %vm6439_vm4, %v3834_v39, %v7512_v10  ;;  %v7638_v39 = vld [vmem:[%s6413_s28 + $0xb8] sm:$0xf] }
  0xf8   : > { %v3849_v18 = vsel %vm6439_vm4, %v3844_v55, %v3848_v17  ;;  %v3863_v20 = vsel %vm6439_vm4, %v3858_v62, %v7522_v46  ;;  %v3882_v31 = vrot.slane %v3881_v49, 4  ;;  %v8274_v51 = vcombine.low %v7276_v12, %v7291_v35 }
  0xf9   : > { %v3901_v10 = vrot.slane %v3899_v4, 4  ;;  %v3904_v60 = vrot.slane %v3902_v50, 5  ;;  %v3918_v9 = vshll.u32 %v7573_v48, 16  ;;  %v8275_v46 = vcombine.low %v7361_v21, %v7386_v56  ;;  %v5392_v21 = vld [vmem:[%s6413_s28 + $0xb4] sm:$0xf] }
  0xfa   : > { %v5059_v12 = vcombine.low %v7437_v42, %v7444_v47  ;;  %v8276_v35 = vsel %vm6439_vm4, %v7457_v5, %v7446_v41  ;;  %v3892_v14 = vrot.slane %v3891_v53, 4  ;;  %v3896_v28 = vrot.slane %v3894_v22, 5  ;;  %v5440_v4 = vld [vmem:[%s6413_s28 + $0x60] sm:$0xe]  ;;  %v5441_v53 = vld [vmem:[%s6413_s28 + $0x6c] sm:$0xe] }
  0xfb   : > { %v5060_v56 = vcombine.low %v7461_v43, %v7546_v16  ;;  %v7621_v44 = vcombine.low %v3791_v52, %v3801_v27  ;;  %v7623_v42 = vrot.slane %v3908_v59, 5  ;;  %v3914_v47 = vrot.slane %v3912_v61, 4  ;;  %v8285_v16 = vld [vmem:[#allocation4_spill] sm:$0xff] }
  0xfc   : > { %5902 = vmatmul.mubr.msk.bf16.gmra.mrb[4].mxu0 %vm685_vm3, %v7417_v37  ;;  %v3873_v37 = vsel %vm6439_vm4, %v3868_v29, %v3872_v26  ;;  %v7625_v41 = vcombine.low %v3815_v33, %v3825_v23  ;;  %v7627_v5 = vcombine.low %v3839_v63, %v3849_v18  ;;  %v3887_v6 = vsel %vm6439_vm4, %v3882_v31, %v7556_v54  ;;  %v8278_v23 = vld [vmem:[#allocation11_spill] sm:$0xff]  ;;  %v5395_v63 = vld [vmem:[%s6413_s28 + $0xc0] sm:$0xf]  ;;  %v8280_v18 = vld [vmem:[#allocation9_spill] sm:$0xff] }
  0xfd   : > { %5748 = vmatmul.mubr.msk.bf16.gmra.mrb[20].mxu1 %vm685_vm3, %v8274_v51  ;;  %5905 = vmatprep.mubr.msk.bf16.mxu0 %vm685_vm3, %v7431_v58  ;;  %v8277_v58 = vsel %vm6439_vm4, %v7419_v19, %v7374_v1  ;;  %v7629_v7 = vcombine.low %v3863_v20, %v3873_v37  ;;  %v5454_v1 = vrot.slane %v5438_v11, 9  ;;  %v5439_v19 = vld [vmem:[%s6413_s28 + $0x54] sm:$0xe]  ;;  %v3905_v8 = vor.u32 %v3904_v60, %v3901_v10  ;;  %v8281_v31 = vld [vmem:[#allocation10_spill] sm:$0xff] }
  0xfe   : > { %5751 = vmatprep.mubr.msk.bf16.mxu1 %vm685_vm3, %v8275_v46  ;;  %v5408_v40 = vcombine.low %v8277_v58, %v8276_v35  ;;  %v7635_v17 = vrot.slane %v3918_v9, 5  ;;  %v3923_v55 = vshrl.u32 %v5392_v21, 16  ;;  %v3897_v62 = vsel %vm6439_vm4, %v3892_v14, %v3896_v28  ;;  %v8282_v9 = vld [vmem:[#allocation12_spill] sm:$0xff]  ;;  %v7687_v35 = vld [vmem:[%s6413_s28 + $0xbc] sm:$0x1] }
  0xff   : > { %v3926_v49 = vshll.u32 %v5392_v21, 16  ;;  %v4382_v29 = vrot.slane %v7269_v0, 5  ;;  %v4385_v26 = vrot.slane %v7323_v38, 5  ;;  %v3915_v50 = vor.u32 %v3914_v47, %v7623_v42  ;;  %v7690_v58 = vld [vmem:[%s6413_s28 + $0xc4] sm:$0xf] }
 0x100   : > { %v5455_v52 = vrot.slane %v5439_v19, 9  ;;  %v4389_v54 = vrot.slane %v7280_v24, 5  ;;  %v4392_v27 = vrot.slane %v7332_v15, 5  ;;  %v3932_v22 = vshll.u32 %v7638_v39, 16  ;;  %v5442_v19 = vld [vmem:[%s6413_s28 + $0x78] sm:$0xe] }
 0x101   : > { %v3936_v33 = vshrl.u32 %v7638_v39, 16  ;;  %v7655_v0 = vsel %vm6665_vm7, %v5454_v1, %v4382_v29  ;;  %v4384_v38 = vrot.slane %v4382_v29, 4  ;;  %v8279_v59 = vcombine.low %v7394_v36, %v8278_v23  ;;  %v8283_v23 = vld [vmem:[#allocation13_spill] sm:$0xff] }
 0x102   : > { %v7662_v24 = vcombine.low %v3887_v6, %v3897_v62  ;;  %v7666_v15 = vsel %vm6665_vm7, %v5455_v52, %v4389_v54  ;;  %v5456_v61 = vrot.slane %v5440_v4, 9  ;;  %v4396_v20 = vrot.slane %v8280_v18, 5  ;;  %v6272_v6 = vld [vmem:[%s6413_s28 + $0xc] sm:$0xff]  }
 0x103   : > { %v7672_v36 = vsel %vm6665_vm7, %v4384_v38, %v4385_v26  ;;  %v4399_v51 = vrot.slane %v8281_v31, 5  ;;  %v5457_v37 = vrot.slane %v5441_v53, 9  ;;  %v4403_v11 = vrot.slane %v8282_v9, 5 }
 0x104   : > { %5906 = vmatmul.mubr.msk.bf16.gmra.mrb[8].mxu0 %vm685_vm3, %v7440_v30  ;;  %v4391_v30 = vrot.slane %v4389_v54, 4  ;;  %v5471_v10 = vcombine.low %v7655_v0, %v7672_v36  ;;  %v4406_v46 = vrot.slane %v7490_v45, 5  ;;  %v7696_v14 = vsel %vm6665_vm7, %v5456_v61, %v4396_v20 }
 0x105   : > { %5752 = vmatmul.mubr.msk.bf16.gmra.mrb[24].mxu1 %vm685_vm3, %v8279_v59  ;;  %5909 = vmatprep.mubr.msk.bf16.mxu0 %vm685_vm3, %v5408_v40  ;;  %v4398_v28 = vrot.slane %v4396_v20, 4  ;;  %v7698_v21 = vrot.slane %v3923_v55, 4  ;;  %v3947_v47 = vshrl.u32 %v5395_v63, 16  ;;  %v7702_v45 = vsel %vm6665_vm7, %v5457_v37, %v4403_v11  ;;  %v5169_v55 = vld [vmem:[%s6413_s28 + $0x78] sm:$0xf]  ;;  %v8284_v59 = vld [vmem:[#allocation16_spill] sm:$0xff] }
 0x106   : > { %5755 = vmatprep.mubr.msk.bf16.mxu1 %vm685_vm3, %v5059_v12  ;;  %v7680_v60 = vsel %vm6665_vm7, %v4391_v30, %v4392_v27  ;;  %v7684_v12 = vrot.slane %v3905_v8, 4  ;;  %v4405_v1 = vrot.slane %v4403_v11, 4  ;;  %v7706_v8 = vrot.slane %v3915_v50, 4 }
 0x107   : > { %v5472_v40 = vcombine.low %v7666_v15, %v7680_v60  ;;  %v7708_v62 = vrot.slane %v3926_v49, 5  ;;  %v3950_v29 = vshll.u32 %v5395_v63, 16  ;;  %v7712_v26 = vsel %vm6665_vm7, %v4398_v28, %v4399_v51  ;;  %v8287_v28 = vld [vmem:[#allocation14_spill] sm:$0xff] }
 0x108   : > { %v7715_v4 = vrot.slane %v3932_v22, 5  ;;  %v7717_v52 = vrot.slane %v3936_v33, 4  ;;  %v5473_v54 = vcombine.low %v7696_v14, %v7712_v26  ;;  %v7723_v27 = vsel %vm6665_vm7, %v4405_v1, %v4406_v46  ;;  %v5443_v33 = vld [vmem:[%s6413_s28 + $0x84] sm:$0xe]  ;;  %v6273_v1 = vld [vmem:[%s6413_s28 + $0x18] sm:$0xff]  }
 0x109   : > { %v3942_v49 = vshll.u32 %v7687_v35, 16  ;;  %v3956_v50 = vshll.u32 %v7690_v58, 16  ;;  %v5474_v53 = vcombine.low %v7702_v45, %v7723_v27  ;;  %v5458_v22 = vrot.slane %v5442_v19, 9  ;;  %v6335_v60 = vld [vmem:[%s6413_s28 + $0xa0] sm:$0xf] }
 0x10a   : > { %v3949_v38 = vrot.slane %v3947_v47, 4  ;;  %v4413_v30 = vrot.slane %v8284_v59, 5  ;;  %v2272_v61 = vshrl.u32 %v5169_v55, 16  ;;  %v3952_v63 = vrot.slane %v3950_v29, 5  ;;  %v5398_v29 = vld [vmem:[%s6413_s28 + $0xcc] sm:$0xf] }
 0x10b   : > { %v3960_v18 = vshrl.u32 %v7690_v58, 16  ;;  %v2275_v43 = vshll.u32 %v5169_v55, 16  ;;  %v5459_v37 = vrot.slane %v5443_v33, 9  ;;  %v3911_v9 = vsel %vm6439_vm4, %v7684_v12, %v7623_v42  ;;  %v7766_v55 = vld [vmem:[%s6413_s28 + $0xd0] sm:$0xf] }
 0x10c   : > { %5910 = vmatmul.mubr.msk.bf16.gmra.mrb[12].mxu0 %vm685_vm3, %v7621_v44  ;;  %v4410_v44 = vrot.slane %v8283_v23, 5  ;;  %v2274_v51 = vrot.slane %v2272_v61, 4  ;;  %v3929_v11 = vor.u32 %v7708_v62, %v7698_v21  ;;  %v4417_v47 = vrot.slane %v8287_v28, 5  ;;  %v6274_v21 = vld [vmem:[%s6413_s28 + $0x24] sm:$0xff]   ;;  %v6339_v27 = vld [vmem:[%s6413_s28 + $0xac] sm:$0xf] }
 0x10d   : > { %5756 = vmatmul.mubr.msk.bf16.gmra.mrb[28].mxu1 %vm685_vm3, %v5060_v56  ;;  %5913 = vmatprep.mubr.msk.bf16.mxu0 %vm685_vm3, %v7625_v41  ;;  %v8286_v56 = vld [vmem:[#allocation5_spill] sm:$0xff]  ;;  %v2277_v46 = vrot.slane %v2275_v43, 5  ;;  %v3921_v19 = vsel %vm6439_vm4, %v7706_v8, %v7635_v17  ;;  %v4420_v12 = vrot.slane %v7518_v2, 5  ;;  %v7774_v62 = vrot.slane %v3956_v50, 5  ;;  %v5444_v8 = vld [vmem:[%s6413_s28 + $0x90] sm:$0xe] }
 0x10e   : > { %5761 = vmatprep.mubr.msk.bf16.mxu1 %vm685_vm3, %v6272_v6  ;;  %v2294_v41 = vsel %vm6439_vm4, %v8286_v56, %v8285_v16  ;;  %v7748_v20 = vsel %vm6665_vm7, %v5458_v22, %v4410_v44  ;;  %v4412_v31 = vrot.slane %v4410_v44, 4  ;;  %v3939_v6 = vor.u32 %v7717_v52, %v7715_v4  ;;  %v7780_v52 = vld [vmem:[%s6413_s28 + $0xc8] sm:$0x1]  ;;  %v8289_v16 = vld [vmem:[#allocation2_spill] sm:$0xff] }
 0x10f   : > { %v3962_v22 = vrot.slane %v3960_v18, 4  ;;  %v2278_v17 = vor.u32 %v2277_v46, %v2274_v51  ;;  %v3944_v23 = vrot.slane %v3942_v49, 5  ;;  %v3953_v44 = vor.u32 %v3952_v63, %v3949_v38  ;;  %v8290_v51 = vld [vmem:[#allocation3_spill] sm:$0xff] }
 0x110   : > { %v7770_v42 = vsel %vm6665_vm7, %v4412_v31, %v4413_v30  ;;  %v7784_v59 = vsel %vm6665_vm7, %v5459_v37, %v4417_v47  ;;  %v4419_v30 = vrot.slane %v4417_v47, 4  ;;  %v3971_v2 = vshrl.u32 %v5398_v29, 16 }
 0x111   : > { %v5475_v33 = vcombine.low %v7748_v20, %v7770_v42  ;;  %v3974_v50 = vshll.u32 %v5398_v29, 16  ;;  %v3980_v61 = vshll.u32 %v7766_v55, 16  ;;  %v2279_v18 = vrot.slane %v2278_v17, 4  ;;  %v6275_v29 = vld [vmem:[%s6413_s28 + $0x30] sm:$0xff]  }
 0x112   : > { %v3984_v49 = vshrl.u32 %v7766_v55, 16  ;;  %v7795_v38 = vsel %vm6665_vm7, %v4419_v30, %v4420_v12  ;;  %v5460_v63 = vrot.slane %v5444_v8, 9  ;;  %v3963_v56 = vor.u32 %v3962_v22, %v7774_v62 }
 0x113   : > { %v3966_v31 = vshll.u32 %v7780_v52, 16  ;;  %v5476_v37 = vcombine.low %v7784_v59, %v7795_v38  ;;  %v5414_v46 = vcombine.low %v3911_v9, %v3921_v19  ;;  %v3930_v28 = vrot.slane %v3929_v11, 4  ;;  %v5445_v11 = vld [vmem:[%s6413_s28 + $0x9c] sm:$0xe] }
 0x114   : > { %5914 = vmatmul.mubr.msk.bf16.gmra.mrb[16].mxu0 %vm685_vm3, %v7627_v5  ;;  %v8288_v5 = vld [vmem:[#allocation15_spill] sm:$0xff]  ;;  %v3940_v47 = vrot.slane %v3939_v6, 4  ;;  %v3954_v12 = vrot.slane %v3953_v44, 4  ;;  %v4427_v8 = vrot.slane %v7527_v3, 5  ;;  %v3973_v30 = vrot.slane %v3971_v2, 4  ;;  %v6276_v19 = vld [vmem:[%s6413_s28 + $0x3c] sm:$0xff]  }
 0x115   : > { %5762 = vmatmul.mubr.msk.bf16.vlgmr.msra.gmra.mrb[0].mxu1 %vm685_vm3, %v6273_v1  ;;  %5917 = vmatprep.mubr.msk.bf16.mxu0 %vm685_vm3, %v7629_v7  ;;  %v4424_v43 = vrot.slane %v8288_v5, 5  ;;  %v2284_v7 = vsel %vm6439_vm4, %v2279_v18, %v8290_v51  ;;  %v3976_v18 = vrot.slane %v3974_v50, 5  ;;  %v7818_v5 = vrot.slane %v3980_v61, 5 }
 0x116   : > { %5964 = vmatpush3.bf16.msra.mxu1 %v8289_v16  ;;  %5765 = vmatprep.mubr.msk.bf16.mxu1 %vm685_vm3, %v6274_v21  ;;  %v7807_v1 = vcombine.low %v2284_v7, %v2294_v41  ;;  %v7811_v21 = vld [vmem:[%s6413_s28 + $0xd4] sm:$0x1]  ;;  %v3986_v9 = vrot.slane %v3984_v49, 4  ;;  %v3964_v41 = vrot.slane %v3963_v56, 4  ;;  %v3968_v6 = vrot.slane %v3966_v31, 5 }
 0x117   : > { %v7815_v22 = vsel %vm6665_vm7, %v5460_v63, %v4424_v43  ;;  %v4426_v17 = vrot.slane %v4424_v43, 4  ;;  %v3935_v63 = vsel %vm6439_vm4, %v3930_v28, %v7715_v4  ;;  %v3945_v2 = vsel %vm6439_vm4, %v3940_v47, %v3944_v23  ;;  %v6326_v16 = vld [vmem:[%s6413_s28 + $0x1c] sm:$0xf]  ;;  %v5446_v28 = vld [vmem:[%s6413_s28 + $0xa8] sm:$0xe] }
 0x118   : > { %v3990_v50 = vshll.u32 %v7811_v21, 16  ;;  %v5461_v61 = vrot.slane %v5445_v11, 9  ;;  %v4431_v49 = vrot.slane %v7515_v25, 5  ;;  %v3959_v4 = vsel %vm6439_vm4, %v3954_v12, %v7774_v62  ;;  %v5434_v62 = vld [vmem:[%s6413_s28 + $0x18] sm:$0xe]  ;;  %v6277_v47 = vld [vmem:[%s6413_s28 + $0x48] sm:$0xff]  }
 0x119   : > { %v7824_v44 = vsel %vm6665_vm7, %v4426_v17, %v4427_v8  ;;  %v3987_v43 = vor.u32 %v3986_v9, %v7818_v5  ;;  %v4434_v23 = vrot.slane %v7560_v57, 5  ;;  %v3969_v25 = vsel %vm6439_vm4, %v3964_v41, %v3968_v6  ;;  %v6327_v11 = vld [vmem:[%s6413_s28 + $0x20] sm:$0x1] }
 0x11a   : > { %v5477_v3 = vcombine.low %v7815_v22, %v7824_v44  ;;  %v4354_v56 = vrot.slane %v6326_v16, 5  ;;  %v7850_v31 = vsel %vm6665_vm7, %v5461_v61, %v4431_v49  ;;  %v4433_v51 = vrot.slane %v4431_v49, 4  ;;  %v5447_v49 = vld [vmem:[%s6413_s28 + $0xb4] sm:$0xe] }
 0x11b   : > { %v5415_v7 = vcombine.low %v3935_v63, %v3945_v2  ;;  %v3988_v17 = vrot.slane %v3987_v43, 4  ;;  %v5462_v41 = vrot.slane %v5446_v28, 9  ;;  %v4438_v6 = vrot.slane %v7563_v34, 5  ;;  %v5435_v2 = vld [vmem:[%s6413_s28 + $0x24] sm:$0xe] }
 0x11c   : > { %5918 = vmatmul.mubr.msk.bf16.gmra.mrb[20].mxu0 %vm685_vm3, %v7662_v24  ;;  %v3977_v24 = vor.u32 %v3976_v18, %v3973_v30  ;;  %v7855_v57 = vsel %vm6665_vm7, %v4433_v51, %v4434_v23  ;;  %v6278_v30 = vld [vmem:[%s6413_s28 + $0x54] sm:$0xff]   ;;  %v5450_v18 = vrot.slane %v5434_v62, 9  ;;  %v4356_v9 = vrot.slane %v4354_v56, 4  ;;  %v6330_v28 = vld [vmem:[%s6413_s28 + $0x2c] sm:$0x1] }
 0x11d   : > { %5766 = vmatmul.mubr.msk.bf16.gmra.mrb[4].mxu1 %vm685_vm3, %v6275_v29  ;;  %5921 = vmatprep.mubr.msk.bf16.mxu0 %vm685_vm3, %v5414_v46  ;;  %v3992_v46 = vrot.slane %v3990_v50, 5  ;;  %v5416_v29 = vcombine.low %v3959_v4, %v3969_v25  ;;  %v5478_v8 = vcombine.low %v7850_v31, %v7855_v57  ;;  %v4441_v63 = vrot.slane %v7573_v48, 5  ;;  %v6328_v50 = vld [vmem:[%s6413_s28 + $0x28] sm:$0xf]  ;;  %v5436_v25 = vld [vmem:[%s6413_s28 + $0x30] sm:$0xe] }
 0x11e   : > { %5769 = vmatprep.mubr.msk.bf16.mxu1 %vm685_vm3, %v6276_v19  ;;  %v3978_v12 = vrot.slane %v3977_v24, 4  ;;  %v4357_v19 = vrot.slane %v6327_v11, 5  ;;  %v4361_v61 = vrot.slane %v6328_v50, 5  ;;  %v7878_v48 = vsel %vm6665_vm7, %v5462_v41, %v4438_v6  ;;  %v6280_v11 = vld [vmem:[%s6413_s28 + $0x6c] sm:$0xff]   ;;  %v8291_v41 = vld [vmem:[#allocation6_spill] sm:$0xff] }
 0x11f   : > { %v3993_v34 = vsel %vm6439_vm4, %v3988_v17, %v3992_v46  ;;  %v4440_v24 = vrot.slane %v4438_v6, 4  ;;  %v4355_v43 = vsel %vm6665_vm7, %v5450_v18, %v4354_v56  ;;  %v5451_v51 = vrot.slane %v5435_v2, 9  ;;  %v5448_v50 = vld [vmem:[%s6413_s28 + $0xc0] sm:$0xe]  ;;  %v6344_v31 = vld [vmem:[%s6413_s28 + $0xc8] sm:$0x1] }
 0x120   : > { %v3983_v4 = vsel %vm6439_vm4, %v3978_v12, %v7818_v5  ;;  %v4358_v23 = vsel %vm6665_vm7, %v4356_v9, %v4357_v19  ;;  %v6329_v5 = vld [vmem:[%s6413_s28 + $0x34] sm:$0xf]  ;;  %v6279_v12 = vld [vmem:[%s6413_s28 + $0x60] sm:$0xff]   ;;  %v5452_v18 = vrot.slane %v5436_v25, 9  ;;  %v4448_v9 = vrot.slane %v7687_v35, 5 }
 0x121   : > { %v4368_v16 = vrot.slane %v6329_v5, 5  ;;  %v7889_v62 = vsel %vm6665_vm7, %v4440_v24, %v4441_v63  ;;  %v5417_v46 = vcombine.low %v3983_v4, %v3993_v34  ;;  %v5467_v17 = vcombine.low %v4355_v43, %v4358_v23  ;;  %v5437_v24 = vld [vmem:[%s6413_s28 + $0x3c] sm:$0xe] }
 0x122   : > { %v5479_v56 = vcombine.low %v7878_v48, %v7889_v62  ;;  %v4371_v6 = vrot.slane %v8291_v41, 5  ;;  %v4362_v35 = vsel %vm6665_vm7, %v5451_v51, %v4361_v61  ;;  %v5464_v5 = vrot.slane %v5448_v50, 9 }
 0x123   : > { %v4370_v19 = vrot.slane %v4368_v16, 4  ;;  %v4369_v23 = vsel %vm6665_vm7, %v5452_v18, %v4368_v16  ;;  %v4455_v51 = vrot.slane %v7780_v52, 5  ;;  %v2435_v57 = vshll.u32 %v6344_v31, 16 }
 0x124   : > { %5922 = vmatmul.mubr.msk.bf16.gmra.mrb[24].mxu0 %vm685_vm3, %v5415_v7  ;;  %v5463_v7 = vrot.slane %v5447_v49, 9 }
 0x125   : > { %5770 = vmatmul.mubr.msk.bf16.gmra.mrb[8].mxu1 %vm685_vm3, %v6277_v47  ;;  %5925 = vmatprep.mubr.msk.bf16.mxu0 %vm685_vm3, %v5416_v29  ;;  %v4364_v47 = vrot.slane %v6330_v28, 5  ;;  %v4445_v29 = vrot.slane %v7638_v39, 5  ;;  %v8292_v39 = vld [vmem:[#allocation7_spill] sm:$0xff]  ;;  %v4372_v25 = vsel %vm6665_vm7, %v4370_v19, %v4371_v6  ;;  %v5453_v28 = vrot.slane %v5437_v24, 9 }
 0x126   : > { %5773 = vmatprep.mubr.msk.bf16.mxu1 %vm685_vm3, %v6278_v30  ;;  %v4363_v30 = vrot.slane %v4361_v61, 4  ;;  %v4375_v49 = vrot.slane %v8292_v39, 5  ;;  %v4452_v61 = vrot.slane %v7690_v58, 5  ;;  %v6331_v39 = vld [vmem:[%s6413_s28 + $0x70] sm:$0xf]  ;;  %v4459_v24 = vrot.slane %v7766_v55, 5 }
 0x127   : > { %v7901_v63 = vsel %vm6665_vm7, %v5463_v7, %v4445_v29  ;;  %v4447_v2 = vrot.slane %v4445_v29, 4  ;;  %v5166_v7 = vld [vmem:[%s6413_s28 + $0x6c] sm:$0xf]  ;;  %v8293_v29 = vld [vmem:[#allocation8_spill] sm:$0xff] }
 0x128   : > { %v4365_v34 = vsel %vm6665_vm7, %v4363_v30, %v4364_v47  ;;  %v4377_v47 = vrot.slane %v4375_v49, 4  ;;  %v6281_v30 = vld [vmem:[%s6413_s28 + $0x78] sm:$0xff]   ;;  %v7932_v16 = vsel %vm6665_vm7, %v5464_v5, %v4452_v61  ;;  %v4454_v18 = vrot.slane %v4452_v61, 4 }
 0x129   : > { %v7908_v4 = vsel %vm6665_vm7, %v4447_v2, %v4448_v9  ;;  %v5469_v9 = vcombine.low %v4369_v23, %v4372_v25  ;;  %v2248_v19 = vshrl.u32 %v5166_v7, 16  ;;  %v2251_v41 = vshll.u32 %v5166_v7, 16 }
 0x12a   : > { %v5480_v43 = vcombine.low %v7901_v63, %v7908_v4  ;;  %v7937_v58 = vsel %vm6665_vm7, %v4454_v18, %v4455_v51  ;;  %v4376_v6 = vsel %vm6665_vm7, %v5453_v28, %v4375_v49  ;;  %v4462_v49 = vrot.slane %v7811_v21, 5  ;;  %v6283_v51 = vld [vmem:[%s6413_s28 + $0x90] sm:$0xff]   ;;  %v6284_v21 = vld [vmem:[%s6413_s28 + $0x9c] sm:$0xff]  }
 0x12b   : > { %v5481_v50 = vcombine.low %v7932_v16, %v7937_v58  ;;  %v2250_v23 = vrot.slane %v2248_v19, 4  ;;  %v2253_v25 = vrot.slane %v2251_v41, 5  ;;  %v4461_v7 = vrot.slane %v4459_v24, 4 }
 0x12c   : > { %5926 = vmatmul.mubr.msk.bf16.gmra.mrb[28].mxu0 %vm685_vm3, %v5417_v46  ;;  %v5468_v46 = vcombine.low %v4362_v35, %v4365_v34  ;;  %v2257_v35 = vshll.u32 %v6331_v39, 16  ;;  %v2261_v34 = vshrl.u32 %v6331_v39, 16 }
 0x12d   : > { %5774 = vmatmul.mubr.msk.bf16.gmra.mrb[12].mxu1 %vm685_vm3, %v6279_v12  ;;  %5931 = vmatprep.mubr.msk.bf16.mxu0 %vm685_vm3, %v5467_v17  ;;  %v4378_v12 = vrot.slane %v8293_v29, 5  ;;  %v5449_v17 = vld [vmem:[%s6413_s28 + $0xcc] sm:$0xe]  ;;  %v7959_v55 = vsel %vm6665_vm7, %v4461_v7, %v4462_v49 }
 0x12e   : > { %5777 = vmatprep.mubr.msk.bf16.mxu1 %vm685_vm3, %v6280_v11  ;;  %v6282_v11 = vld [vmem:[%s6413_s28 + $0x84] sm:$0xff]   ;;  %v5465_v52 = vrot.slane %v5449_v17, 9  ;;  %v2263_v28 = vrot.slane %v2261_v34, 4  ;;  %v6332_v17 = vld [vmem:[%s6413_s28 + $0x74] sm:$0x1] }
 0x12f   : > { %v4379_v2 = vsel %vm6665_vm7, %v4377_v47, %v4378_v12  ;;  %v5172_v47 = vld [vmem:[%s6413_s28 + $0x84] sm:$0xf]  ;;  %v2254_v12 = vor.u32 %v2253_v25, %v2250_v23  ;;  %v6286_v34 = vld [vmem:[%s6413_s28 + $0xb4] sm:$0xff]  }
 0x130   : > { %v7954_v5 = vsel %vm6665_vm7, %v5465_v52, %v4459_v24  ;;  %v5470_v61 = vcombine.low %v4376_v6, %v4379_v2  ;;  %v2299_v18 = vshll.u32 %v5172_v47, 16  ;;  %v5175_v6 = vld [vmem:[%s6413_s28 + $0x90] sm:$0xf]  ;;  %v6285_v2 = vld [vmem:[%s6413_s28 + $0xa8] sm:$0xff]  }
 0x131   : > { %v5482_v29 = vcombine.low %v7954_v5, %v7959_v55  ;;  %v2255_v52 = vrot.slane %v2254_v12, 4  ;;  %v2320_v23 = vshrl.u32 %v5175_v6, 16  ;;  %v2323_v25 = vshll.u32 %v5175_v6, 16 }
 0x132   : > { %v2353_v12 = vshll.u32 %v6335_v60, 16 }
 0x133   : > { %v2325_v14 = vrot.slane %v2323_v25, 5  ;;  %v6338_v25 = vld [vmem:[%s6413_s28 + $0xa4] sm:$0x1] }
 0x134   : > { %5932 = vmatmul.mubr.msk.bf16.vlgmr.msra.gmra.mrb[0].mxu0 %vm685_vm3, %v5468_v46  ;;  %v2259_v46 = vrot.slane %v2257_v35, 5  ;;  %v5178_v35 = vld [vmem:[%s6413_s28 + $0x9c] sm:$0xf]  ;;  %v8001_v6 = vrot.slane %v2353_v12, 5 }
 0x135   : > { %5778 = vmatmul.mubr.msk.bf16.gmra.mrb[16].mxu1 %vm685_vm3, %v6281_v30  ;;  %5935 = vmatprep.mubr.msk.bf16.mxu0 %vm685_vm3, %v5469_v9  ;;  %v2267_v30 = vshll.u32 %v6332_v17, 16  ;;  %v2296_v9 = vshrl.u32 %v5172_v47, 16  ;;  %v2347_v47 = vshll.u32 %v5178_v35, 16  ;;  %v6336_v17 = vld [vmem:[%s6413_s28 + $0x8c] sm:$0x1] }
 0x136   : > { %5781 = vmatprep.mubr.msk.bf16.mxu1 %vm685_vm3, %v6282_v11  ;;  %v2264_v13 = vor.u32 %v2263_v28, %v2259_v46  ;;  %v6333_v11 = vld [vmem:[%s6413_s28 + $0x88] sm:$0xf]  ;;  %v2260_v7 = vsel %vm6439_vm4, %v2255_v52, %v2259_v46 }
 0x137   : > { %v2305_v19 = vshll.u32 %v6333_v11, 16  ;;  %v2309_v41 = vshrl.u32 %v6333_v11, 16  ;;  %v2269_v0 = vrot.slane %v2267_v30, 5  ;;  %v2298_v36 = vrot.slane %v2296_v9, 4 }
 0x138   : > { %v2265_v39 = vrot.slane %v2264_v13, 4  ;;  %v2315_v30 = vshll.u32 %v6336_v17, 16  ;;  %v2322_v9 = vrot.slane %v2320_v23, 4  ;;  %v2349_v11 = vrot.slane %v2347_v47, 5 }
 0x139   : > { %v7978_v24 = vrot.slane %v2305_v19, 5  ;;  %v2311_v49 = vrot.slane %v2309_v41, 4  ;;  %v6287_v19 = vld [vmem:[%s6413_s28 + $0xc0] sm:$0xff]  }
 0x13a   : > { %v2270_v46 = vsel %vm6439_vm4, %v2265_v39, %v2269_v0  ;;  %v5181_v39 = vld [vmem:[%s6413_s28 + $0xa8] sm:$0xf] }
 0x13b   : > { %v2312_v13 = vor.u32 %v2311_v49, %v7978_v24  ;;  %v5199_v41 = vcombine.low %v2260_v7, %v2270_v46  ;;  %v2363_v7 = vshll.u32 %v6338_v25, 16  ;;  %v2371_v45 = vshll.u32 %v5181_v39, 16 }
 0x13c   : > { %5936 = vmatmul.mubr.msk.bf16.gmra.mrb[4].mxu0 %vm685_vm3, %v5470_v61  ;;  %v6334_v61 = vld [vmem:[%s6413_s28 + $0x94] sm:$0xf] }
 0x13d   : > { %5782 = vmatmul.mubr.msk.bf16.gmra.mrb[20].mxu1 %vm685_vm3, %v6283_v51  ;;  %5939 = vmatprep.mubr.msk.bf16.mxu0 %vm685_vm3, %v5471_v10  ;;  %v2301_v10 = vrot.slane %v2299_v18, 5  ;;  %v2329_v51 = vshll.u32 %v6334_v61, 16  ;;  %v2333_v28 = vshrl.u32 %v6334_v61, 16  ;;  %v2313_v0 = vrot.slane %v2312_v13, 4 }
 0x13e   : > { %5785 = vmatprep.mubr.msk.bf16.mxu1 %vm685_vm3, %v6284_v21  ;;  %v2344_v21 = vshrl.u32 %v5178_v35, 16  ;;  %v6337_v35 = vld [vmem:[%s6413_s28 + $0x98] sm:$0x1]  ;;  %v2368_v61 = vshrl.u32 %v5181_v39, 16  ;;  %v5187_v39 = vld [vmem:[%s6413_s28 + $0xc0] sm:$0xf] }
 0x13f   : > { %v2302_v15 = vor.u32 %v2301_v10, %v2298_v36  ;;  %v7998_v26 = vrot.slane %v2329_v51, 5  ;;  %v2317_v36 = vrot.slane %v2315_v30, 5  ;;  %v2326_v10 = vor.u32 %v2325_v14, %v2322_v9  ;;  %v5184_v51 = vld [vmem:[%s6413_s28 + $0xb4] sm:$0xf] }
 0x140   : > { %v2346_v18 = vrot.slane %v2344_v21, 4  ;;  %v2381_v21 = vshrl.u32 %v6339_v27, 16  ;;  %v2392_v20 = vshrl.u32 %v5184_v51, 16  ;;  %v2395_v42 = vshll.u32 %v5184_v51, 16 }
 0x141   : > { %v2303_v52 = vrot.slane %v2302_v15, 4  ;;  %v2318_v46 = vsel %vm6439_vm4, %v2313_v0, %v2317_v36  ;;  %v2327_v15 = vrot.slane %v2326_v10, 4  ;;  %v2365_v30 = vrot.slane %v2363_v7, 5 }
 0x142   : > { %v2350_v23 = vor.u32 %v2349_v11, %v2346_v18  ;;  %v2370_v9 = vrot.slane %v2368_v61, 4  ;;  %v2383_v11 = vrot.slane %v2381_v21, 4  ;;  %v6343_v61 = vld [vmem:[%s6413_s28 + $0xbc] sm:$0x1] }
 0x143   : > { %v2308_v47 = vsel %vm6439_vm4, %v2303_v52, %v7978_v24  ;;  %v2332_v0 = vsel %vm6439_vm4, %v2327_v15, %v7998_v26  ;;  %v2411_v22 = vshll.u32 %v6343_v61, 16 }
 0x144   : > { %5940 = vmatmul.mubr.msk.bf16.gmra.mrb[8].mxu0 %vm685_vm3, %v5472_v40  ;;  %v2357_v40 = vshrl.u32 %v6335_v60, 16  ;;  %v2351_v17 = vrot.slane %v2350_v23, 4  ;;  %v5201_v24 = vcombine.low %v2308_v47, %v2318_v46 }
 0x145   : > { %5786 = vmatmul.mubr.msk.bf16.gmra.mrb[24].mxu1 %vm685_vm3, %v6285_v2  ;;  %5943 = vmatprep.mubr.msk.bf16.mxu0 %vm685_vm3, %v5473_v54  ;;  %v2335_v54 = vrot.slane %v2333_v28, 4 }
 0x146   : > { %5789 = vmatprep.mubr.msk.bf16.mxu1 %vm685_vm3, %v6286_v34  ;;  %v2359_v2 = vrot.slane %v2357_v40, 4  ;;  %v2339_v34 = vshll.u32 %v6337_v35, 16  ;;  %v2356_v10 = vsel %vm6439_vm4, %v2351_v17, %v8001_v6  ;;  %v2437_v17 = vrot.slane %v2435_v57, 5 }
 0x147   : > { %v2336_v49 = vor.u32 %v2335_v54, %v7998_v26  ;;  %v2373_v54 = vrot.slane %v2371_v45, 5  ;;  %v6341_v26 = vld [vmem:[%s6413_s28 + $0xb0] sm:$0x1] }
 0x148   : > { %v2360_v28 = vor.u32 %v2359_v2, %v8001_v6  ;;  %v2341_v60 = vrot.slane %v2339_v34, 5  ;;  %v2387_v35 = vshll.u32 %v6341_v26, 16  ;;  %v2416_v34 = vshrl.u32 %v5187_v39, 16 }
 0x149   : > { %v2337_v13 = vrot.slane %v2336_v49, 4  ;;  %v2374_v38 = vor.u32 %v2373_v54, %v2370_v9  ;;  %v2419_v6 = vshll.u32 %v5187_v39, 16  ;;  %v6342_v49 = vld [vmem:[%s6413_s28 + $0xc4] sm:$0xf] }
 0x14a   : > { %v2361_v14 = vrot.slane %v2360_v28, 4  ;;  %v2425_v23 = vshll.u32 %v6342_v49, 16  ;;  %v2429_v25 = vshrl.u32 %v6342_v49, 16  ;;  %v2389_v45 = vrot.slane %v2387_v35, 5 }
 0x14b   : > { %v2342_v36 = vsel %vm6439_vm4, %v2337_v13, %v2341_v60  ;;  %v2375_v51 = vrot.slane %v2374_v38, 4  ;;  %v2413_v60 = vrot.slane %v2411_v22, 5 }
 0x14c   : > { %5944 = vmatmul.mubr.msk.bf16.gmra.mrb[12].mxu0 %vm685_vm3, %v5474_v53  ;;  %v2377_v53 = vshll.u32 %v6339_v27, 16  ;;  %v2366_v59 = vsel %vm6439_vm4, %v2361_v14, %v2365_v30  ;;  %v5202_v44 = vcombine.low %v2332_v0, %v2342_v36  ;;  %v2418_v27 = vrot.slane %v2416_v34, 4  ;;  %v8109_v36 = vld [vmem:[%s8225_s3] ss:$0 sm:$0xff] }
 0x14d   : > { %5790 = vmatmul.mubr.msk.bf16.gmra.mrb[28].mxu1 %vm685_vm3, %v6287_v19  ;;  %5947 = vmatprep.mubr.msk.bf16.mxu0 %vm685_vm3, %v5475_v33  ;;  %v6340_v33 = vld [vmem:[%s6413_s28 + $0xb8] sm:$0xf]  ;;  %v2394_v19 = vrot.slane %v2392_v20, 4  ;;  %v2427_v21 = vrot.slane %v2425_v23, 5  ;;  %v2431_v47 = vrot.slane %v2429_v25, 4 }
 0x14e   : > { %5811 = vmatprep.mubr.msk.bf16.mxu1 %vm685_vm3, %v5199_v41  ;;  %v2401_v12 = vshll.u32 %v6340_v33, 16  ;;  %v2405_v40 = vshrl.u32 %v6340_v33, 16  ;;  %v2379_v18 = vrot.slane %v2377_v53, 5  ;;  %v2397_v41 = vrot.slane %v2395_v42, 5 }
 0x14f   : > { %v2421_v53 = vrot.slane %v2419_v6, 5 }
 0x150   : > { %v2403_v52 = vrot.slane %v2401_v12, 5  ;;  %v2407_v2 = vrot.slane %v2405_v40, 4  ;;  %v2380_v20 = vsel %vm6439_vm4, %v2375_v51, %v2379_v18  ;;  %v2432_v12 = vor.u32 %v2431_v47, %v2427_v21 }
 0x151   : > { %v2422_v33 = vor.u32 %v2421_v53, %v2418_v27 }
 0x152   : > { %v2408_v7 = vor.u32 %v2407_v2, %v2403_v52  ;;  %v2433_v13 = vrot.slane %v2432_v12, 4  ;;  %v8104_v2 = vld [vmem:[%s8224_s2] ss:$0 sm:$0xff] }
 0x153   : > { %v2423_v40 = vrot.slane %v2422_v33, 4 }
 0x154   : > { %5948 = vmatmul.mubr.msk.bf16.gmra.mrb[16].mxu0 %vm685_vm3, %v5476_v37  ;;  %v2384_v37 = vor.u32 %v2383_v11, %v2379_v18  ;;  %v2409_v15 = vrot.slane %v2408_v7, 4  ;;  %v2438_v9 = vsel %vm6439_vm4, %v2433_v13, %v2437_v17 }
 0x155   : > { %5812 = vmatmul.mubr.msk.bf16.vlgmr.msra.gmra.mrb[16].mxu1 %vm685_vm3, %v7807_v1  ;;  %5951 = vmatprep.mubr.msk.bf16.mxu0 %vm685_vm3, %v5477_v3  ;;  %v2398_v1 = vor.u32 %v2397_v41, %v2394_v19  ;;  %v5203_v3 = vcombine.low %v2356_v10, %v2366_v59  ;;  %v2428_v30 = vsel %vm6439_vm4, %v2423_v40, %v2427_v21 }
 0x156   : > { %5815 = vmatprep.mubr.msk.bf16.mxu1 %vm685_vm3, %v5201_v24  ;;  %v2385_v28 = vrot.slane %v2384_v37, 4  ;;  %v2414_v48 = vsel %vm6439_vm4, %v2409_v15, %v2413_v60  ;;  %v5206_v14 = vcombine.low %v2428_v30, %v2438_v9 }
 0x157   : > { %v2399_v46 = vrot.slane %v2398_v1, 4 }
 0x158   : > { %v2390_v42 = vsel %vm6439_vm4, %v2385_v28, %v2389_v45 }
 0x159   : > { %v5204_v62 = vcombine.low %v2380_v20, %v2390_v42 }
 0x15c   : > { %5952 = vmatmul.mubr.msk.bf16.gmra.mrb[20].mxu0 %vm685_vm3, %v5478_v8  ;;  %v2404_v8 = vsel %vm6439_vm4, %v2399_v46, %v2403_v52 }
 0x15d   : > { %5816 = vmatmul.mubr.msk.bf16.gmra.mrb[20].mxu1 %vm685_vm3, %v5202_v44  ;;  %5955 = vmatprep.mubr.msk.bf16.mxu0 %vm685_vm3, %v5479_v56  ;;  %v5205_v56 = vcombine.low %v2404_v8, %v2414_v48 }
 0x15e   : > { %5819 = vmatprep.mubr.msk.bf16.mxu1 %vm685_vm3, %v5203_v3 }
 0x164   : > { %5956 = vmatmul.mubr.msk.bf16.gmra.mrb[24].mxu0 %vm685_vm3, %v5480_v43 }
 0x165   : > { %5820 = vmatmul.mubr.msk.bf16.gmra.mrb[24].mxu1 %vm685_vm3, %v5204_v62  ;;  %5959 = vmatprep.mubr.msk.bf16.mxu0 %vm685_vm3, %v5481_v50 }
 0x166   : > { %5823 = vmatprep.mubr.msk.bf16.mxu1 %vm685_vm3, %v5205_v56 }
 0x16c   : > { %5960 = vmatmul.mubr.msk.bf16.gmra.mrb[28].mxu0 %vm685_vm3, %v5482_v29 }
 0x16d   : > { %5824 = vmatmul.mubr.msk.bf16.gmra.mrb[28].mxu1 %vm685_vm3, %v5206_v14 }
 0x1e8   : > { %v5763_v63 = vpop.f32.mrb[0].mxu1 }
 0x1e9   : > { %v1848_v4 = vpop.f32.mrb[1].mxu1 }
 0x1ea   : > { %v5764_v43 = vpop.f32.mrb[2].mxu1 }
 0x1eb   : > { %v1851_v16 = vpop.f32.mrb[3].mxu1 }
 0x1f0   : > { %v5767_v58 = vpop.f32.mrb[4].mxu1 }
 0x1f1   : > { %v1864_v50 = vpop.f32.mrb[5].mxu1 }
 0x1f2   : > { %v5768_v54 = vpop.f32.mrb[6].mxu1 }
 0x1f3   : > { %v1867_v18 = vpop.f32.mrb[7].mxu1 }
 0x1f8   : > { %v5771_v11 = vpop.f32.mrb[8].mxu1 }
 0x1f9   : > { %v1880_v32 = vpop.f32.mrb[9].mxu1 }
 0x1fa   : > { %v8089_v24 = vpop.f32.mrb[10].mxu1 }
 0x1fb   : > { %v8091_v19 = vpop.f32.mrb[11].mxu1 }
 0x200   : > { %v8093_v5 = vpop.f32.mrb[12].mxu1 }
 0x201   : > { %v8095_v55 = vpop.f32.mrb[13].mxu1 }
 0x202   : > { %v8097_v29 = vpop.f32.mrb[14].mxu1 }
 0x203   : > { %v8099_v41 = vpop.f32.mrb[15].mxu1 }
 0x207   : > { %v5933_v52 = vpop.f32.mrb[0].mxu0 }
 0x208   : > { %v5965_v39 = vadd.f32 %v5933_v52, %v5763_v63  ;;  %v4599_v0 = vpop.f32.mrb[1].mxu0 }
 0x209   : > { %v5966_v10 = vadd.f32 %v4599_v0, %v1848_v4  ;;  %v5934_v59 = vpop.f32.mrb[2].mxu0 }
 0x20a   : > { %v4767_v38 = vmul.f32 %v5965_v39, %v8104_v2  ;;  %v5967_v37 = vadd.f32 %v5934_v59, %v5764_v43  ;;  %v4602_v26 = vpop.f32.mrb[3].mxu0 }
 0x20b   : > { %v4765_v35 = vmul.f32 %v5966_v10, %v8104_v2  ;;  %v5968_v34 = vadd.f32 %v4602_v26, %v1851_v16 }
 0x20c   : > { %v4806_v6 = vadd.f32 %v8109_v36, %v4767_v38  ;;  %v4768_v49 = vmul.f32 %v5967_v37, %v8104_v2 }
 0x20d   : > { %v4804_v23 = vadd.f32 %v8109_v36, %v4765_v35  ;;  %v4766_v25 = vmul.f32 %v5968_v34, %v8104_v2 }
 0x20e   : > { %v4838_v1 = vmax.f32 %v4806_v6, 0.0  ;;  %v4807_v7 = vadd.f32 %v8109_v36, %v4768_v49 }
 0x20f   : > { %v4836_v61 = vmax.f32 %v4804_v23, 0.0  ;;  %v4805_v22 = vadd.f32 %v8109_v36, %v4766_v25  ;;  %v5937_v44 = vpop.f32.mrb[4].mxu0 }
 0x210   : > { %4870 = vst [vmem:[%s8119_s26 + $0x10] sm:$0xff] %v4838_v1  ;;  %v4839_v3 = vmax.f32 %v4807_v7, 0.0  ;;  %v5969_v51 = vadd.f32 %v5937_v44, %v5767_v58  ;;  %v4615_v28 = vpop.f32.mrb[5].mxu0 }
 0x211   : > { %4868 = vst [vmem:[%s8119_s26] sm:$0xff] %v4836_v61  ;;  %v4837_v45 = vmax.f32 %v4805_v22, 0.0  ;;  %v5970_v27 = vadd.f32 %v4615_v28, %v1864_v50  ;;  %v5938_v53 = vpop.f32.mrb[6].mxu0 }
 0x212   : > { %4871 = vst [vmem:[%s8119_s26 + $0x18] sm:$0xff] %v4839_v3  ;;  %v4771_v21 = vmul.f32 %v5969_v51, %v8104_v2  ;;  %v5971_v47 = vadd.f32 %v5938_v53, %v5768_v54  ;;  %v4618_v46 = vpop.f32.mrb[7].mxu0 }
 0x213   : > { %4869 = vst [vmem:[%s8119_s26 + $0x8] sm:$0xff] %v4837_v45  ;;  %v4769_v15 = vmul.f32 %v5970_v27, %v8104_v2  ;;  %v5972_v60 = vadd.f32 %v4618_v46, %v1867_v18 }
 0x214   : > { %v4810_v20 = vadd.f32 %v8109_v36, %v4771_v21  ;;  %v4772_v42 = vmul.f32 %v5971_v47, %v8104_v2 }
 0x215   : > { %v4808_v33 = vadd.f32 %v8109_v36, %v4769_v15  ;;  %v4770_v12 = vmul.f32 %v5972_v60, %v8104_v2 }
 0x216   : > { %v4842_v31 = vmax.f32 %v4810_v20, 0.0  ;;  %v4811_v57 = vadd.f32 %v8109_v36, %v4772_v42 }
 0x217   : > { %v4840_v8 = vmax.f32 %v4808_v33, 0.0  ;;  %v4809_v48 = vadd.f32 %v8109_v36, %v4770_v12  ;;  %v5941_v62 = vpop.f32.mrb[8].mxu0 }
 0x218   : > { %4874 = vst [vmem:[%s8119_s26 + $0x30] sm:$0xff] %v4842_v31  ;;  %v4843_v56 = vmax.f32 %v4811_v57, 0.0  ;;  %v5973_v40 = vadd.f32 %v5941_v62, %v5771_v11  ;;  %v4631_v13 = vpop.f32.mrb[9].mxu0 }
 0x219   : > { %4872 = vst [vmem:[%s8119_s26 + $0x20] sm:$0xff] %v4840_v8  ;;  %v4841_v17 = vmax.f32 %v4809_v48, 0.0  ;;  %v5974_v30 = vadd.f32 %v4631_v13, %v1880_v32  ;;  %v5942_v9 = vpop.f32.mrb[10].mxu0 }
 0x21a   : > { %4875 = vst [vmem:[%s8119_s26 + $0x38] sm:$0xff] %v4843_v56  ;;  %v4775_v14 = vmul.f32 %v5973_v40, %v8104_v2  ;;  %v5975_v63 = vadd.f32 %v5942_v9, %v8089_v24  ;;  %v4634_v4 = vpop.f32.mrb[11].mxu0 }
 0x21b   : > { %4873 = vst [vmem:[%s8119_s26 + $0x28] sm:$0xff] %v4841_v17  ;;  %v4773_v43 = vmul.f32 %v5974_v30, %v8104_v2  ;;  %v5976_v16 = vadd.f32 %v4634_v4, %v8091_v19 }
 0x21c   : > { %v4814_v58 = vadd.f32 %v8109_v36, %v4775_v14  ;;  %v4776_v50 = vmul.f32 %v5975_v63, %v8104_v2 }
 0x21d   : > { %v4812_v54 = vadd.f32 %v8109_v36, %v4773_v43  ;;  %v4774_v18 = vmul.f32 %v5976_v16, %v8104_v2 }
 0x21e   : > { %v4846_v11 = vmax.f32 %v4814_v58, 0.0  ;;  %v4815_v32 = vadd.f32 %v8109_v36, %v4776_v50 }
 0x21f   : > { %v4844_v24 = vmax.f32 %v4812_v54, 0.0  ;;  %v4813_v52 = vadd.f32 %v8109_v36, %v4774_v18  ;;  %v5945_v39 = vpop.f32.mrb[12].mxu0 }
 0x220   : > { %4878 = vst [vmem:[%s8119_s26 + $0x50] sm:$0xff] %v4846_v11  ;;  %v4847_v0 = vmax.f32 %v4815_v32, 0.0  ;;  %v5977_v19 = vadd.f32 %v5945_v39, %v8093_v5  ;;  %v4647_v10 = vpop.f32.mrb[13].mxu0 }
 0x221   : > { %4876 = vst [vmem:[%s8119_s26 + $0x40] sm:$0xff] %v4844_v24  ;;  %v4845_v59 = vmax.f32 %v4813_v52, 0.0  ;;  %v5978_v38 = vadd.f32 %v4647_v10, %v8095_v55  ;;  %v5946_v37 = vpop.f32.mrb[14].mxu0 }
 0x222   : > { %4879 = vst [vmem:[%s8119_s26 + $0x58] sm:$0xff] %v4847_v0  ;;  %v4779_v26 = vmul.f32 %v5977_v19, %v8104_v2  ;;  %v5979_v35 = vadd.f32 %v5946_v37, %v8097_v29  ;;  %v4650_v34 = vpop.f32.mrb[15].mxu0 }
 0x223   : > { %4877 = vst [vmem:[%s8119_s26 + $0x48] sm:$0xff] %v4845_v59  ;;  %v4777_v6 = vmul.f32 %v5978_v38, %v8104_v2  ;;  %v5980_v49 = vadd.f32 %v4650_v34, %v8099_v41 }
 0x224   : > { %v4818_v5 = vadd.f32 %v8109_v36, %v4779_v26  ;;  %v4780_v23 = vmul.f32 %v5979_v35, %v8104_v2 }
 0x225   : > { %v4816_v55 = vadd.f32 %v8109_v36, %v4777_v6  ;;  %v4778_v25 = vmul.f32 %v5980_v49, %v8104_v2 }
 0x226   : > { %v4850_v1 = vmax.f32 %v4818_v5, 0.0  ;;  %v4819_v7 = vadd.f32 %v8109_v36, %v4780_v23 }
 0x227   : > { %v4848_v29 = vmax.f32 %v4816_v55, 0.0  ;;  %v4817_v61 = vadd.f32 %v8109_v36, %v4778_v25  ;;  %v5949_v22 = vpop.f32.mrb[16].mxu0 }
 0x228   : > { %4882 = vst [vmem:[%s8119_s26 + $0x70] sm:$0xff] %v4850_v1  ;;  %v4851_v44 = vmax.f32 %v4819_v7, 0.0  ;;  %v5813_v41 = vpop.f32.mrb[16].mxu1  ;;  %v4663_v3 = vpop.f32.mrb[17].mxu0 }
 0x229   : > { %4880 = vst [vmem:[%s8119_s26 + $0x60] sm:$0xff] %v4848_v29  ;;  %v4849_v51 = vmax.f32 %v4817_v61, 0.0  ;;  %v5981_v28 = vadd.f32 %v5949_v22, %v5813_v41  ;;  %v2638_v45 = vpop.f32.mrb[17].mxu1  ;;  %v5950_v27 = vpop.f32.mrb[18].mxu0 }
 0x22a   : > { %4883 = vst [vmem:[%s8119_s26 + $0x78] sm:$0xff] %v4851_v44  ;;  %v5982_v53 = vadd.f32 %v4663_v3, %v2638_v45  ;;  %v5814_v21 = vpop.f32.mrb[18].mxu1  ;;  %v4666_v47 = vpop.f32.mrb[19].mxu0 }
 0x22b   : > { %4881 = vst [vmem:[%s8119_s26 + $0x68] sm:$0xff] %v4849_v51  ;;  %v4783_v46 = vmul.f32 %v5981_v28, %v8104_v2  ;;  %v5983_v15 = vadd.f32 %v5950_v27, %v5814_v21  ;;  %v2641_v60 = vpop.f32.mrb[19].mxu1 }
 0x22c   : > { %v4781_v20 = vmul.f32 %v5982_v53, %v8104_v2  ;;  %v5984_v42 = vadd.f32 %v4666_v47, %v2641_v60 }
 0x22d   : > { %v4822_v33 = vadd.f32 %v8109_v36, %v4783_v46  ;;  %v4784_v12 = vmul.f32 %v5983_v15, %v8104_v2 }
 0x22e   : > { %v4820_v31 = vadd.f32 %v8109_v36, %v4781_v20  ;;  %v4782_v57 = vmul.f32 %v5984_v42, %v8104_v2 }
 0x22f   : > { %v4854_v8 = vmax.f32 %v4822_v33, 0.0  ;;  %v4823_v48 = vadd.f32 %v8109_v36, %v4784_v12  ;;  %v5953_v62 = vpop.f32.mrb[20].mxu0 }
 0x230   : > { %v4852_v56 = vmax.f32 %v4820_v31, 0.0  ;;  %v4821_v40 = vadd.f32 %v8109_v36, %v4782_v57  ;;  %v5817_v13 = vpop.f32.mrb[20].mxu1  ;;  %v4679_v17 = vpop.f32.mrb[21].mxu0 }
 0x231   : > { %4886 = vst [vmem:[%s8119_s26 + $0x90] sm:$0xff] %v4854_v8  ;;  %v4855_v30 = vmax.f32 %v4823_v48, 0.0  ;;  %v5985_v9 = vadd.f32 %v5953_v62, %v5817_v13  ;;  %v2654_v14 = vpop.f32.mrb[21].mxu1  ;;  %v5954_v63 = vpop.f32.mrb[22].mxu0 }
 0x232   : > { %4884 = vst [vmem:[%s8119_s26 + $0x80] sm:$0xff] %v4852_v56  ;;  %v4853_v4 = vmax.f32 %v4821_v40, 0.0  ;;  %v5986_v43 = vadd.f32 %v4679_v17, %v2654_v14  ;;  %v5818_v16 = vpop.f32.mrb[22].mxu1  ;;  %v4682_v58 = vpop.f32.mrb[23].mxu0 }
 0x233   : > { %4887 = vst [vmem:[%s8119_s26 + $0x98] sm:$0xff] %v4855_v30  ;;  %v4787_v50 = vmul.f32 %v5985_v9, %v8104_v2  ;;  %v5987_v54 = vadd.f32 %v5954_v63, %v5818_v16  ;;  %v2657_v18 = vpop.f32.mrb[23].mxu1 }
 0x234   : > { %4885 = vst [vmem:[%s8119_s26 + $0x88] sm:$0xff] %v4853_v4  ;;  %v4785_v11 = vmul.f32 %v5986_v43, %v8104_v2  ;;  %v5988_v32 = vadd.f32 %v4682_v58, %v2657_v18 }
 0x235   : > { %v4826_v24 = vadd.f32 %v8109_v36, %v4787_v50  ;;  %v4788_v52 = vmul.f32 %v5987_v54, %v8104_v2 }
 0x236   : > { %v4824_v39 = vadd.f32 %v8109_v36, %v4785_v11  ;;  %v4786_v0 = vmul.f32 %v5988_v32, %v8104_v2 }
 0x237   : > { %v4858_v19 = vmax.f32 %v4826_v24, 0.0  ;;  %v4827_v10 = vadd.f32 %v8109_v36, %v4788_v52  ;;  %v5957_v59 = vpop.f32.mrb[24].mxu0 }
 0x238   : > { %v4856_v38 = vmax.f32 %v4824_v39, 0.0  ;;  %v4825_v37 = vadd.f32 %v8109_v36, %v4786_v0  ;;  %v5821_v26 = vpop.f32.mrb[24].mxu1  ;;  %v4695_v35 = vpop.f32.mrb[25].mxu0 }
 0x239   : > { %4890 = vst [vmem:[%s8119_s26 + $0xb0] sm:$0xff] %v4858_v19  ;;  %v4859_v34 = vmax.f32 %v4827_v10, 0.0  ;;  %v5989_v6 = vadd.f32 %v5957_v59, %v5821_v26  ;;  %v2670_v49 = vpop.f32.mrb[25].mxu1  ;;  %v5958_v5 = vpop.f32.mrb[26].mxu0 }
 0x23a   : > { %4888 = vst [vmem:[%s8119_s26 + $0xa0] sm:$0xff] %v4856_v38  ;;  %v4857_v23 = vmax.f32 %v4825_v37, 0.0  ;;  %v5990_v55 = vadd.f32 %v4695_v35, %v2670_v49  ;;  %v5822_v25 = vpop.f32.mrb[26].mxu1  ;;  %v4698_v1 = vpop.f32.mrb[27].mxu0 }
 0x23b   : > { %4891 = vst [vmem:[%s8119_s26 + $0xb8] sm:$0xff] %v4859_v34  ;;  %v4791_v7 = vmul.f32 %v5989_v6, %v8104_v2  ;;  %v5991_v29 = vadd.f32 %v5958_v5, %v5822_v25  ;;  %v2673_v61 = vpop.f32.mrb[27].mxu1 }
 0x23c   : > { %4889 = vst [vmem:[%s8119_s26 + $0xa8] sm:$0xff] %v4857_v23  ;;  %v4789_v22 = vmul.f32 %v5990_v55, %v8104_v2  ;;  %v5992_v44 = vadd.f32 %v4698_v1, %v2673_v61 }
 0x23d   : > { %v4830_v41 = vadd.f32 %v8109_v36, %v4791_v7  ;;  %v4792_v3 = vmul.f32 %v5991_v29, %v8104_v2 }
 0x23e   : > { %v4828_v51 = vadd.f32 %v8109_v36, %v4789_v22  ;;  %v4790_v28 = vmul.f32 %v5992_v44, %v8104_v2 }
 0x23f   : > { %v4862_v45 = vmax.f32 %v4830_v41, 0.0  ;;  %v4831_v27 = vadd.f32 %v8109_v36, %v4792_v3  ;;  %v5961_v53 = vpop.f32.mrb[28].mxu0 }
 0x240   : > { %v4860_v21 = vmax.f32 %v4828_v51, 0.0  ;;  %v4829_v47 = vadd.f32 %v8109_v36, %v4790_v28  ;;  %v5825_v46 = vpop.f32.mrb[28].mxu1  ;;  %v4711_v15 = vpop.f32.mrb[29].mxu0 }
 0x241   : > { %4894 = vst [vmem:[%s8119_s26 + $0xd0] sm:$0xff] %v4862_v45  ;;  %v4863_v60 = vmax.f32 %v4831_v27, 0.0  ;;  %v5993_v20 = vadd.f32 %v5961_v53, %v5825_v46  ;;  %v2686_v42 = vpop.f32.mrb[29].mxu1  ;;  %v5962_v33 = vpop.f32.mrb[30].mxu0 }
 0x242   : > { %4892 = vst [vmem:[%s8119_s26 + $0xc0] sm:$0xff] %v4860_v21  ;;  %v4861_v12 = vmax.f32 %v4829_v47, 0.0  ;;  %v5994_v31 = vadd.f32 %v4711_v15, %v2686_v42  ;;  %v5826_v57 = vpop.f32.mrb[30].mxu1  ;;  %v4714_v8 = vpop.f32.mrb[31].mxu0 }
 0x243   : > { %4895 = vst [vmem:[%s8119_s26 + $0xd8] sm:$0xff] %v4863_v60  ;;  %v4795_v48 = vmul.f32 %v5993_v20, %v8104_v2  ;;  %v5995_v62 = vadd.f32 %v5962_v33, %v5826_v57  ;;  %v2689_v56 = vpop.f32.mrb[31].mxu1 }
 0x244   : > { %4893 = vst [vmem:[%s8119_s26 + $0xc8] sm:$0xff] %v4861_v12  ;;  %v4793_v40 = vmul.f32 %v5994_v31, %v8104_v2  ;;  %v5996_v13 = vadd.f32 %v4714_v8, %v2689_v56 }
 0x245   : > { %v4834_v17 = vadd.f32 %v8109_v36, %v4795_v48  ;;  %v4796_v30 = vmul.f32 %v5995_v62, %v8104_v2 }
 0x246   : > { %v4832_v9 = vadd.f32 %v8109_v36, %v4793_v40  ;;  %v4794_v14 = vmul.f32 %v5996_v13, %v8104_v2 }
 0x247   : > { %v4866_v63 = vmax.f32 %v4834_v17, 0.0  ;;  %v4835_v4 = vadd.f32 %v8109_v36, %v4796_v30 }
 0x248   : > { %v4864_v43 = vmax.f32 %v4832_v9, 0.0  ;;  %v4833_v16 = vadd.f32 %v8109_v36, %v4794_v14 }
 0x249   : > { %4898 = vst [vmem:[%s8119_s26 + $0xf0] sm:$0xff] %v4866_v63  ;;  %v4867_v58 = vmax.f32 %v4835_v4, 0.0 }
 0x24a   : > { %4896 = vst [vmem:[%s8119_s26 + $0xe0] sm:$0xff] %v4864_v43  ;;  %v4865_v50 = vmax.f32 %v4833_v16, 0.0 }
 0x24b   : > { %4899 = vst [vmem:[%s8119_s26 + $0xf8] sm:$0xff] %v4867_v58 }
 0x24c   : > { %4897 = vst [vmem:[%s8119_s26 + $0xe8] sm:$0xff] %v4865_v50 }
 0x24d PF: > { %s14_s15 = sadd.s32 1, %s6351_s15  }
 0x24e   : > { %p11_p4 = scmp.ge.s32.totalorder %s14_s15, 4  }
 0x250   :  { %13 = sbr.rel (!%p11_p4) target bundleno = 1 (0x1), region = 76 }

</bundles_post_ra>
